<compile_context>
chip_gen: v7x
topology: tpu7x:2x2x1
jax: 0.10.0
libtpu: 0.0.40
codegen_flags: <defaults>
</compile_context>

<pallas_src>
import functools

import jax
import jax.numpy as jnp
from jax.experimental import pallas as pl
from jax.experimental.pallas import tpu as pltpu

K = 7    # conv kernel size
PAD = 3  # conv padding


def _spatial_attention_kernel(w_ref, x_ref, o_ref, sum_ref, max_ref, *, total_c):
    # w_ref  : SMEM (2*K*K,) flattened conv weight, layout [channel, kh, kw]
    # x_ref  : VMEM (1, Ct, H, W)  one batch element, one channel block (unpadded)
    # o_ref  : VMEM (1, 1, H, W)
    # sum_ref: VMEM (H, W) f32   running channel sum   (persists across c steps)
    # max_ref: VMEM (H, W) f32   running channel max
    H = o_ref.shape[2]
    W = o_ref.shape[3]
    Hp = H + 2 * PAD

    c_idx = pl.program_id(1)
    last_c = pl.num_programs(1) - 1

    xb = x_ref[0]                                            # (Ct, H, W) native dtype
    part_sum = jnp.sum(xb, axis=0, dtype=jnp.float32)        # f32 accumulation
    part_max = jnp.max(xb, axis=0).astype(jnp.float32)

    @pl.when(c_idx == 0)
    def _():
        sum_ref[...] = part_sum
        max_ref[...] = part_max

    @pl.when(c_idx != 0)
    def _():
        sum_ref[...] = sum_ref[...] + part_sum
        max_ref[...] = jnp.maximum(max_ref[...], part_max)

    @pl.when(c_idx == last_c)
    def _():
        avg_hw = sum_ref[...] * (1.0 / float(total_c))       # (H, W), true mean
        max_hw = max_ref[...]                                 # (H, W), true max

        # Zero-pad the two maps in VMEM values (no padded HBM copy of x).
        zrow = jnp.zeros((PAD, W), jnp.float32)
        zcol = jnp.zeros((Hp, PAD), jnp.float32)

        def pad2d(f):
            f = jnp.concatenate([zrow, f, zrow], axis=0)      # (Hp, W)
            return jnp.concatenate([zcol, f, zcol], axis=1)   # (Hp, Wp)

        feats = (pad2d(avg_hw), pad2d(max_hw))

        # Hoist the 98 SMEM scalar reads out of the FMA loop.
        ws = [w_ref[i] for i in range(2 * K * K)]

        acc = jnp.zeros((H, W), jnp.float32)
        for ci, feat in enumerate(feats):
            # Hoist the 7 lane (kw) shifts out of the kh loop: the 7 column
            # shifted copies are reused across all kh; the inner loop only does
            # sublane-offset slices + FMAs (VALU), not cross-lane work.
            col_shift = [feat[:, kw:kw + W] for kw in range(K)]   # each (Hp, W)
            for kh in range(K):
                for kw in range(K):
                    w = ws[ci * K * K + kh * K + kw]
                    acc = acc + w * col_shift[kw][kh:kh + H, :]

        # TODO(synk): for W < 128 this store is lane-masked; a lane-dense
        # (H*W)-packed output layout would improve the store path but needs an
        # in-kernel relayout that is not worth the risk/cost at these sizes.
        o_ref[...] = jax.nn.sigmoid(acc)[None, None, :, :].astype(o_ref.dtype)


def _choose_ct(C, H, W, itemsize, budget_bytes=16 * 1024 * 1024):
    """Largest divisor of C whose double-buffered input block fits the budget."""
    lanes = ((W + 127) // 128) * 128
    sublanes = ((H + 7) // 8) * 8
    per_channel = sublanes * lanes * itemsize
    max_ct = max(1, budget_bytes // (2 * per_channel))   # 2x: double buffering
    ct = 1
    for d in range(1, C + 1):
        if C % d == 0 and d <= max_ct:
            ct = d
    return ct


def spatial_attention(x, weight, *, ct=None, vmem_limit_bytes=48 * 1024 * 1024):
    """x: (N, C, H, W); weight: (1, 2, 7, 7). Returns sigmoid(conv(cat(avg,max)))."""
    N, C, H, W = x.shape
    if ct is None:
        ct = _choose_ct(C, H, W, jnp.dtype(x.dtype).itemsize)
    assert C % ct == 0, (C, ct)
    n_cb = C // ct

    w_flat = weight.reshape(-1).astype(jnp.float32)          # (2*7*7,) = (98,)
    kernel = functools.partial(_spatial_attention_kernel, total_c=C)

    # TODO(synk): for large H add row-band spatial tiling (band + 6-row halo)
    # so the conv working set stays within a few KiB of VMEM per step.
    return pl.pallas_call(
        kernel,
        out_shape=jax.ShapeDtypeStruct((N, 1, H, W), x.dtype),
        grid_spec=pltpu.PrefetchScalarGridSpec(
            num_scalar_prefetch=0,
            grid=(N, n_cb),                                   # reduction axis last
            in_specs=[
                pl.BlockSpec(memory_space=pltpu.MemorySpace.SMEM),        # weights
                pl.BlockSpec((1, ct, H, W), lambda n, c: (n, c, 0, 0)),   # x block
            ],
            out_specs=pl.BlockSpec((1, 1, H, W), lambda n, c: (n, 0, 0, 0)),
            scratch_shapes=[pltpu.VMEM((H, W), jnp.float32),   # running sum
                            pltpu.VMEM((H, W), jnp.float32)],  # running max
        ),
        compiler_params=pltpu.CompilerParams(
            dimension_semantics=("parallel", "arbitrary"),
            vmem_limit_bytes=vmem_limit_bytes),
    )(w_flat, x)


def _reference(x, weight):
    avg = jnp.mean(x, axis=1, keepdims=True)
    mx = jnp.max(x, axis=1, keepdims=True)
    xin = jnp.concatenate([avg, mx], axis=1)
    y = jax.lax.conv_general_dilated(
        xin, weight, window_strides=(1, 1),
        padding=((PAD, PAD), (PAD, PAD)),
        dimension_numbers=("NCHW", "OIHW", "NCHW"))
    return jax.nn.sigmoid(y)


if __name__ == "__main__":
    key = jax.random.PRNGKey(0)
    kx, kw = jax.random.split(key)

    # Small shapes consistent with the module: N=2, C=4, H=W=16.
    x = jax.random.normal(kx, (2, 4, 16, 16), dtype=jnp.float32)

    # Deterministic conv weight, PyTorch default-style uniform(-1/sqrt(fan_in), +).
    fan_in = 2 * K * K
    bound = 1.0 / (fan_in ** 0.5)
    weight = jax.random.uniform(kw, (1, 2, K, K), dtype=jnp.float32,
                                minval=-bound, maxval=bound)

    ref = _reference(x, weight)

    # Default channel tile (single reduction step for C=4).
    out = jax.block_until_ready(spatial_attention(x, weight))
    assert out.shape == (2, 1, 16, 16)
    assert jnp.allclose(out, ref, atol=1e-5, rtol=1e-5), (
        float(jnp.max(jnp.abs(out - ref))))

    # Forced channel tiling (Ct=2 -> 2 reduction steps) to exercise the
    # running-sum / running-max accumulation path on hardware.
    out2 = jax.block_until_ready(spatial_attention(x, weight, ct=2))
    assert jnp.allclose(out2, ref, atol=1e-5, rtol=1e-5), (
        float(jnp.max(jnp.abs(out2 - ref))))

    print("KERNEL_OK")
</pallas_src>

<mosaic_0001>
module attributes {stable_mosaic.version = 11 : i64} {
  func.func @_spatial_attention_kernel(%arg0: i32, %arg1: i32, %arg2: memref<98xf32, #tpu.memory_space<smem>>, %arg3: memref<1x4x16x16xf32, #tpu.memory_space<vmem>>, %arg4: memref<1x1x16x16xf32, #tpu.memory_space<vmem>>, %arg5: memref<16x16xf32, #tpu.memory_space<vmem>>, %arg6: memref<16x16xf32, #tpu.memory_space<vmem>>) attributes {dimension_semantics = [#tpu.dimension_semantics<parallel>, #tpu.dimension_semantics<arbitrary>], iteration_bounds = array<i64: 2, 1>, scalar_prefetch = 0 : i64, scratch_operands = 2 : i64, tpu.core_type = #tpu.core_type<tc>, window_params = [{transform_indices = @transform_0, window_bounds = array<i64: 98>}, {transform_indices = @transform_1, window_bounds = array<i64: 1, 4, 16, 16>}, {transform_indices = @transform_2, window_bounds = array<i64: 1, 1, 16, 16>}]} {
    %c0 = arith.constant 0 : index
    %c0_0 = arith.constant 0 : index
    %c0_1 = arith.constant 0 : index
    %c0_2 = arith.constant 0 : index
    %0 = vector.load %arg3[%c0, %c0_0, %c0_1, %c0_2] : memref<1x4x16x16xf32, #tpu.memory_space<vmem>>, vector<1x4x16x16xf32>
    %1 = vector.shape_cast %0 : vector<1x4x16x16xf32> to vector<4x16x16xf32>
    %cst = arith.constant dense<0.000000e+00> : vector<16x16xf32>
    %2 = vector.multi_reduction <add>, %1, %cst [0] : vector<4x16x16xf32> to vector<16x16xf32>
    %cst_3 = arith.constant dense<0xFF800000> : vector<16x16xf32>
    %3 = vector.multi_reduction <maximumf>, %1, %cst_3 [0] : vector<4x16x16xf32> to vector<16x16xf32>
    %c0_i32 = arith.constant 0 : i32
    %4 = arith.cmpi eq, %arg1, %c0_i32 : i32
    %5 = arith.extui %4 : i1 to i32
    %c0_i32_4 = arith.constant 0 : i32
    %6 = arith.cmpi ne, %5, %c0_i32_4 : i32
    scf.if %6 {
      %c0_9 = arith.constant 0 : index
      %c0_10 = arith.constant 0 : index
      %13 = vector.load %arg5[%c0_9, %c0_10] : memref<16x16xf32, #tpu.memory_space<vmem>>, vector<16x16xf32>
      tpu.vector_store %arg5[%c0_9, %c0_10], %2 {strides = array<i32>} : memref<16x16xf32, #tpu.memory_space<vmem>>, vector<16x16xf32>,
      %c0_11 = arith.constant 0 : index
      %c0_12 = arith.constant 0 : index
      %14 = vector.load %arg6[%c0_11, %c0_12] : memref<16x16xf32, #tpu.memory_space<vmem>>, vector<16x16xf32>
      tpu.vector_store %arg6[%c0_11, %c0_12], %3 {strides = array<i32>} : memref<16x16xf32, #tpu.memory_space<vmem>>, vector<16x16xf32>,
    } else {
    }
    %c0_i32_5 = arith.constant 0 : i32
    %7 = arith.cmpi ne, %arg1, %c0_i32_5 : i32
    %8 = arith.extui %7 : i1 to i32
    %c0_i32_6 = arith.constant 0 : i32
    %9 = arith.cmpi ne, %8, %c0_i32_6 : i32
    scf.if %9 {
      %c0_9 = arith.constant 0 : index
      %c0_10 = arith.constant 0 : index
      %13 = vector.load %arg5[%c0_9, %c0_10] : memref<16x16xf32, #tpu.memory_space<vmem>>, vector<16x16xf32>
      %14 = arith.addf %13, %2 : vector<16x16xf32>
      %c0_11 = arith.constant 0 : index
      %c0_12 = arith.constant 0 : index
      %15 = vector.load %arg5[%c0_11, %c0_12] : memref<16x16xf32, #tpu.memory_space<vmem>>, vector<16x16xf32>
      tpu.vector_store %arg5[%c0_11, %c0_12], %14 {strides = array<i32>} : memref<16x16xf32, #tpu.memory_space<vmem>>, vector<16x16xf32>,
      %c0_13 = arith.constant 0 : index
      %c0_14 = arith.constant 0 : index
      %16 = vector.load %arg6[%c0_13, %c0_14] : memref<16x16xf32, #tpu.memory_space<vmem>>, vector<16x16xf32>
      %17 = arith.maximumf %16, %3 : vector<16x16xf32>
      %c0_15 = arith.constant 0 : index
      %c0_16 = arith.constant 0 : index
      %18 = vector.load %arg6[%c0_15, %c0_16] : memref<16x16xf32, #tpu.memory_space<vmem>>, vector<16x16xf32>
      tpu.vector_store %arg6[%c0_15, %c0_16], %17 {strides = array<i32>} : memref<16x16xf32, #tpu.memory_space<vmem>>, vector<16x16xf32>,
    } else {
    }
    %c0_i32_7 = arith.constant 0 : i32
    %10 = arith.cmpi eq, %arg1, %c0_i32_7 : i32
    %11 = arith.extui %10 : i1 to i32
    %c0_i32_8 = arith.constant 0 : i32
    %12 = arith.cmpi ne, %11, %c0_i32_8 : i32
    scf.if %12 {
      %c0_9 = arith.constant 0 : index
      %c0_10 = arith.constant 0 : index
      %13 = vector.load %arg5[%c0_9, %c0_10] : memref<16x16xf32, #tpu.memory_space<vmem>>, vector<16x16xf32>
      %cst_11 = arith.constant 2.500000e-01 : f32
      %14 = vector.broadcast %cst_11 : f32 to vector<16x16xf32>
      %15 = arith.mulf %13, %14 : vector<16x16xf32>
      %c0_12 = arith.constant 0 : index
      %c0_13 = arith.constant 0 : index
      %16 = vector.load %arg6[%c0_12, %c0_13] : memref<16x16xf32, #tpu.memory_space<vmem>>, vector<16x16xf32>
      %cst_14 = arith.constant 0.000000e+00 : f32
      %17 = vector.broadcast %cst_14 : f32 to vector<3x16xf32>
      %cst_15 = arith.constant 0.000000e+00 : f32
      %18 = vector.broadcast %cst_15 : f32 to vector<22x3xf32>
      %19 = tpu.concatenate %17, %15, %17 in 0 : vector<3x16xf32>, vector<16x16xf32>, vector<3x16xf32> -> vector<22x16xf32>
      %20 = tpu.concatenate %18, %19, %18 in 1 : vector<22x3xf32>, vector<22x16xf32>, vector<22x3xf32> -> vector<22x22xf32>
      %21 = tpu.concatenate %17, %16, %17 in 0 : vector<3x16xf32>, vector<16x16xf32>, vector<3x16xf32> -> vector<22x16xf32>
      %22 = tpu.concatenate %18, %21, %18 in 1 : vector<22x3xf32>, vector<22x16xf32>, vector<22x3xf32> -> vector<22x22xf32>
      %c0_16 = arith.constant 0 : index
      %23 = memref.load %arg2[%c0_16] : memref<98xf32, #tpu.memory_space<smem>>
      %c1 = arith.constant 1 : index
      %24 = memref.load %arg2[%c1] : memref<98xf32, #tpu.memory_space<smem>>
      %c2 = arith.constant 2 : index
      %25 = memref.load %arg2[%c2] : memref<98xf32, #tpu.memory_space<smem>>
      %c3 = arith.constant 3 : index
      %26 = memref.load %arg2[%c3] : memref<98xf32, #tpu.memory_space<smem>>
      %c4 = arith.constant 4 : index
      %27 = memref.load %arg2[%c4] : memref<98xf32, #tpu.memory_space<smem>>
      %c5 = arith.constant 5 : index
      %28 = memref.load %arg2[%c5] : memref<98xf32, #tpu.memory_space<smem>>
      %c6 = arith.constant 6 : index
      %29 = memref.load %arg2[%c6] : memref<98xf32, #tpu.memory_space<smem>>
      %c7 = arith.constant 7 : index
      %30 = memref.load %arg2[%c7] : memref<98xf32, #tpu.memory_space<smem>>
      %c8 = arith.constant 8 : index
      %31 = memref.load %arg2[%c8] : memref<98xf32, #tpu.memory_space<smem>>
      %c9 = arith.constant 9 : index
      %32 = memref.load %arg2[%c9] : memref<98xf32, #tpu.memory_space<smem>>
      %c10 = arith.constant 10 : index
      %33 = memref.load %arg2[%c10] : memref<98xf32, #tpu.memory_space<smem>>
      %c11 = arith.constant 11 : index
      %34 = memref.load %arg2[%c11] : memref<98xf32, #tpu.memory_space<smem>>
      %c12 = arith.constant 12 : index
      %35 = memref.load %arg2[%c12] : memref<98xf32, #tpu.memory_space<smem>>
      %c13 = arith.constant 13 : index
      %36 = memref.load %arg2[%c13] : memref<98xf32, #tpu.memory_space<smem>>
      %c14 = arith.constant 14 : index
      %37 = memref.load %arg2[%c14] : memref<98xf32, #tpu.memory_space<smem>>
      %c15 = arith.constant 15 : index
      %38 = memref.load %arg2[%c15] : memref<98xf32, #tpu.memory_space<smem>>
      %c16 = arith.constant 16 : index
      %39 = memref.load %arg2[%c16] : memref<98xf32, #tpu.memory_space<smem>>
      %c17 = arith.constant 17 : index
      %40 = memref.load %arg2[%c17] : memref<98xf32, #tpu.memory_space<smem>>
      %c18 = arith.constant 18 : index
      %41 = memref.load %arg2[%c18] : memref<98xf32, #tpu.memory_space<smem>>
      %c19 = arith.constant 19 : index
      %42 = memref.load %arg2[%c19] : memref<98xf32, #tpu.memory_space<smem>>
      %c20 = arith.constant 20 : index
      %43 = memref.load %arg2[%c20] : memref<98xf32, #tpu.memory_space<smem>>
      %c21 = arith.constant 21 : index
      %44 = memref.load %arg2[%c21] : memref<98xf32, #tpu.memory_space<smem>>
      %c22 = arith.constant 22 : index
      %45 = memref.load %arg2[%c22] : memref<98xf32, #tpu.memory_space<smem>>
      %c23 = arith.constant 23 : index
      %46 = memref.load %arg2[%c23] : memref<98xf32, #tpu.memory_space<smem>>
      %c24 = arith.constant 24 : index
      %47 = memref.load %arg2[%c24] : memref<98xf32, #tpu.memory_space<smem>>
      %c25 = arith.constant 25 : index
      %48 = memref.load %arg2[%c25] : memref<98xf32, #tpu.memory_space<smem>>
      %c26 = arith.constant 26 : index
      %49 = memref.load %arg2[%c26] : memref<98xf32, #tpu.memory_space<smem>>
      %c27 = arith.constant 27 : index
      %50 = memref.load %arg2[%c27] : memref<98xf32, #tpu.memory_space<smem>>
      %c28 = arith.constant 28 : index
      %51 = memref.load %arg2[%c28] : memref<98xf32, #tpu.memory_space<smem>>
      %c29 = arith.constant 29 : index
      %52 = memref.load %arg2[%c29] : memref<98xf32, #tpu.memory_space<smem>>
      %c30 = arith.constant 30 : index
      %53 = memref.load %arg2[%c30] : memref<98xf32, #tpu.memory_space<smem>>
      %c31 = arith.constant 31 : index
      %54 = memref.load %arg2[%c31] : memref<98xf32, #tpu.memory_space<smem>>
      %c32 = arith.constant 32 : index
      %55 = memref.load %arg2[%c32] : memref<98xf32, #tpu.memory_space<smem>>
      %c33 = arith.constant 33 : index
      %56 = memref.load %arg2[%c33] : memref<98xf32, #tpu.memory_space<smem>>
      %c34 = arith.constant 34 : index
      %57 = memref.load %arg2[%c34] : memref<98xf32, #tpu.memory_space<smem>>
      %c35 = arith.constant 35 : index
      %58 = memref.load %arg2[%c35] : memref<98xf32, #tpu.memory_space<smem>>
      %c36 = arith.constant 36 : index
      %59 = memref.load %arg2[%c36] : memref<98xf32, #tpu.memory_space<smem>>
      %c37 = arith.constant 37 : index
      %60 = memref.load %arg2[%c37] : memref<98xf32, #tpu.memory_space<smem>>
      %c38 = arith.constant 38 : index
      %61 = memref.load %arg2[%c38] : memref<98xf32, #tpu.memory_space<smem>>
      %c39 = arith.constant 39 : index
      %62 = memref.load %arg2[%c39] : memref<98xf32, #tpu.memory_space<smem>>
      %c40 = arith.constant 40 : index
      %63 = memref.load %arg2[%c40] : memref<98xf32, #tpu.memory_space<smem>>
      %c41 = arith.constant 41 : index
      %64 = memref.load %arg2[%c41] : memref<98xf32, #tpu.memory_space<smem>>
      %c42 = arith.constant 42 : index
      %65 = memref.load %arg2[%c42] : memref<98xf32, #tpu.memory_space<smem>>
      %c43 = arith.constant 43 : index
      %66 = memref.load %arg2[%c43] : memref<98xf32, #tpu.memory_space<smem>>
      %c44 = arith.constant 44 : index
      %67 = memref.load %arg2[%c44] : memref<98xf32, #tpu.memory_space<smem>>
      %c45 = arith.constant 45 : index
      %68 = memref.load %arg2[%c45] : memref<98xf32, #tpu.memory_space<smem>>
      %c46 = arith.constant 46 : index
      %69 = memref.load %arg2[%c46] : memref<98xf32, #tpu.memory_space<smem>>
      %c47 = arith.constant 47 : index
      %70 = memref.load %arg2[%c47] : memref<98xf32, #tpu.memory_space<smem>>
      %c48 = arith.constant 48 : index
      %71 = memref.load %arg2[%c48] : memref<98xf32, #tpu.memory_space<smem>>
      %c49 = arith.constant 49 : index
      %72 = memref.load %arg2[%c49] : memref<98xf32, #tpu.memory_space<smem>>
      %c50 = arith.constant 50 : index
      %73 = memref.load %arg2[%c50] : memref<98xf32, #tpu.memory_space<smem>>
      %c51 = arith.constant 51 : index
      %74 = memref.load %arg2[%c51] : memref<98xf32, #tpu.memory_space<smem>>
      %c52 = arith.constant 52 : index
      %75 = memref.load %arg2[%c52] : memref<98xf32, #tpu.memory_space<smem>>
      %c53 = arith.constant 53 : index
      %76 = memref.load %arg2[%c53] : memref<98xf32, #tpu.memory_space<smem>>
      %c54 = arith.constant 54 : index
      %77 = memref.load %arg2[%c54] : memref<98xf32, #tpu.memory_space<smem>>
      %c55 = arith.constant 55 : index
      %78 = memref.load %arg2[%c55] : memref<98xf32, #tpu.memory_space<smem>>
      %c56 = arith.constant 56 : index
      %79 = memref.load %arg2[%c56] : memref<98xf32, #tpu.memory_space<smem>>
      %c57 = arith.constant 57 : index
      %80 = memref.load %arg2[%c57] : memref<98xf32, #tpu.memory_space<smem>>
      %c58 = arith.constant 58 : index
      %81 = memref.load %arg2[%c58] : memref<98xf32, #tpu.memory_space<smem>>
      %c59 = arith.constant 59 : index
      %82 = memref.load %arg2[%c59] : memref<98xf32, #tpu.memory_space<smem>>
      %c60 = arith.constant 60 : index
      %83 = memref.load %arg2[%c60] : memref<98xf32, #tpu.memory_space<smem>>
      %c61 = arith.constant 61 : index
      %84 = memref.load %arg2[%c61] : memref<98xf32, #tpu.memory_space<smem>>
      %c62 = arith.constant 62 : index
      %85 = memref.load %arg2[%c62] : memref<98xf32, #tpu.memory_space<smem>>
      %c63 = arith.constant 63 : index
      %86 = memref.load %arg2[%c63] : memref<98xf32, #tpu.memory_space<smem>>
      %c64 = arith.constant 64 : index
      %87 = memref.load %arg2[%c64] : memref<98xf32, #tpu.memory_space<smem>>
      %c65 = arith.constant 65 : index
      %88 = memref.load %arg2[%c65] : memref<98xf32, #tpu.memory_space<smem>>
      %c66 = arith.constant 66 : index
      %89 = memref.load %arg2[%c66] : memref<98xf32, #tpu.memory_space<smem>>
      %c67 = arith.constant 67 : index
      %90 = memref.load %arg2[%c67] : memref<98xf32, #tpu.memory_space<smem>>
      %c68 = arith.constant 68 : index
      %91 = memref.load %arg2[%c68] : memref<98xf32, #tpu.memory_space<smem>>
      %c69 = arith.constant 69 : index
      %92 = memref.load %arg2[%c69] : memref<98xf32, #tpu.memory_space<smem>>
      %c70 = arith.constant 70 : index
      %93 = memref.load %arg2[%c70] : memref<98xf32, #tpu.memory_space<smem>>
      %c71 = arith.constant 71 : index
      %94 = memref.load %arg2[%c71] : memref<98xf32, #tpu.memory_space<smem>>
      %c72 = arith.constant 72 : index
      %95 = memref.load %arg2[%c72] : memref<98xf32, #tpu.memory_space<smem>>
      %c73 = arith.constant 73 : index
      %96 = memref.load %arg2[%c73] : memref<98xf32, #tpu.memory_space<smem>>
      %c74 = arith.constant 74 : index
      %97 = memref.load %arg2[%c74] : memref<98xf32, #tpu.memory_space<smem>>
      %c75 = arith.constant 75 : index
      %98 = memref.load %arg2[%c75] : memref<98xf32, #tpu.memory_space<smem>>
      %c76 = arith.constant 76 : index
      %99 = memref.load %arg2[%c76] : memref<98xf32, #tpu.memory_space<smem>>
      %c77 = arith.constant 77 : index
      %100 = memref.load %arg2[%c77] : memref<98xf32, #tpu.memory_space<smem>>
      %c78 = arith.constant 78 : index
      %101 = memref.load %arg2[%c78] : memref<98xf32, #tpu.memory_space<smem>>
      %c79 = arith.constant 79 : index
      %102 = memref.load %arg2[%c79] : memref<98xf32, #tpu.memory_space<smem>>
      %c80 = arith.constant 80 : index
      %103 = memref.load %arg2[%c80] : memref<98xf32, #tpu.memory_space<smem>>
      %c81 = arith.constant 81 : index
      %104 = memref.load %arg2[%c81] : memref<98xf32, #tpu.memory_space<smem>>
      %c82 = arith.constant 82 : index
      %105 = memref.load %arg2[%c82] : memref<98xf32, #tpu.memory_space<smem>>
      %c83 = arith.constant 83 : index
      %106 = memref.load %arg2[%c83] : memref<98xf32, #tpu.memory_space<smem>>
      %c84 = arith.constant 84 : index
      %107 = memref.load %arg2[%c84] : memref<98xf32, #tpu.memory_space<smem>>
      %c85 = arith.constant 85 : index
      %108 = memref.load %arg2[%c85] : memref<98xf32, #tpu.memory_space<smem>>
      %c86 = arith.constant 86 : index
      %109 = memref.load %arg2[%c86] : memref<98xf32, #tpu.memory_space<smem>>
      %c87 = arith.constant 87 : index
      %110 = memref.load %arg2[%c87] : memref<98xf32, #tpu.memory_space<smem>>
      %c88 = arith.constant 88 : index
      %111 = memref.load %arg2[%c88] : memref<98xf32, #tpu.memory_space<smem>>
      %c89 = arith.constant 89 : index
      %112 = memref.load %arg2[%c89] : memref<98xf32, #tpu.memory_space<smem>>
      %c90 = arith.constant 90 : index
      %113 = memref.load %arg2[%c90] : memref<98xf32, #tpu.memory_space<smem>>
      %c91 = arith.constant 91 : index
      %114 = memref.load %arg2[%c91] : memref<98xf32, #tpu.memory_space<smem>>
      %c92 = arith.constant 92 : index
      %115 = memref.load %arg2[%c92] : memref<98xf32, #tpu.memory_space<smem>>
      %c93 = arith.constant 93 : index
      %116 = memref.load %arg2[%c93] : memref<98xf32, #tpu.memory_space<smem>>
      %c94 = arith.constant 94 : index
      %117 = memref.load %arg2[%c94] : memref<98xf32, #tpu.memory_space<smem>>
      %c95 = arith.constant 95 : index
      %118 = memref.load %arg2[%c95] : memref<98xf32, #tpu.memory_space<smem>>
      %c96 = arith.constant 96 : index
      %119 = memref.load %arg2[%c96] : memref<98xf32, #tpu.memory_space<smem>>
      %c97 = arith.constant 97 : index
      %120 = memref.load %arg2[%c97] : memref<98xf32, #tpu.memory_space<smem>>
      %cst_17 = arith.constant 0.000000e+00 : f32
      %121 = vector.broadcast %cst_17 : f32 to vector<16x16xf32>
      %122 = vector.extract_strided_slice %20 {offsets = [0, 0], sizes = [22, 16], strides = [1, 1]} : vector<22x22xf32> to vector<22x16xf32>
      %123 = vector.extract_strided_slice %20 {offsets = [0, 1], sizes = [22, 16], strides = [1, 1]} : vector<22x22xf32> to vector<22x16xf32>
      %124 = vector.extract_strided_slice %20 {offsets = [0, 2], sizes = [22, 16], strides = [1, 1]} : vector<22x22xf32> to vector<22x16xf32>
      %125 = vector.extract_strided_slice %20 {offsets = [0, 3], sizes = [22, 16], strides = [1, 1]} : vector<22x22xf32> to vector<22x16xf32>
      %126 = vector.extract_strided_slice %20 {offsets = [0, 4], sizes = [22, 16], strides = [1, 1]} : vector<22x22xf32> to vector<22x16xf32>
      %127 = vector.extract_strided_slice %20 {offsets = [0, 5], sizes = [22, 16], strides = [1, 1]} : vector<22x22xf32> to vector<22x16xf32>
      %128 = vector.extract_strided_slice %20 {offsets = [0, 6], sizes = [22, 16], strides = [1, 1]} : vector<22x22xf32> to vector<22x16xf32>
      %129 = vector.extract_strided_slice %122 {offsets = [0, 0], sizes = [16, 16], strides = [1, 1]} : vector<22x16xf32> to vector<16x16xf32>
      %130 = vector.broadcast %23 : f32 to vector<16x16xf32>
      %131 = arith.mulf %130, %129 : vector<16x16xf32>
      %132 = arith.addf %121, %131 : vector<16x16xf32>
      %133 = vector.extract_strided_slice %123 {offsets = [0, 0], sizes = [16, 16], strides = [1, 1]} : vector<22x16xf32> to vector<16x16xf32>
      %134 = vector.broadcast %24 : f32 to vector<16x16xf32>
      %135 = arith.mulf %134, %133 : vector<16x16xf32>
      %136 = arith.addf %132, %135 : vector<16x16xf32>
      %137 = vector.extract_strided_slice %124 {offsets = [0, 0], sizes = [16, 16], strides = [1, 1]} : vector<22x16xf32> to vector<16x16xf32>
      %138 = vector.broadcast %25 : f32 to vector<16x16xf32>
      %139 = arith.mulf %138, %137 : vector<16x16xf32>
      %140 = arith.addf %136, %139 : vector<16x16xf32>
      %141 = vector.extract_strided_slice %125 {offsets = [0, 0], sizes = [16, 16], strides = [1, 1]} : vector<22x16xf32> to vector<16x16xf32>
      %142 = vector.broadcast %26 : f32 to vector<16x16xf32>
      %143 = arith.mulf %142, %141 : vector<16x16xf32>
      %144 = arith.addf %140, %143 : vector<16x16xf32>
      %145 = vector.extract_strided_slice %126 {offsets = [0, 0], sizes = [16, 16], strides = [1, 1]} : vector<22x16xf32> to vector<16x16xf32>
      %146 = vector.broadcast %27 : f32 to vector<16x16xf32>
      %147 = arith.mulf %146, %145 : vector<16x16xf32>
      %148 = arith.addf %144, %147 : vector<16x16xf32>
      %149 = vector.extract_strided_slice %127 {offsets = [0, 0], sizes = [16, 16], strides = [1, 1]} : vector<22x16xf32> to vector<16x16xf32>
      %150 = vector.broadcast %28 : f32 to vector<16x16xf32>
      %151 = arith.mulf %150, %149 : vector<16x16xf32>
      %152 = arith.addf %148, %151 : vector<16x16xf32>
      %153 = vector.extract_strided_slice %128 {offsets = [0, 0], sizes = [16, 16], strides = [1, 1]} : vector<22x16xf32> to vector<16x16xf32>
      %154 = vector.broadcast %29 : f32 to vector<16x16xf32>
      %155 = arith.mulf %154, %153 : vector<16x16xf32>
      %156 = arith.addf %152, %155 : vector<16x16xf32>
      %157 = vector.extract_strided_slice %122 {offsets = [1, 0], sizes = [16, 16], strides = [1, 1]} : vector<22x16xf32> to vector<16x16xf32>
      %158 = vector.broadcast %30 : f32 to vector<16x16xf32>
      %159 = arith.mulf %158, %157 : vector<16x16xf32>
      %160 = arith.addf %156, %159 : vector<16x16xf32>
      %161 = vector.extract_strided_slice %123 {offsets = [1, 0], sizes = [16, 16], strides = [1, 1]} : vector<22x16xf32> to vector<16x16xf32>
      %162 = vector.broadcast %31 : f32 to vector<16x16xf32>
      %163 = arith.mulf %162, %161 : vector<16x16xf32>
      %164 = arith.addf %160, %163 : vector<16x16xf32>
      %165 = vector.extract_strided_slice %124 {offsets = [1, 0], sizes = [16, 16], strides = [1, 1]} : vector<22x16xf32> to vector<16x16xf32>
      %166 = vector.broadcast %32 : f32 to vector<16x16xf32>
      %167 = arith.mulf %166, %165 : vector<16x16xf32>
      %168 = arith.addf %164, %167 : vector<16x16xf32>
      %169 = vector.extract_strided_slice %125 {offsets = [1, 0], sizes = [16, 16], strides = [1, 1]} : vector<22x16xf32> to vector<16x16xf32>
      %170 = vector.broadcast %33 : f32 to vector<16x16xf32>
      %171 = arith.mulf %170, %169 : vector<16x16xf32>
      %172 = arith.addf %168, %171 : vector<16x16xf32>
      %173 = vector.extract_strided_slice %126 {offsets = [1, 0], sizes = [16, 16], strides = [1, 1]} : vector<22x16xf32> to vector<16x16xf32>
      %174 = vector.broadcast %34 : f32 to vector<16x16xf32>
      %175 = arith.mulf %174, %173 : vector<16x16xf32>
      %176 = arith.addf %172, %175 : vector<16x16xf32>
      %177 = vector.extract_strided_slice %127 {offsets = [1, 0], sizes = [16, 16], strides = [1, 1]} : vector<22x16xf32> to vector<16x16xf32>
      %178 = vector.broadcast %35 : f32 to vector<16x16xf32>
      %179 = arith.mulf %178, %177 : vector<16x16xf32>
      %180 = arith.addf %176, %179 : vector<16x16xf32>
      %181 = vector.extract_strided_slice %128 {offsets = [1, 0], sizes = [16, 16], strides = [1, 1]} : vector<22x16xf32> to vector<16x16xf32>
      %182 = vector.broadcast %36 : f32 to vector<16x16xf32>
      %183 = arith.mulf %182, %181 : vector<16x16xf32>
      %184 = arith.addf %180, %183 : vector<16x16xf32>
      %185 = vector.extract_strided_slice %122 {offsets = [2, 0], sizes = [16, 16], strides = [1, 1]} : vector<22x16xf32> to vector<16x16xf32>
      %186 = vector.broadcast %37 : f32 to vector<16x16xf32>
      %187 = arith.mulf %186, %185 : vector<16x16xf32>
      %188 = arith.addf %184, %187 : vector<16x16xf32>
      %189 = vector.extract_strided_slice %123 {offsets = [2, 0], sizes = [16, 16], strides = [1, 1]} : vector<22x16xf32> to vector<16x16xf32>
      %190 = vector.broadcast %38 : f32 to vector<16x16xf32>
      %191 = arith.mulf %190, %189 : vector<16x16xf32>
      %192 = arith.addf %188, %191 : vector<16x16xf32>
      %193 = vector.extract_strided_slice %124 {offsets = [2, 0], sizes = [16, 16], strides = [1, 1]} : vector<22x16xf32> to vector<16x16xf32>
      %194 = vector.broadcast %39 : f32 to vector<16x16xf32>
      %195 = arith.mulf %194, %193 : vector<16x16xf32>
      %196 = arith.addf %192, %195 : vector<16x16xf32>
      %197 = vector.extract_strided_slice %125 {offsets = [2, 0], sizes = [16, 16], strides = [1, 1]} : vector<22x16xf32> to vector<16x16xf32>
      %198 = vector.broadcast %40 : f32 to vector<16x16xf32>
      %199 = arith.mulf %198, %197 : vector<16x16xf32>
      %200 = arith.addf %196, %199 : vector<16x16xf32>
      %201 = vector.extract_strided_slice %126 {offsets = [2, 0], sizes = [16, 16], strides = [1, 1]} : vector<22x16xf32> to vector<16x16xf32>
      %202 = vector.broadcast %41 : f32 to vector<16x16xf32>
      %203 = arith.mulf %202, %201 : vector<16x16xf32>
      %204 = arith.addf %200, %203 : vector<16x16xf32>
      %205 = vector.extract_strided_slice %127 {offsets = [2, 0], sizes = [16, 16], strides = [1, 1]} : vector<22x16xf32> to vector<16x16xf32>
      %206 = vector.broadcast %42 : f32 to vector<16x16xf32>
      %207 = arith.mulf %206, %205 : vector<16x16xf32>
      %208 = arith.addf %204, %207 : vector<16x16xf32>
      %209 = vector.extract_strided_slice %128 {offsets = [2, 0], sizes = [16, 16], strides = [1, 1]} : vector<22x16xf32> to vector<16x16xf32>
      %210 = vector.broadcast %43 : f32 to vector<16x16xf32>
      %211 = arith.mulf %210, %209 : vector<16x16xf32>
      %212 = arith.addf %208, %211 : vector<16x16xf32>
      %213 = vector.extract_strided_slice %122 {offsets = [3, 0], sizes = [16, 16], strides = [1, 1]} : vector<22x16xf32> to vector<16x16xf32>
      %214 = vector.broadcast %44 : f32 to vector<16x16xf32>
      %215 = arith.mulf %214, %213 : vector<16x16xf32>
      %216 = arith.addf %212, %215 : vector<16x16xf32>
      %217 = vector.extract_strided_slice %123 {offsets = [3, 0], sizes = [16, 16], strides = [1, 1]} : vector<22x16xf32> to vector<16x16xf32>
      %218 = vector.broadcast %45 : f32 to vector<16x16xf32>
      %219 = arith.mulf %218, %217 : vector<16x16xf32>
      %220 = arith.addf %216, %219 : vector<16x16xf32>
      %221 = vector.extract_strided_slice %124 {offsets = [3, 0], sizes = [16, 16], strides = [1, 1]} : vector<22x16xf32> to vector<16x16xf32>
      %222 = vector.broadcast %46 : f32 to vector<16x16xf32>
      %223 = arith.mulf %222, %221 : vector<16x16xf32>
      %224 = arith.addf %220, %223 : vector<16x16xf32>
      %225 = vector.extract_strided_slice %125 {offsets = [3, 0], sizes = [16, 16], strides = [1, 1]} : vector<22x16xf32> to vector<16x16xf32>
      %226 = vector.broadcast %47 : f32 to vector<16x16xf32>
      %227 = arith.mulf %226, %225 : vector<16x16xf32>
      %228 = arith.addf %224, %227 : vector<16x16xf32>
      %229 = vector.extract_strided_slice %126 {offsets = [3, 0], sizes = [16, 16], strides = [1, 1]} : vector<22x16xf32> to vector<16x16xf32>
      %230 = vector.broadcast %48 : f32 to vector<16x16xf32>
      %231 = arith.mulf %230, %229 : vector<16x16xf32>
      %232 = arith.addf %228, %231 : vector<16x16xf32>
      %233 = vector.extract_strided_slice %127 {offsets = [3, 0], sizes = [16, 16], strides = [1, 1]} : vector<22x16xf32> to vector<16x16xf32>
      %234 = vector.broadcast %49 : f32 to vector<16x16xf32>
      %235 = arith.mulf %234, %233 : vector<16x16xf32>
      %236 = arith.addf %232, %235 : vector<16x16xf32>
      %237 = vector.extract_strided_slice %128 {offsets = [3, 0], sizes = [16, 16], strides = [1, 1]} : vector<22x16xf32> to vector<16x16xf32>
      %238 = vector.broadcast %50 : f32 to vector<16x16xf32>
      %239 = arith.mulf %238, %237 : vector<16x16xf32>
      %240 = arith.addf %236, %239 : vector<16x16xf32>
      %241 = vector.extract_strided_slice %122 {offsets = [4, 0], sizes = [16, 16], strides = [1, 1]} : vector<22x16xf32> to vector<16x16xf32>
      %242 = vector.broadcast %51 : f32 to vector<16x16xf32>
      %243 = arith.mulf %242, %241 : vector<16x16xf32>
      %244 = arith.addf %240, %243 : vector<16x16xf32>
      %245 = vector.extract_strided_slice %123 {offsets = [4, 0], sizes = [16, 16], strides = [1, 1]} : vector<22x16xf32> to vector<16x16xf32>
      %246 = vector.broadcast %52 : f32 to vector<16x16xf32>
      %247 = arith.mulf %246, %245 : vector<16x16xf32>
      %248 = arith.addf %244, %247 : vector<16x16xf32>
      %249 = vector.extract_strided_slice %124 {offsets = [4, 0], sizes = [16, 16], strides = [1, 1]} : vector<22x16xf32> to vector<16x16xf32>
      %250 = vector.broadcast %53 : f32 to vector<16x16xf32>
      %251 = arith.mulf %250, %249 : vector<16x16xf32>
      %252 = arith.addf %248, %251 : vector<16x16xf32>
      %253 = vector.extract_strided_slice %125 {offsets = [4, 0], sizes = [16, 16], strides = [1, 1]} : vector<22x16xf32> to vector<16x16xf32>
      %254 = vector.broadcast %54 : f32 to vector<16x16xf32>
      %255 = arith.mulf %254, %253 : vector<16x16xf32>
      %256 = arith.addf %252, %255 : vector<16x16xf32>
      %257 = vector.extract_strided_slice %126 {offsets = [4, 0], sizes = [16, 16], strides = [1, 1]} : vector<22x16xf32> to vector<16x16xf32>
      %258 = vector.broadcast %55 : f32 to vector<16x16xf32>
      %259 = arith.mulf %258, %257 : vector<16x16xf32>
      %260 = arith.addf %256, %259 : vector<16x16xf32>
      %261 = vector.extract_strided_slice %127 {offsets = [4, 0], sizes = [16, 16], strides = [1, 1]} : vector<22x16xf32> to vector<16x16xf32>
      %262 = vector.broadcast %56 : f32 to vector<16x16xf32>
      %263 = arith.mulf %262, %261 : vector<16x16xf32>
      %264 = arith.addf %260, %263 : vector<16x16xf32>
      %265 = vector.extract_strided_slice %128 {offsets = [4, 0], sizes = [16, 16], strides = [1, 1]} : vector<22x16xf32> to vector<16x16xf32>
      %266 = vector.broadcast %57 : f32 to vector<16x16xf32>
      %267 = arith.mulf %266, %265 : vector<16x16xf32>
      %268 = arith.addf %264, %267 : vector<16x16xf32>
      %269 = vector.extract_strided_slice %122 {offsets = [5, 0], sizes = [16, 16], strides = [1, 1]} : vector<22x16xf32> to vector<16x16xf32>
      %270 = vector.broadcast %58 : f32 to vector<16x16xf32>
      %271 = arith.mulf %270, %269 : vector<16x16xf32>
      %272 = arith.addf %268, %271 : vector<16x16xf32>
      %273 = vector.extract_strided_slice %123 {offsets = [5, 0], sizes = [16, 16], strides = [1, 1]} : vector<22x16xf32> to vector<16x16xf32>
      %274 = vector.broadcast %59 : f32 to vector<16x16xf32>
      %275 = arith.mulf %274, %273 : vector<16x16xf32>
      %276 = arith.addf %272, %275 : vector<16x16xf32>
      %277 = vector.extract_strided_slice %124 {offsets = [5, 0], sizes = [16, 16], strides = [1, 1]} : vector<22x16xf32> to vector<16x16xf32>
      %278 = vector.broadcast %60 : f32 to vector<16x16xf32>
      %279 = arith.mulf %278, %277 : vector<16x16xf32>
      %280 = arith.addf %276, %279 : vector<16x16xf32>
      %281 = vector.extract_strided_slice %125 {offsets = [5, 0], sizes = [16, 16], strides = [1, 1]} : vector<22x16xf32> to vector<16x16xf32>
      %282 = vector.broadcast %61 : f32 to vector<16x16xf32>
      %283 = arith.mulf %282, %281 : vector<16x16xf32>
      %284 = arith.addf %280, %283 : vector<16x16xf32>
      %285 = vector.extract_strided_slice %126 {offsets = [5, 0], sizes = [16, 16], strides = [1, 1]} : vector<22x16xf32> to vector<16x16xf32>
      %286 = vector.broadcast %62 : f32 to vector<16x16xf32>
      %287 = arith.mulf %286, %285 : vector<16x16xf32>
      %288 = arith.addf %284, %287 : vector<16x16xf32>
      %289 = vector.extract_strided_slice %127 {offsets = [5, 0], sizes = [16, 16], strides = [1, 1]} : vector<22x16xf32> to vector<16x16xf32>
      %290 = vector.broadcast %63 : f32 to vector<16x16xf32>
      %291 = arith.mulf %290, %289 : vector<16x16xf32>
      %292 = arith.addf %288, %291 : vector<16x16xf32>
      %293 = vector.extract_strided_slice %128 {offsets = [5, 0], sizes = [16, 16], strides = [1, 1]} : vector<22x16xf32> to vector<16x16xf32>
      %294 = vector.broadcast %64 : f32 to vector<16x16xf32>
      %295 = arith.mulf %294, %293 : vector<16x16xf32>
      %296 = arith.addf %292, %295 : vector<16x16xf32>
      %297 = vector.extract_strided_slice %122 {offsets = [6, 0], sizes = [16, 16], strides = [1, 1]} : vector<22x16xf32> to vector<16x16xf32>
      %298 = vector.broadcast %65 : f32 to vector<16x16xf32>
      %299 = arith.mulf %298, %297 : vector<16x16xf32>
      %300 = arith.addf %296, %299 : vector<16x16xf32>
      %301 = vector.extract_strided_slice %123 {offsets = [6, 0], sizes = [16, 16], strides = [1, 1]} : vector<22x16xf32> to vector<16x16xf32>
      %302 = vector.broadcast %66 : f32 to vector<16x16xf32>
      %303 = arith.mulf %302, %301 : vector<16x16xf32>
      %304 = arith.addf %300, %303 : vector<16x16xf32>
      %305 = vector.extract_strided_slice %124 {offsets = [6, 0], sizes = [16, 16], strides = [1, 1]} : vector<22x16xf32> to vector<16x16xf32>
      %306 = vector.broadcast %67 : f32 to vector<16x16xf32>
      %307 = arith.mulf %306, %305 : vector<16x16xf32>
      %308 = arith.addf %304, %307 : vector<16x16xf32>
      %309 = vector.extract_strided_slice %125 {offsets = [6, 0], sizes = [16, 16], strides = [1, 1]} : vector<22x16xf32> to vector<16x16xf32>
      %310 = vector.broadcast %68 : f32 to vector<16x16xf32>
      %311 = arith.mulf %310, %309 : vector<16x16xf32>
      %312 = arith.addf %308, %311 : vector<16x16xf32>
      %313 = vector.extract_strided_slice %126 {offsets = [6, 0], sizes = [16, 16], strides = [1, 1]} : vector<22x16xf32> to vector<16x16xf32>
      %314 = vector.broadcast %69 : f32 to vector<16x16xf32>
      %315 = arith.mulf %314, %313 : vector<16x16xf32>
      %316 = arith.addf %312, %315 : vector<16x16xf32>
      %317 = vector.extract_strided_slice %127 {offsets = [6, 0], sizes = [16, 16], strides = [1, 1]} : vector<22x16xf32> to vector<16x16xf32>
      %318 = vector.broadcast %70 : f32 to vector<16x16xf32>
      %319 = arith.mulf %318, %317 : vector<16x16xf32>
      %320 = arith.addf %316, %319 : vector<16x16xf32>
      %321 = vector.extract_strided_slice %128 {offsets = [6, 0], sizes = [16, 16], strides = [1, 1]} : vector<22x16xf32> to vector<16x16xf32>
      %322 = vector.broadcast %71 : f32 to vector<16x16xf32>
      %323 = arith.mulf %322, %321 : vector<16x16xf32>
      %324 = arith.addf %320, %323 : vector<16x16xf32>
      %325 = vector.extract_strided_slice %22 {offsets = [0, 0], sizes = [22, 16], strides = [1, 1]} : vector<22x22xf32> to vector<22x16xf32>
      %326 = vector.extract_strided_slice %22 {offsets = [0, 1], sizes = [22, 16], strides = [1, 1]} : vector<22x22xf32> to vector<22x16xf32>
      %327 = vector.extract_strided_slice %22 {offsets = [0, 2], sizes = [22, 16], strides = [1, 1]} : vector<22x22xf32> to vector<22x16xf32>
      %328 = vector.extract_strided_slice %22 {offsets = [0, 3], sizes = [22, 16], strides = [1, 1]} : vector<22x22xf32> to vector<22x16xf32>
      %329 = vector.extract_strided_slice %22 {offsets = [0, 4], sizes = [22, 16], strides = [1, 1]} : vector<22x22xf32> to vector<22x16xf32>
      %330 = vector.extract_strided_slice %22 {offsets = [0, 5], sizes = [22, 16], strides = [1, 1]} : vector<22x22xf32> to vector<22x16xf32>
      %331 = vector.extract_strided_slice %22 {offsets = [0, 6], sizes = [22, 16], strides = [1, 1]} : vector<22x22xf32> to vector<22x16xf32>
      %332 = vector.extract_strided_slice %325 {offsets = [0, 0], sizes = [16, 16], strides = [1, 1]} : vector<22x16xf32> to vector<16x16xf32>
      %333 = vector.broadcast %72 : f32 to vector<16x16xf32>
      %334 = arith.mulf %333, %332 : vector<16x16xf32>
      %335 = arith.addf %324, %334 : vector<16x16xf32>
      %336 = vector.extract_strided_slice %326 {offsets = [0, 0], sizes = [16, 16], strides = [1, 1]} : vector<22x16xf32> to vector<16x16xf32>
      %337 = vector.broadcast %73 : f32 to vector<16x16xf32>
      %338 = arith.mulf %337, %336 : vector<16x16xf32>
      %339 = arith.addf %335, %338 : vector<16x16xf32>
      %340 = vector.extract_strided_slice %327 {offsets = [0, 0], sizes = [16, 16], strides = [1, 1]} : vector<22x16xf32> to vector<16x16xf32>
      %341 = vector.broadcast %74 : f32 to vector<16x16xf32>
      %342 = arith.mulf %341, %340 : vector<16x16xf32>
      %343 = arith.addf %339, %342 : vector<16x16xf32>
      %344 = vector.extract_strided_slice %328 {offsets = [0, 0], sizes = [16, 16], strides = [1, 1]} : vector<22x16xf32> to vector<16x16xf32>
      %345 = vector.broadcast %75 : f32 to vector<16x16xf32>
      %346 = arith.mulf %345, %344 : vector<16x16xf32>
      %347 = arith.addf %343, %346 : vector<16x16xf32>
      %348 = vector.extract_strided_slice %329 {offsets = [0, 0], sizes = [16, 16], strides = [1, 1]} : vector<22x16xf32> to vector<16x16xf32>
      %349 = vector.broadcast %76 : f32 to vector<16x16xf32>
      %350 = arith.mulf %349, %348 : vector<16x16xf32>
      %351 = arith.addf %347, %350 : vector<16x16xf32>
      %352 = vector.extract_strided_slice %330 {offsets = [0, 0], sizes = [16, 16], strides = [1, 1]} : vector<22x16xf32> to vector<16x16xf32>
      %353 = vector.broadcast %77 : f32 to vector<16x16xf32>
      %354 = arith.mulf %353, %352 : vector<16x16xf32>
      %355 = arith.addf %351, %354 : vector<16x16xf32>
      %356 = vector.extract_strided_slice %331 {offsets = [0, 0], sizes = [16, 16], strides = [1, 1]} : vector<22x16xf32> to vector<16x16xf32>
      %357 = vector.broadcast %78 : f32 to vector<16x16xf32>
      %358 = arith.mulf %357, %356 : vector<16x16xf32>
      %359 = arith.addf %355, %358 : vector<16x16xf32>
      %360 = vector.extract_strided_slice %325 {offsets = [1, 0], sizes = [16, 16], strides = [1, 1]} : vector<22x16xf32> to vector<16x16xf32>
      %361 = vector.broadcast %79 : f32 to vector<16x16xf32>
      %362 = arith.mulf %361, %360 : vector<16x16xf32>
      %363 = arith.addf %359, %362 : vector<16x16xf32>
      %364 = vector.extract_strided_slice %326 {offsets = [1, 0], sizes = [16, 16], strides = [1, 1]} : vector<22x16xf32> to vector<16x16xf32>
      %365 = vector.broadcast %80 : f32 to vector<16x16xf32>
      %366 = arith.mulf %365, %364 : vector<16x16xf32>
      %367 = arith.addf %363, %366 : vector<16x16xf32>
      %368 = vector.extract_strided_slice %327 {offsets = [1, 0], sizes = [16, 16], strides = [1, 1]} : vector<22x16xf32> to vector<16x16xf32>
      %369 = vector.broadcast %81 : f32 to vector<16x16xf32>
      %370 = arith.mulf %369, %368 : vector<16x16xf32>
      %371 = arith.addf %367, %370 : vector<16x16xf32>
      %372 = vector.extract_strided_slice %328 {offsets = [1, 0], sizes = [16, 16], strides = [1, 1]} : vector<22x16xf32> to vector<16x16xf32>
      %373 = vector.broadcast %82 : f32 to vector<16x16xf32>
      %374 = arith.mulf %373, %372 : vector<16x16xf32>
      %375 = arith.addf %371, %374 : vector<16x16xf32>
      %376 = vector.extract_strided_slice %329 {offsets = [1, 0], sizes = [16, 16], strides = [1, 1]} : vector<22x16xf32> to vector<16x16xf32>
      %377 = vector.broadcast %83 : f32 to vector<16x16xf32>
      %378 = arith.mulf %377, %376 : vector<16x16xf32>
      %379 = arith.addf %375, %378 : vector<16x16xf32>
      %380 = vector.extract_strided_slice %330 {offsets = [1, 0], sizes = [16, 16], strides = [1, 1]} : vector<22x16xf32> to vector<16x16xf32>
      %381 = vector.broadcast %84 : f32 to vector<16x16xf32>
      %382 = arith.mulf %381, %380 : vector<16x16xf32>
      %383 = arith.addf %379, %382 : vector<16x16xf32>
      %384 = vector.extract_strided_slice %331 {offsets = [1, 0], sizes = [16, 16], strides = [1, 1]} : vector<22x16xf32> to vector<16x16xf32>
      %385 = vector.broadcast %85 : f32 to vector<16x16xf32>
      %386 = arith.mulf %385, %384 : vector<16x16xf32>
      %387 = arith.addf %383, %386 : vector<16x16xf32>
      %388 = vector.extract_strided_slice %325 {offsets = [2, 0], sizes = [16, 16], strides = [1, 1]} : vector<22x16xf32> to vector<16x16xf32>
      %389 = vector.broadcast %86 : f32 to vector<16x16xf32>
      %390 = arith.mulf %389, %388 : vector<16x16xf32>
      %391 = arith.addf %387, %390 : vector<16x16xf32>
      %392 = vector.extract_strided_slice %326 {offsets = [2, 0], sizes = [16, 16], strides = [1, 1]} : vector<22x16xf32> to vector<16x16xf32>
      %393 = vector.broadcast %87 : f32 to vector<16x16xf32>
      %394 = arith.mulf %393, %392 : vector<16x16xf32>
      %395 = arith.addf %391, %394 : vector<16x16xf32>
      %396 = vector.extract_strided_slice %327 {offsets = [2, 0], sizes = [16, 16], strides = [1, 1]} : vector<22x16xf32> to vector<16x16xf32>
      %397 = vector.broadcast %88 : f32 to vector<16x16xf32>
      %398 = arith.mulf %397, %396 : vector<16x16xf32>
      %399 = arith.addf %395, %398 : vector<16x16xf32>
      %400 = vector.extract_strided_slice %328 {offsets = [2, 0], sizes = [16, 16], strides = [1, 1]} : vector<22x16xf32> to vector<16x16xf32>
      %401 = vector.broadcast %89 : f32 to vector<16x16xf32>
      %402 = arith.mulf %401, %400 : vector<16x16xf32>
      %403 = arith.addf %399, %402 : vector<16x16xf32>
      %404 = vector.extract_strided_slice %329 {offsets = [2, 0], sizes = [16, 16], strides = [1, 1]} : vector<22x16xf32> to vector<16x16xf32>
      %405 = vector.broadcast %90 : f32 to vector<16x16xf32>
      %406 = arith.mulf %405, %404 : vector<16x16xf32>
      %407 = arith.addf %403, %406 : vector<16x16xf32>
      %408 = vector.extract_strided_slice %330 {offsets = [2, 0], sizes = [16, 16], strides = [1, 1]} : vector<22x16xf32> to vector<16x16xf32>
      %409 = vector.broadcast %91 : f32 to vector<16x16xf32>
      %410 = arith.mulf %409, %408 : vector<16x16xf32>
      %411 = arith.addf %407, %410 : vector<16x16xf32>
      %412 = vector.extract_strided_slice %331 {offsets = [2, 0], sizes = [16, 16], strides = [1, 1]} : vector<22x16xf32> to vector<16x16xf32>
      %413 = vector.broadcast %92 : f32 to vector<16x16xf32>
      %414 = arith.mulf %413, %412 : vector<16x16xf32>
      %415 = arith.addf %411, %414 : vector<16x16xf32>
      %416 = vector.extract_strided_slice %325 {offsets = [3, 0], sizes = [16, 16], strides = [1, 1]} : vector<22x16xf32> to vector<16x16xf32>
      %417 = vector.broadcast %93 : f32 to vector<16x16xf32>
      %418 = arith.mulf %417, %416 : vector<16x16xf32>
      %419 = arith.addf %415, %418 : vector<16x16xf32>
      %420 = vector.extract_strided_slice %326 {offsets = [3, 0], sizes = [16, 16], strides = [1, 1]} : vector<22x16xf32> to vector<16x16xf32>
      %421 = vector.broadcast %94 : f32 to vector<16x16xf32>
      %422 = arith.mulf %421, %420 : vector<16x16xf32>
      %423 = arith.addf %419, %422 : vector<16x16xf32>
      %424 = vector.extract_strided_slice %327 {offsets = [3, 0], sizes = [16, 16], strides = [1, 1]} : vector<22x16xf32> to vector<16x16xf32>
      %425 = vector.broadcast %95 : f32 to vector<16x16xf32>
      %426 = arith.mulf %425, %424 : vector<16x16xf32>
      %427 = arith.addf %423, %426 : vector<16x16xf32>
      %428 = vector.extract_strided_slice %328 {offsets = [3, 0], sizes = [16, 16], strides = [1, 1]} : vector<22x16xf32> to vector<16x16xf32>
      %429 = vector.broadcast %96 : f32 to vector<16x16xf32>
      %430 = arith.mulf %429, %428 : vector<16x16xf32>
      %431 = arith.addf %427, %430 : vector<16x16xf32>
      %432 = vector.extract_strided_slice %329 {offsets = [3, 0], sizes = [16, 16], strides = [1, 1]} : vector<22x16xf32> to vector<16x16xf32>
      %433 = vector.broadcast %97 : f32 to vector<16x16xf32>
      %434 = arith.mulf %433, %432 : vector<16x16xf32>
      %435 = arith.addf %431, %434 : vector<16x16xf32>
      %436 = vector.extract_strided_slice %330 {offsets = [3, 0], sizes = [16, 16], strides = [1, 1]} : vector<22x16xf32> to vector<16x16xf32>
      %437 = vector.broadcast %98 : f32 to vector<16x16xf32>
      %438 = arith.mulf %437, %436 : vector<16x16xf32>
      %439 = arith.addf %435, %438 : vector<16x16xf32>
      %440 = vector.extract_strided_slice %331 {offsets = [3, 0], sizes = [16, 16], strides = [1, 1]} : vector<22x16xf32> to vector<16x16xf32>
      %441 = vector.broadcast %99 : f32 to vector<16x16xf32>
      %442 = arith.mulf %441, %440 : vector<16x16xf32>
      %443 = arith.addf %439, %442 : vector<16x16xf32>
      %444 = vector.extract_strided_slice %325 {offsets = [4, 0], sizes = [16, 16], strides = [1, 1]} : vector<22x16xf32> to vector<16x16xf32>
      %445 = vector.broadcast %100 : f32 to vector<16x16xf32>
      %446 = arith.mulf %445, %444 : vector<16x16xf32>
      %447 = arith.addf %443, %446 : vector<16x16xf32>
      %448 = vector.extract_strided_slice %326 {offsets = [4, 0], sizes = [16, 16], strides = [1, 1]} : vector<22x16xf32> to vector<16x16xf32>
      %449 = vector.broadcast %101 : f32 to vector<16x16xf32>
      %450 = arith.mulf %449, %448 : vector<16x16xf32>
      %451 = arith.addf %447, %450 : vector<16x16xf32>
      %452 = vector.extract_strided_slice %327 {offsets = [4, 0], sizes = [16, 16], strides = [1, 1]} : vector<22x16xf32> to vector<16x16xf32>
      %453 = vector.broadcast %102 : f32 to vector<16x16xf32>
      %454 = arith.mulf %453, %452 : vector<16x16xf32>
      %455 = arith.addf %451, %454 : vector<16x16xf32>
      %456 = vector.extract_strided_slice %328 {offsets = [4, 0], sizes = [16, 16], strides = [1, 1]} : vector<22x16xf32> to vector<16x16xf32>
      %457 = vector.broadcast %103 : f32 to vector<16x16xf32>
      %458 = arith.mulf %457, %456 : vector<16x16xf32>
      %459 = arith.addf %455, %458 : vector<16x16xf32>
      %460 = vector.extract_strided_slice %329 {offsets = [4, 0], sizes = [16, 16], strides = [1, 1]} : vector<22x16xf32> to vector<16x16xf32>
      %461 = vector.broadcast %104 : f32 to vector<16x16xf32>
      %462 = arith.mulf %461, %460 : vector<16x16xf32>
      %463 = arith.addf %459, %462 : vector<16x16xf32>
      %464 = vector.extract_strided_slice %330 {offsets = [4, 0], sizes = [16, 16], strides = [1, 1]} : vector<22x16xf32> to vector<16x16xf32>
      %465 = vector.broadcast %105 : f32 to vector<16x16xf32>
      %466 = arith.mulf %465, %464 : vector<16x16xf32>
      %467 = arith.addf %463, %466 : vector<16x16xf32>
      %468 = vector.extract_strided_slice %331 {offsets = [4, 0], sizes = [16, 16], strides = [1, 1]} : vector<22x16xf32> to vector<16x16xf32>
      %469 = vector.broadcast %106 : f32 to vector<16x16xf32>
      %470 = arith.mulf %469, %468 : vector<16x16xf32>
      %471 = arith.addf %467, %470 : vector<16x16xf32>
      %472 = vector.extract_strided_slice %325 {offsets = [5, 0], sizes = [16, 16], strides = [1, 1]} : vector<22x16xf32> to vector<16x16xf32>
      %473 = vector.broadcast %107 : f32 to vector<16x16xf32>
      %474 = arith.mulf %473, %472 : vector<16x16xf32>
      %475 = arith.addf %471, %474 : vector<16x16xf32>
      %476 = vector.extract_strided_slice %326 {offsets = [5, 0], sizes = [16, 16], strides = [1, 1]} : vector<22x16xf32> to vector<16x16xf32>
      %477 = vector.broadcast %108 : f32 to vector<16x16xf32>
      %478 = arith.mulf %477, %476 : vector<16x16xf32>
      %479 = arith.addf %475, %478 : vector<16x16xf32>
      %480 = vector.extract_strided_slice %327 {offsets = [5, 0], sizes = [16, 16], strides = [1, 1]} : vector<22x16xf32> to vector<16x16xf32>
      %481 = vector.broadcast %109 : f32 to vector<16x16xf32>
      %482 = arith.mulf %481, %480 : vector<16x16xf32>
      %483 = arith.addf %479, %482 : vector<16x16xf32>
      %484 = vector.extract_strided_slice %328 {offsets = [5, 0], sizes = [16, 16], strides = [1, 1]} : vector<22x16xf32> to vector<16x16xf32>
      %485 = vector.broadcast %110 : f32 to vector<16x16xf32>
      %486 = arith.mulf %485, %484 : vector<16x16xf32>
      %487 = arith.addf %483, %486 : vector<16x16xf32>
      %488 = vector.extract_strided_slice %329 {offsets = [5, 0], sizes = [16, 16], strides = [1, 1]} : vector<22x16xf32> to vector<16x16xf32>
      %489 = vector.broadcast %111 : f32 to vector<16x16xf32>
      %490 = arith.mulf %489, %488 : vector<16x16xf32>
      %491 = arith.addf %487, %490 : vector<16x16xf32>
      %492 = vector.extract_strided_slice %330 {offsets = [5, 0], sizes = [16, 16], strides = [1, 1]} : vector<22x16xf32> to vector<16x16xf32>
      %493 = vector.broadcast %112 : f32 to vector<16x16xf32>
      %494 = arith.mulf %493, %492 : vector<16x16xf32>
      %495 = arith.addf %491, %494 : vector<16x16xf32>
      %496 = vector.extract_strided_slice %331 {offsets = [5, 0], sizes = [16, 16], strides = [1, 1]} : vector<22x16xf32> to vector<16x16xf32>
      %497 = vector.broadcast %113 : f32 to vector<16x16xf32>
      %498 = arith.mulf %497, %496 : vector<16x16xf32>
      %499 = arith.addf %495, %498 : vector<16x16xf32>
      %500 = vector.extract_strided_slice %325 {offsets = [6, 0], sizes = [16, 16], strides = [1, 1]} : vector<22x16xf32> to vector<16x16xf32>
      %501 = vector.broadcast %114 : f32 to vector<16x16xf32>
      %502 = arith.mulf %501, %500 : vector<16x16xf32>
      %503 = arith.addf %499, %502 : vector<16x16xf32>
      %504 = vector.extract_strided_slice %326 {offsets = [6, 0], sizes = [16, 16], strides = [1, 1]} : vector<22x16xf32> to vector<16x16xf32>
      %505 = vector.broadcast %115 : f32 to vector<16x16xf32>
      %506 = arith.mulf %505, %504 : vector<16x16xf32>
      %507 = arith.addf %503, %506 : vector<16x16xf32>
      %508 = vector.extract_strided_slice %327 {offsets = [6, 0], sizes = [16, 16], strides = [1, 1]} : vector<22x16xf32> to vector<16x16xf32>
      %509 = vector.broadcast %116 : f32 to vector<16x16xf32>
      %510 = arith.mulf %509, %508 : vector<16x16xf32>
      %511 = arith.addf %507, %510 : vector<16x16xf32>
      %512 = vector.extract_strided_slice %328 {offsets = [6, 0], sizes = [16, 16], strides = [1, 1]} : vector<22x16xf32> to vector<16x16xf32>
      %513 = vector.broadcast %117 : f32 to vector<16x16xf32>
      %514 = arith.mulf %513, %512 : vector<16x16xf32>
      %515 = arith.addf %511, %514 : vector<16x16xf32>
      %516 = vector.extract_strided_slice %329 {offsets = [6, 0], sizes = [16, 16], strides = [1, 1]} : vector<22x16xf32> to vector<16x16xf32>
      %517 = vector.broadcast %118 : f32 to vector<16x16xf32>
      %518 = arith.mulf %517, %516 : vector<16x16xf32>
      %519 = arith.addf %515, %518 : vector<16x16xf32>
      %520 = vector.extract_strided_slice %330 {offsets = [6, 0], sizes = [16, 16], strides = [1, 1]} : vector<22x16xf32> to vector<16x16xf32>
      %521 = vector.broadcast %119 : f32 to vector<16x16xf32>
      %522 = arith.mulf %521, %520 : vector<16x16xf32>
      %523 = arith.addf %519, %522 : vector<16x16xf32>
      %524 = vector.extract_strided_slice %331 {offsets = [6, 0], sizes = [16, 16], strides = [1, 1]} : vector<22x16xf32> to vector<16x16xf32>
      %525 = vector.broadcast %120 : f32 to vector<16x16xf32>
      %526 = arith.mulf %525, %524 : vector<16x16xf32>
      %527 = arith.addf %523, %526 : vector<16x16xf32>
      %528 = arith.negf %527 : vector<16x16xf32>
      %529 = math.exp %528 : vector<16x16xf32>
      %cst_18 = arith.constant 1.000000e+00 : f32
      %530 = vector.broadcast %cst_18 : f32 to vector<16x16xf32>
      %531 = arith.addf %530, %529 : vector<16x16xf32>
      %532 = arith.divf %530, %531 : vector<16x16xf32>
      %533 = vector.shape_cast %532 : vector<16x16xf32> to vector<1x1x16x16xf32>
      %c0_19 = arith.constant 0 : index
      %c0_20 = arith.constant 0 : index
      %c0_21 = arith.constant 0 : index
      %c0_22 = arith.constant 0 : index
      %534 = vector.load %arg4[%c0_19, %c0_20, %c0_21, %c0_22] : memref<1x1x16x16xf32, #tpu.memory_space<vmem>>, vector<1x1x16x16xf32>
      tpu.vector_store %arg4[%c0_19, %c0_20, %c0_21, %c0_22], %533 {strides = array<i32>} : memref<1x1x16x16xf32, #tpu.memory_space<vmem>>, vector<1x1x16x16xf32>,
    } else {
    }
    return
  }
  func.func @transform_0(%arg0: i32, %arg1: i32) -> i32 {
    %c0_i32 = arith.constant 0 : i32
    %c0_i32_0 = arith.constant 0 : i32
    return %c0_i32 : i32
  }
  func.func @transform_1(%arg0: i32, %arg1: i32) -> (i32, i32, i32, i32) {
    %c0_i32 = arith.constant 0 : i32
    %c0_i32_0 = arith.constant 0 : i32
    %c0_i32_1 = arith.constant 0 : i32
    return %arg0, %arg1, %c0_i32, %c0_i32_0 : i32, i32, i32, i32
  }
  func.func @transform_2(%arg0: i32, %arg1: i32) -> (i32, i32, i32, i32) {
    %c0_i32 = arith.constant 0 : i32
    %c0_i32_0 = arith.constant 0 : i32
    %c0_i32_1 = arith.constant 0 : i32
    %c0_i32_2 = arith.constant 0 : i32
    return %arg0, %c0_i32, %c0_i32_0, %c0_i32_1 : i32, i32, i32, i32
  }
}

</mosaic_0001>

<bundles_post_ra>
// kernel: tpu_custom_call.1
= control target key start
LH: loop header
LB: loop body
LE: loop exit
PB: predicated region body
PF: predicated region fallthrough
CT: control target
= control target key end

     0   :  { %7 = vsyncpa [#allocation7], 0  ;;  %s3927_s0 = inlined_call_operand.hbm [shape: f32[98], index: 0, kind: input, shape index: {}]   ;;  %s3928_s1 = inlined_call_operand.hbm [shape: f32[2,4,16,16], index: 1, kind: input, shape index: {}]   ;;  %s3929_s2 = inlined_call_operand.hbm [shape: f32[2,1,16,16], index: 2, kind: output, shape index: {}]  }
   0x1   :  { %8 = vsyncpa [#allocation5], 0 }
   0x2   :  { %10 = vsyncpa [#allocation5 + $0x1], 0 }
   0x3   :  { %11 = vsyncpa [#allocation6], 0 }
   0x4   :  { %13 = vsyncpa [#allocation6 + $0x1], 0  ;;  %s2712_s9 = smov 0   ;;  %s2714_s10 = smov 0  }
   0x5   :  { %s2716_s11 = smov 0   ;;  %s2718_s12 = smov 0  }
   0x6   :  { %s2720_s13 = smov 0   ;;  %s2722_s14 = smov 0  }
   0x7 LB: > { %s2342_s15 = sadd.s32 4294967295, %s2681_s14   ;;  %s2343_s16 = sadd.s32 4294967294, %s2681_s14   ;;  %s2681_s14 = sphi %s2722_s14, %s19_s14   ;;  %s2677_s13 = sphi %s2720_s13, %s3949_s13   ;;  %s2673_s12 = sphi %s2718_s12, %s3948_s12   ;;  %s2669_s11 = sphi %s2716_s11, %s3947_s11   ;;  %s2665_s10 = sphi %s2714_s10, %s3946_s10   ;;  %s2661_s9 = sphi %s2712_s9, %s3945_s9  }
   0x8   : > { %s61_s17 = sadd.s32 1, %s2669_s11  ;;  %p68_p0 = scmp.ne.s32.totalorder %s2669_s11, %s2665_s10 }
   0x9   : > { %p69_p1 = scmp.eq.s32.totalorder %s2681_s14, 0  ;;  %p74_p2 = scmp.ne.s32.totalorder %s2665_s10, %s2661_s9 }
   0xa   : > { %p2750_p3 = scmp.eq.s32.totalorder %s2342_s15, 0  ;;  %p98_p4 = scmp.eq.s32.totalorder %s2342_s15, 1 }
   0xb   : > { %p70_p5 = por %p69_p1, %p68_p0  ;;  %p104_p6 = scmp.eq.s32.totalorder %s2343_s16, 1 }
   0xc   : > { %s3934_s18 = scalar_select %p2750_p3, 1, 0 }
   0xd   : > { %p2756_p7 = por %p2750_p3, %p74_p2  ;;  %p2760_p8 = por %p98_p4, %p68_p0 }
   0xe   : > { %p2764_p9 = por %p104_p6, %p74_p2  ;;  %p2344_p10 = scmp.ge.s32.totalorder %s2681_s14, 1 }
   0xf   : > { %s3935_s19 = scalar_select %p2756_p7, 1, 0 }
  0x10   : > { %s3936_s20 = scalar_select %p2760_p8, 1, 0 }
  0x11   : > { %s3937_s21 = scalar_select %p2764_p9, 1, 0 }
  0x12   : > { %p111_p11 = scmp.lt.s32.totalorder %s2681_s14, 3  ;;  %p2481_p1 = scmp.lt.s32.totalorder %s2681_s14, 2 }
  0x13   : > { %s133_s23 = sand.u32 1, %s2669_s11   ;;  %s31_s25 = sadd.s32 1, %s2677_s13 }
  0x14   : > { %p2771_p13 = pnand %p2344_p10, %p111_p11  ;;  %p2779_p0 = pnand %p2481_p1, %p70_p5 }
  0x15   : > { %s2347_s26 = sshll.u32 %s133_s23, 6  ;;  %p33_p4 = scmp.ge.s32.totalorder %s31_s25, 2 }
  0x16   : > { %p2468_p7 = pneg %p2771_p13  ;;  %s2552_s29 = scalar_lea.hbm %s3927_s0, 16 }
  0x17   : > { %p2553_p6 = scmp.ne.s32.totalorder %s3927_s0, %s2552_s29  ;;  %p2559_p5 = scmp.lt.u32.totalorder %s2552_s29, %s3927_s0 }
  0x18   : > { %p2469_p2 = pnand %p2468_p7, %p2750_p3 }
  0x1a   : > { %p2554_p10 = pneg %p2469_p2 }
  0x1c   : > { %p2555_p11 = pnand %p2554_p10, %p2553_p6 }
  0x1e   : > { %p2556_p12 = pneg %p2555_p11 }
  0x20   : > { %p2561_p1 = pnand %p2559_p5, %p2556_p12 }
  0x22   : > { %2564 = shalt.err (!%p2561_p1)
}
  0x23   : > { %s2683_s6 = smov [#allocation4]   ;;  %s3951_s25 = smov (%p33_p4, %s31_s25), 0 }
  0x24   : > { %2471 = dma.hbm_to_smem (!%p2469_p2), %s3927_s0, 16, %s2683_s6, [#allocation7]  }
  0x25   : > { %s2458_s15 = sshll.u32 %s2677_s13, 10  ;;  %s56_s16 = ssub.s32 %s2677_s13, %s3951_s25 }
  0x26   : > { %s2806_s29 = scalar_lea.hbm %s3928_s1, %s2458_s15  ;;  %p59_p7 = scmp.eq.s32.totalorder %s56_s16, 0 }
  0x27   : > { %s137_s30 = scalar_lea.vmem [#allocation8], %s2347_s26  ;;  %s2815_s5 = scalar_lea.sflag [#allocation5], %s133_s23 }
  0x28   : > { %s147_s3 = sshll.u32 %s137_s30, 4  ;;  %s2565_s6 = scalar_lea.hbm %s2806_s29, 1024  ;;  %s2808_s3 = int_to_ptr.vmem [resolvable:$true] %s147_s3 }
  0x29   : > { %s2813_s4 = scalar_select %p59_p7, %s2669_s11, %s61_s17  }
  0x2a   : > { %p2566_p12 = scmp.ne.s32.totalorder %s2806_s29, %s2565_s6  ;;  %p2567_p2 = pneg %p2779_p0 }
  0x2b   : > { %s2570_s26 = scalar_lea.hbm %s3928_s1, 2048  ;;  %p2571_p10 = scmp.lt.u32.totalorder %s2806_s29, %s3928_s1 }
  0x2c   : > { %p2568_p4 = pnand %p2567_p2, %p2566_p12  ;;  %p2572_p11 = scmp.lt.u32.totalorder %s2570_s26, %s2565_s6 }
  0x2d   : > { %p2574_p1 = scmp.lt.u32.totalorder %s2565_s6, %s2806_s29 }
  0x2e   : > { %p2569_p6 = pneg %p2568_p4  ;;  %p2573_p5 = por %p2572_p11, %p2571_p10 }
  0x30   : > { %p2575_p7 = por %p2574_p1, %p2573_p5 }
  0x32   : > { %p2576_p9 = pnand %p2575_p7, %p2569_p6 }
  0x34   : > { %2579 = shalt.err (!%p2576_p9)
}
  0x35   : > { %s2580_s17 = scalar_lea.vmem %s2808_s3, 1024  ;;  %s2684_s23 = smov [#allocation8]  }
  0x36   : > { %p2581_p12 = scmp.ne.s32.totalorder %s2808_s3, %s2580_s17  ;;  %s2585_s27 = sshll.u32 %s2684_s23, 4  ;;  %s2586_s27 = int_to_ptr.vmem [resolvable:$false] %s2585_s27 }
  0x37   : > { %s2587_s28 = scalar_lea.vmem %s2586_s27, 2048  ;;  %p2588_p3 = scmp.lt.s32.totalorder %s2808_s3, %s2586_s27 }
  0x38   : > { %p2583_p4 = pnand %p2581_p12, %p2567_p2  ;;  %p2589_p10 = scmp.lt.s32.totalorder %s2587_s28, %s2580_s17 }
  0x3a   : > { %p2584_p8 = pneg %p2583_p4  ;;  %p2590_p11 = por %p2589_p10, %p2588_p3 }
  0x3c   : > { %p2591_p5 = pnand %p2590_p11, %p2584_p8 }
  0x3e   : > { %2594 = shalt.err (!%p2591_p5)
}
  0x3f   : > { %s2685_s30 = smov 128   ;;  %s2686_s6 = smov 8  }
  0x40   : > { %2475 = dma.hbm_to_vmem [thread:$0]  (!%p2779_p0), %s2806_s29, 1024, %s2808_s3, %s2815_s5, %s2685_s30, %s2685_s30, %s2686_s6  }
  0x41   : > { %159 = sbr.rel (%p2771_p13) target bundleno = 716 (0x2cc), region = 28  ;;  %p3940_p9 = scmp.ne.s32.totalorder (!%p2771_p13), %s3934_s18, 0 }
  0x48   : > { %2648 = dma.done.wait (%p3940_p9), [#allocation7], 16  }
  0x49   : > { %2650 = vsyncadd (%p3940_p9), [#allocation7], 4294967280  ;;  %s2850_s7 = sand.u32 1, %s2665_s10   ;;  %p3941_p3 = scmp.ne.s32.totalorder %s3935_s19, 0 }
  0x4a   : > { %s2352_s8 = sshll.u32 %s2850_s7, 6  ;;  %s166_s26 = scalar_lea.sflag [#allocation5], %s2850_s7 }
  0x4b   : > { %s169_s15 = scalar_lea.vmem [#allocation8], %s2352_s8 }
  0x4c   : > { %2652 = dma.done.wait (%p3941_p3), %s166_s26, 1024  }
  0x4d   : > { %2654 = vsyncadd (%p3941_p3), %s166_s26, 4294966272 }
  0x4e   : > { %174 = sfence }
  0x4f   : > { %v192_v0 = vld [vmem:[%s169_s15] sm:$0xff]  ;;  %v194_v1 = vld [vmem:[%s169_s15 + $0x10] sm:$0xff]  ;;  %vm200_vm0 = vcmask 130048   ;;  %v193_v8 = vld [vmem:[%s169_s15 + $0x8] sm:$0xff]  ;;  %vm264_vm1 = vcmask 1042432   ;;  %s2687_s18 = smov 3  }
  0x50   : > { %v196_v2 = vld [vmem:[%s169_s15 + $0x20] sm:$0xff]  ;;  %v198_v3 = vld [vmem:[%s169_s15 + $0x30] sm:$0xff]  ;;  %v202_v4 = vsel %vm200_vm0, %v194_v1, 0.0  ;;  %v215_v5 = vsel %vm200_vm0, %v192_v0, -inf  ;;  %v216_v6 = vsel %vm200_vm0, %v194_v1, -inf  ;;  %v201_v11 = vsel %vm200_vm0, %v192_v0, 0.0 }
  0x51   : > { %v217_v7 = vsel %vm200_vm0, %v196_v2, -inf  ;;  %v219_v10 = vsel %vm200_vm0, %v198_v3, -inf  ;;  %v195_v12 = vld [vmem:[%s169_s15 + $0x18] sm:$0xff]  ;;  %v197_v13 = vld [vmem:[%s169_s15 + $0x28] sm:$0xff]  ;;  %v222_v15 = vsel %vm200_vm0, %v193_v8, -inf  ;;  %v203_v22 = vadd.f32 %v202_v4, %v201_v11  ;;  %s2354_s19 = sld [smem:[#allocation4 + $0x1]] }
  0x52   : > { %v218_v9 = vmax.f32 %v215_v5, %v217_v7  ;;  %v199_v14 = vld [vmem:[%s169_s15 + $0x38] sm:$0xff]  ;;  %v220_v16 = vmax.f32 %v216_v6, %v219_v10  ;;  %v223_v17 = vsel %vm200_vm0, %v195_v12, -inf  ;;  %v224_v18 = vsel %vm200_vm0, %v197_v13, -inf  ;;  %s2355_s22 = sld [smem:[#allocation4 + $0x2]]  ;;  %s2356_s24 = sld [smem:[#allocation4 + $0x3]] }
  0x53   : > { %v226_v19 = vsel %vm200_vm0, %v199_v14, -inf  ;;  %v225_v20 = vmax.f32 %v222_v15, %v224_v18  ;;  %v204_v23 = vsel %vm200_vm0, %v196_v2, 0.0  ;;  %v206_v25 = vsel %vm200_vm0, %v198_v3, 0.0  ;;  %s2357_s29 = sld [smem:[#allocation4 + $0x4]]  ;;  %s2688_s3 = smov 127  }
  0x54   : > { %v227_v21 = vmax.f32 %v223_v17, %v226_v19  ;;  %v221_v24 = vmax.f32 %v218_v9, %v220_v16  ;;  %v208_v26 = vsel %vm200_vm0, %v193_v8, 0.0  ;;  %v209_v27 = vsel %vm200_vm0, %v195_v12, 0.0  ;;  %s2908_s5 = sld [smem:[#allocation4 + $0x5]]  ;;  %s2689_s16 = smov 126  }
  0x55   : > { %v205_v29 = vadd.f32 %v204_v23, %v203_v22  ;;  %v210_v30 = vadd.f32 %v209_v27, %v208_v26  ;;  %v211_v31 = vsel %vm200_vm0, %v197_v13, 0.0  ;;  %v213_v32 = vsel %vm200_vm0, %v199_v14, 0.0  ;;  %s2361_s17 = sld [smem:[#allocation4 + $0x8]]  ;;  %s2914_s23 = sld [smem:[#allocation4 + $0x6]] }
  0x56   : > { %v228_v28 = vmax.f32 %v225_v20, %v227_v21  ;;  %235 = vst.msk [vmem:[#allocation3] sm:$0xff] %vm200_vm0, %v221_v24  ;;  %vm283_vm2 = vcmask 23552   ;;  %vm287_vm3 = vcmask 154624   ;;  %s2690_s27 = smov 125   ;;  %s2362_s28 = sld [smem:[#allocation4 + $0x9]]  ;;  %vm505_vm4 = vcmask 1046528  }
  0x57   : > { %v207_v33 = vadd.f32 %v206_v25, %v205_v29  ;;  %v212_v34 = vadd.f32 %v211_v31, %v210_v30  ;;  %v420_v61 = vstv %s2354_s19  ;;  %s2691_s30 = smov 124   ;;  %s2363_s6 = sld [smem:[#allocation4 + $0xa]]  ;;  %vm642_vm5 = vcmask 1045504  }
  0x58   : > { %236 = vst.msk [vmem:[#allocation3 + $0x8] sm:$0xff] %vm200_vm0, %v228_v28  ;;  %v433_v3 = vstv %s2355_s22  ;;  %v446_v8 = vstv %s2356_s24  ;;  %s2692_s8 = smov 123   ;;  %s2364_s26 = sld [smem:[#allocation4 + $0xb]]  ;;  %vm779_vm6 = vcmask 1044480   ;;  %vm916_vm7 = vcmask 1043456  }
  0x59   : > { %233 = vst.msk [vmem:[#allocation2] sm:$0xff] %vm200_vm0, %v207_v33  ;;  %v214_v35 = vadd.f32 %v213_v32, %v212_v34  ;;  %v459_v11 = vstv %s2357_s29  ;;  %s2693_s15 = smov 122   ;;  %s2366_s19 = sld [smem:[#allocation4 + $0xd]]  ;;  %vm1189_vm8 = vcmask 1041408  }
  0x5a   : > { %v472_v15 = vstv %s2908_s5  ;;  %s2368_s22 = sld [smem:[#allocation4 + $0xf]]  ;;  %s2369_s24 = sld [smem:[#allocation4 + $0x10]] }
  0x5b   : > { %234 = vst.msk [vmem:[#allocation2 + $0x8] sm:$0xff] %vm200_vm0, %v214_v35  ;;  %v515_v19 = vstv %s2361_s17  ;;  %v485_v20 = vstv %s2914_s23  ;;  %s2370_s29 = sld [smem:[#allocation4 + $0x11]]  ;;  %s2371_s5 = sld [smem:[#allocation4 + $0x12]] }
  0x5c   : > { %v535_v26 = vstv %s2362_s28  ;;  %s2372_s17 = sld [smem:[#allocation4 + $0x13]]  ;;  %s2373_s23 = sld [smem:[#allocation4 + $0x14]] }
  0x5d   : > { %v260_v36 = vld [vmem:[#allocation3] sm:$0xff]  ;;  %v555_v33 = vstv %s2363_s6  ;;  %s2375_s28 = sld [smem:[#allocation4 + $0x16]]  ;;  %s2376_s6 = sld [smem:[#allocation4 + $0x17]] }
  0x5e   : > { %v293_v37 = vrot.slane %v260_v36, 5  ;;  %p3942_p13 = scmp.ne.s32.totalorder %s3936_s20, 0 }
  0x5f   : > { %v261_v38 = vld [vmem:[#allocation3 + $0x8] sm:$0xff] }
  0x60   : > { %v294_v39 = vrot.slane %v261_v38, 5  ;;  %v298_v40 = vsel %vm264_vm1, 0.0, %v293_v37  ;;  %v256_v41 = vld [vmem:[#allocation2] sm:$0xff] }
  0x61   : > { %302 = vrot.lane.b32.xlu1 %v298_v40, %s2687_s18  ;;  %v258_v43 = vmul.f32 0.25, %v256_v41  ;;  %v575_v41 = vstv %s2364_s26  ;;  %s2377_s26 = sld [smem:[#allocation4 + $0x18]] }
  0x62   : > { %v295_v42 = vsel %vm264_vm1, %v293_v37, %v294_v39  ;;  %v299_v44 = vsel %vm264_vm1, %v294_v39, 0.0  ;;  %v257_v45 = vld [vmem:[#allocation2 + $0x8] sm:$0xff] }
  0x63   : > { %304 = vrot.lane.b32.xlu0 %v295_v42, %s2687_s18  ;;  %v265_v46 = vrot.slane %v258_v43, 5  ;;  %v259_v47 = vmul.f32 0.25, %v257_v45 }
  0x65   : > { %306 = vrot.lane.b32.xlu1 %v299_v44, %s2687_s18  ;;  %v270_v48 = vsel %vm264_vm1, 0.0, %v265_v46  ;;  %v266_v49 = vrot.slane %v259_v47, 5 }
  0x67   : > { %274 = vrot.lane.b32.xlu0 %v270_v48, %s2687_s18  ;;  %v271_v50 = vsel %vm264_vm1, %v266_v49, 0.0  ;;  %v267_v51 = vsel %vm264_vm1, %v265_v46, %v266_v49 }
  0x69   : > { %278 = vrot.lane.b32.xlu1 %v271_v50, %s2687_s18 }
  0x6b   : > { %276 = vrot.lane.b32.xlu0 %v267_v51, %s2687_s18  ;;  %s2365_s18 = sld [smem:[#allocation4 + $0xc]] }
  0xd3   : > { %v303_v52 = vpop.permute.xlu1 %302 }
  0xd4   : > { %v311_v53 = vsel %vm283_vm2, 0.0, %v303_v52  ;;  %v595_v52 = vstv %s2365_s18  ;;  %s2378_s18 = sld [smem:[#allocation4 + $0x19]] }
  0xd5   : > { %v305_v54 = vpop.permute.xlu0 %304  ;;  %v2886_v55 = vsel %vm287_vm3, %v311_v53, 0.0 }
  0xd6   : > { %v312_v56 = vsel %vm283_vm2, 0.0, %v305_v54 }
  0xd7   : > { %v2890_v57 = vsel %vm287_vm3, %v312_v56, 0.0  ;;  %v307_v58 = vpop.permute.xlu1 %306 }
  0xd8   : > { %v313_v59 = vsel %vm283_vm2, 0.0, %v307_v58 }
  0xd9   : > { %v275_v60 = vpop.permute.xlu0 %274  ;;  %v2894_v62 = vsel %vm287_vm3, %v313_v59, 0.0 }
  0xda   : > { %v284_v63 = vsel %vm283_vm2, 0.0, %v275_v60 }
  0xdb   : > { %v2898_v0 = vsel %vm287_vm3, %v284_v63, 0.0  ;;  %v279_v12 = vpop.permute.xlu1 %278 }
  0xdc   : > { %v421_v1 = vmul.f32 %v420_v61, %v2898_v0  ;;  %v434_v6 = vmul.f32 %v433_v3, %v2898_v0  ;;  %v447_v9 = vmul.f32 %v446_v8, %v2898_v0  ;;  %v460_v13 = vmul.f32 %v459_v11, %v2898_v0 }
  0xdd   : > { %v277_v2 = vpop.permute.xlu0 %276  ;;  %v286_v16 = vsel %vm283_vm2, 0.0, %v279_v12  ;;  %v473_v17 = vmul.f32 %v472_v15, %v2898_v0  ;;  %v516_v23 = vmul.f32 %v515_v19, %v2898_v0  ;;  %v486_v24 = vmul.f32 %v485_v20, %v2898_v0 }
  0xde   : > { %v285_v4 = vsel %vm283_vm2, 0.0, %v277_v2  ;;  %425 = vrot.lane.b32.xlu0 %v421_v1, %s2688_s3  ;;  %v2929_v22 = vsel %vm287_vm3, %v286_v16, 0.0  ;;  %v536_v31 = vmul.f32 %v535_v26, %v2898_v0  ;;  %v556_v40 = vmul.f32 %v555_v33, %v2898_v0 }
  0xdf   : > { %v2904_v5 = vsel %vm287_vm3, %v285_v4, 0.0  ;;  %v518_v29 = vmul.f32 %v515_v19, %v2929_v22  ;;  %v522_v30 = vrot.slane %v516_v23, 1  ;;  %v538_v34 = vmul.f32 %v535_v26, %v2929_v22 }
  0xe0   : > { %v422_v7 = vmul.f32 %v420_v61, %v2904_v5  ;;  %v435_v10 = vmul.f32 %v433_v3, %v2904_v5  ;;  %v448_v14 = vmul.f32 %v446_v8, %v2904_v5  ;;  %v461_v18 = vmul.f32 %v459_v11, %v2904_v5 }
  0xe1   : > { %v517_v21 = vmul.f32 %v515_v19, %v2904_v5  ;;  %v474_v25 = vmul.f32 %v472_v15, %v2904_v5  ;;  %v537_v28 = vmul.f32 %v535_v26, %v2904_v5  ;;  %v487_v32 = vmul.f32 %v485_v20, %v2904_v5 }
  0xe2   : > { %438 = vrot.lane.b32.xlu0 %v434_v6, %s2689_s16  ;;  %427 = vrot.lane.b32.xlu1 %v422_v7, %s2688_s3  ;;  %v525_v37 = vrot.slane %v518_v29, 1  ;;  %v557_v38 = vmul.f32 %v555_v33, %v2904_v5  ;;  %v542_v39 = vrot.slane %v536_v31, 1  ;;  %v545_v42 = vrot.slane %v538_v34, 1 }
  0xe3   : > { %v523_v27 = vrot.slane %v517_v21, 1  ;;  %v543_v36 = vrot.slane %v537_v28, 1  ;;  %v577_v43 = vmul.f32 %v575_v41, %v2904_v5  ;;  %v558_v47 = vmul.f32 %v555_v33, %v2929_v22 }
  0xe4   : > { %v563_v46 = vrot.slane %v557_v38, 1  ;;  %v576_v48 = vmul.f32 %v575_v41, %v2898_v0  ;;  %v562_v49 = vrot.slane %v556_v40, 1  ;;  %v597_v56 = vmul.f32 %v595_v52, %v2904_v5 }
  0xe5   : > { %v524_v35 = vsel %vm505_vm4, %v522_v30, %v523_v27  ;;  %v544_v44 = vsel %vm505_vm4, %v542_v39, %v543_v36  ;;  %v526_v45 = vsel %vm505_vm4, %v523_v27, %v525_v37  ;;  %v546_v50 = vsel %vm505_vm4, %v543_v36, %v545_v42 }
  0xe6   : > { %451 = vrot.lane.b32.xlu0 %v447_v9, %s2690_s27  ;;  %440 = vrot.lane.b32.xlu1 %v435_v10, %s2689_s16  ;;  %v583_v51 = vrot.slane %v577_v43, 1  ;;  %v564_v53 = vsel %vm505_vm4, %v562_v49, %v563_v46  ;;  %v565_v54 = vrot.slane %v558_v47, 1  ;;  %v578_v58 = vmul.f32 %v575_v41, %v2929_v22 }
  0xe7   : > { %v582_v59 = vrot.slane %v576_v48, 1  ;;  %v596_v60 = vmul.f32 %v595_v52, %v2898_v0  ;;  %v615_v61 = vstv %s2366_s19  ;;  %v603_v3 = vrot.slane %v597_v56, 1  ;;  %s2379_s19 = sld [smem:[#allocation4 + $0x1a]] }
  0xe8   : > { %v617_v1 = vmul.f32 %v615_v61, %v2904_v5  ;;  %v566_v2 = vsel %vm505_vm4, %v563_v46, %v565_v54  ;;  %v585_v4 = vrot.slane %v578_v58, 1  ;;  %v598_v6 = vmul.f32 %v595_v52, %v2929_v22 }
  0xe9   : > { %v584_v63 = vsel %vm505_vm4, %v582_v59, %v583_v51  ;;  %v616_v7 = vmul.f32 %v615_v61, %v2898_v0  ;;  %v602_v8 = vrot.slane %v596_v60, 1  ;;  %v652_v9 = vstv %s2368_s22  ;;  %s2380_s22 = sld [smem:[#allocation4 + $0x1b]] }
  0xea   : > { %464 = vrot.lane.b32.xlu0 %v460_v13, %s2691_s30  ;;  %453 = vrot.lane.b32.xlu1 %v448_v14, %s2690_s27  ;;  %v623_v10 = vrot.slane %v617_v1, 1  ;;  %v654_v11 = vmul.f32 %v652_v9, %v2904_v5  ;;  %v586_v13 = vsel %vm505_vm4, %v583_v51, %v585_v4  ;;  %v605_v14 = vrot.slane %v598_v6, 1 }
  0xeb   : > { %v604_v12 = vsel %vm505_vm4, %v602_v8, %v603_v3  ;;  %v618_v15 = vmul.f32 %v615_v61, %v2929_v22  ;;  %v622_v16 = vrot.slane %v616_v7, 1  ;;  %v672_v20 = vstv %s2369_s24  ;;  %s2382_s24 = sld [smem:[#allocation4 + $0x1d]] }
  0xec   : > { %v660_v19 = vrot.slane %v654_v11, 2  ;;  %v606_v21 = vsel %vm505_vm4, %v603_v3, %v605_v14  ;;  %v673_v27 = vmul.f32 %v672_v20, %v2898_v0  ;;  %v692_v28 = vstv %s2370_s29  ;;  %s2383_s29 = sld [smem:[#allocation4 + $0x1e]] }
  0xed   : > { %v625_v23 = vrot.slane %v618_v15, 1  ;;  %v694_v30 = vmul.f32 %v692_v28, %v2904_v5  ;;  %v675_v34 = vmul.f32 %v672_v20, %v2929_v22  ;;  %v712_v37 = vstv %s2371_s5  ;;  %s2384_s5 = sld [smem:[#allocation4 + $0x1f]] }
  0xee   : > { %477 = vrot.lane.b32.xlu0 %v473_v17, %s2692_s8  ;;  %466 = vrot.lane.b32.xlu1 %v461_v18, %s2691_s30  ;;  %v653_v17 = vmul.f32 %v652_v9, %v2898_v0  ;;  %v624_v18 = vsel %vm505_vm4, %v622_v16, %v623_v10  ;;  %v679_v36 = vrot.slane %v673_v27, 2  ;;  %v714_v39 = vmul.f32 %v712_v37, %v2904_v5 }
  0xef   : > { %v626_v31 = vsel %vm505_vm4, %v623_v10, %v625_v23  ;;  %v700_v38 = vrot.slane %v694_v30, 2  ;;  %v682_v42 = vrot.slane %v675_v34, 2  ;;  %v695_v43 = vmul.f32 %v692_v28, %v2929_v22 }
  0xf0   : > { %v659_v26 = vrot.slane %v653_v17, 2  ;;  %v720_v47 = vrot.slane %v714_v39, 2  ;;  %v732_v48 = vstv %s2372_s17  ;;  %v715_v52 = vmul.f32 %v712_v37, %v2929_v22  ;;  %s2385_s17 = sld [smem:[#allocation4 + $0x20]] }
  0xf1   : > { %v734_v51 = vmul.f32 %v732_v48, %v2904_v5  ;;  %v733_v54 = vmul.f32 %v732_v48, %v2898_v0  ;;  %v752_v56 = vstv %s2373_s23  ;;  %v735_v1 = vmul.f32 %v732_v48, %v2929_v22  ;;  %s2386_s23 = sld [smem:[#allocation4 + $0x21]] }
  0xf2   : > { %490 = vrot.lane.b32.xlu0 %v486_v24, %s2693_s15  ;;  %479 = vrot.lane.b32.xlu1 %v474_v25, %s2692_s8  ;;  %v674_v24 = vmul.f32 %v672_v20, %v2904_v5  ;;  %v655_v25 = vmul.f32 %v652_v9, %v2929_v22  ;;  %v661_v29 = vsel %vm642_vm5, %v659_v26, %v660_v19  ;;  %v789_v4 = vstv %s2375_s28  ;;  %s2387_s28 = sld [smem:[#allocation4 + $0x22]] }
  0xf3   : > { %v754_v59 = vmul.f32 %v752_v56, %v2904_v5  ;;  %v740_v61 = vrot.slane %v734_v51, 2  ;;  %v739_v3 = vrot.slane %v733_v54, 2  ;;  %v791_v7 = vmul.f32 %v789_v4, %v2904_v5 }
  0xf4   : > { %v662_v33 = vrot.slane %v655_v25, 2  ;;  %v742_v10 = vrot.slane %v735_v1, 2  ;;  %v755_v11 = vmul.f32 %v752_v56, %v2929_v22  ;;  %v809_v16 = vstv %s2376_s6  ;;  %s2389_s6 = sld [smem:[#allocation4 + $0x24]] }
  0xf5   : > { %v760_v6 = vrot.slane %v754_v59, 2  ;;  %v741_v8 = vsel %vm642_vm5, %v739_v3, %v740_v61  ;;  %v797_v15 = vrot.slane %v791_v7, 3  ;;  %v792_v20 = vmul.f32 %v789_v4, %v2929_v22 }
  0xf6   : > { %527 = vrot.lane.b32.xlu0 %v524_v35, %s2688_s3  ;;  %492 = vrot.lane.b32.xlu1 %v487_v32, %s2693_s15  ;;  %v680_v32 = vrot.slane %v674_v24, 2  ;;  %v693_v35 = vmul.f32 %v692_v28, %v2898_v0  ;;  %v663_v41 = vsel %vm642_vm5, %v660_v19, %v662_v33  ;;  %v743_v17 = vsel %vm642_vm5, %v740_v61, %v742_v10 }
  0xf7   : > { %v811_v19 = vmul.f32 %v809_v16, %v2904_v5  ;;  %v810_v23 = vmul.f32 %v809_v16, %v2898_v0  ;;  %v829_v24 = vstv %s2377_s26  ;;  %v812_v30 = vmul.f32 %v809_v16, %v2929_v22  ;;  %s2390_s26 = sld [smem:[#allocation4 + $0x25]] }
  0xf8   : > { %v681_v40 = vsel %vm642_vm5, %v679_v36, %v680_v32  ;;  %v683_v49 = vsel %vm642_vm5, %v680_v32, %v682_v42  ;;  %v831_v26 = vmul.f32 %v829_v24, %v2904_v5  ;;  %v849_v33 = vstv %s2378_s18  ;;  %s2391_s18 = sld [smem:[#allocation4 + $0x26]] }
  0xf9   : > { %v817_v28 = vrot.slane %v811_v19, 3  ;;  %v816_v32 = vrot.slane %v810_v23, 3  ;;  %v832_v39 = vmul.f32 %v829_v24, %v2929_v22  ;;  %v852_v48 = vmul.f32 %v849_v33, %v2929_v22 }
  0xfa   : > { %547 = vrot.lane.b32.xlu0 %v544_v44, %s2689_s16  ;;  %529 = vrot.lane.b32.xlu1 %v526_v45, %s2688_s3  ;;  %v699_v44 = vrot.slane %v693_v35, 2  ;;  %v713_v45 = vmul.f32 %v712_v37, %v2898_v0  ;;  %v837_v34 = vrot.slane %v831_v26, 3  ;;  %v851_v35 = vmul.f32 %v849_v33, %v2904_v5 }
  0xfb   : > { %v818_v36 = vsel %vm779_vm6, %v816_v32, %v817_v28  ;;  %v889_v51 = vstv %s2380_s22  ;;  %v966_v19 = vstv %s2384_s5  ;;  %s2393_s22 = sld [smem:[#allocation4 + $0x28]]  ;;  %s2397_s5 = sld [smem:[#allocation4 + $0x2c]] }
  0xfc   : > { %v701_v46 = vsel %vm642_vm5, %v699_v44, %v700_v38  ;;  %v869_v44 = vstv %s2379_s19  ;;  %v892_v7 = vmul.f32 %v889_v51, %v2929_v22  ;;  %s2392_s19 = sld [smem:[#allocation4 + $0x27]] }
  0xfd   : > { %v872_v59 = vmul.f32 %v869_v44, %v2929_v22 }
  0xfe   : > { %567 = vrot.lane.b32.xlu0 %v564_v53, %s2690_s27  ;;  %549 = vrot.lane.b32.xlu1 %v546_v50, %s2689_s16  ;;  %v702_v50 = vrot.slane %v695_v43, 2  ;;  %v719_v53 = vrot.slane %v713_v45, 2  ;;  %v857_v43 = vrot.slane %v851_v35, 3  ;;  %v969_v35 = vmul.f32 %v966_v19, %v2929_v22 }
 0x100   : > { %v721_v58 = vsel %vm642_vm5, %v719_v53, %v720_v47  ;;  %v703_v60 = vsel %vm642_vm5, %v700_v38, %v702_v50  ;;  %v819_v38 = vrot.slane %v812_v30, 3  ;;  %v870_v50 = vmul.f32 %v869_v44, %v2898_v0 }
 0x101   : > { %v891_v53 = vmul.f32 %v889_v51, %v2904_v5 }
 0x102   : > { %587 = vrot.lane.b32.xlu0 %v584_v63, %s2691_s30  ;;  %569 = vrot.lane.b32.xlu1 %v566_v2, %s2690_s27  ;;  %v722_v63 = vrot.slane %v715_v52, 2  ;;  %v753_v2 = vmul.f32 %v752_v56, %v2898_v0  ;;  %v820_v45 = vsel %vm779_vm6, %v817_v28, %v819_v38  ;;  %v876_v61 = vrot.slane %v870_v50, 3 }
 0x103   : > { %v897_v1 = vrot.slane %v891_v53, 3 }
 0x104   : > { %v723_v9 = vsel %vm642_vm5, %v720_v47, %v722_v63  ;;  %v871_v47 = vmul.f32 %v869_v44, %v2904_v5  ;;  %v926_v63 = vstv %s2382_s24  ;;  %s2394_s24 = sld [smem:[#allocation4 + $0x29]] }
 0x105   : > { %v929_v16 = vmul.f32 %v926_v63, %v2929_v22 }
 0x106   : > { %607 = vrot.lane.b32.xlu0 %v604_v12, %s2692_s8  ;;  %589 = vrot.lane.b32.xlu1 %v586_v13, %s2691_s30  ;;  %v759_v12 = vrot.slane %v753_v2, 2  ;;  %v790_v13 = vmul.f32 %v789_v4, %v2898_v0  ;;  %v877_v56 = vrot.slane %v871_v47, 3  ;;  %v928_v2 = vmul.f32 %v926_v63, %v2904_v5 }
 0x107   : > { %v1026_v47 = vstv %s2387_s28  ;;  %s2400_s28 = sld [smem:[#allocation4 + $0x2f]] }
 0x108   : > { %v761_v14 = vsel %vm642_vm5, %v759_v12, %v760_v6  ;;  %v878_v3 = vsel %vm779_vm6, %v876_v61, %v877_v56  ;;  %v946_v12 = vstv %s2383_s29  ;;  %s2396_s29 = sld [smem:[#allocation4 + $0x2b]] }
 0x109   : > { %v949_v26 = vmul.f32 %v946_v12, %v2929_v22 }
 0x10a   : > { %627 = vrot.lane.b32.xlu0 %v624_v18, %s2693_s15  ;;  %609 = vrot.lane.b32.xlu1 %v606_v21, %s2692_s8  ;;  %v762_v18 = vrot.slane %v755_v11, 2  ;;  %v796_v21 = vrot.slane %v790_v13, 3  ;;  %v934_v11 = vrot.slane %v928_v2, 4  ;;  %v1029_v2 = vmul.f32 %v1026_v47, %v2929_v22 }
 0x10c   : > { %v798_v25 = vsel %vm779_vm6, %v796_v21, %v797_v15  ;;  %v763_v27 = vsel %vm642_vm5, %v760_v6, %v762_v18  ;;  %v879_v6 = vrot.slane %v872_v59, 3  ;;  %v947_v18 = vmul.f32 %v946_v12, %v2898_v0 }
 0x10d   : > { %v968_v21 = vmul.f32 %v966_v19, %v2904_v5 }
 0x10e   : > { %664 = vrot.lane.b32.xlu0 %v661_v29, %s2688_s3  ;;  %629 = vrot.lane.b32.xlu1 %v626_v31, %s2693_s15  ;;  %v799_v29 = vrot.slane %v792_v20, 3  ;;  %v830_v31 = vmul.f32 %v829_v24, %v2898_v0  ;;  %v880_v13 = vsel %vm779_vm6, %v877_v56, %v879_v6  ;;  %v953_v28 = vrot.slane %v947_v18, 4 }
 0x10f   : > { %v974_v30 = vrot.slane %v968_v21, 4 }
 0x110   : > { %v800_v37 = vsel %vm779_vm6, %v797_v15, %v799_v29  ;;  %v948_v15 = vmul.f32 %v946_v12, %v2904_v5  ;;  %v986_v29 = vstv %s2385_s17  ;;  %s2398_s17 = sld [smem:[#allocation4 + $0x2d]] }
 0x111   : > { %v989_v44 = vmul.f32 %v986_v29, %v2929_v22 }
 0x112   : > { %684 = vrot.lane.b32.xlu0 %v681_v40, %s2689_s16  ;;  %666 = vrot.lane.b32.xlu1 %v663_v41, %s2688_s3  ;;  %v836_v40 = vrot.slane %v830_v31, 3  ;;  %v850_v41 = vmul.f32 %v849_v33, %v2898_v0  ;;  %v954_v24 = vrot.slane %v948_v15, 4  ;;  %v988_v31 = vmul.f32 %v986_v29, %v2904_v5 }
 0x114   : > { %v838_v42 = vsel %vm779_vm6, %v836_v40, %v837_v34  ;;  %v955_v32 = vsel %vm916_vm7, %v953_v28, %v954_v24  ;;  %v1006_v40 = vstv %s2386_s23  ;;  %v1122_v28 = vstv %s2392_s19  ;;  %s2399_s23 = sld [smem:[#allocation4 + $0x2e]]  ;;  %s3230_s19 = sld [smem:[#allocation4 + $0x32]] }
 0x115   : > { %v1009_v53 = vmul.f32 %v1006_v40, %v2929_v22 }
 0x116   : > { %704 = vrot.lane.b32.xlu0 %v701_v46, %s2690_s27  ;;  %686 = vrot.lane.b32.xlu1 %v683_v49, %s2689_s16  ;;  %v839_v46 = vrot.slane %v832_v39, 3  ;;  %v856_v49 = vrot.slane %v850_v41, 3  ;;  %v994_v39 = vrot.slane %v988_v31, 4 }
 0x118   : > { %v858_v52 = vsel %vm779_vm6, %v856_v49, %v857_v43  ;;  %v840_v54 = vsel %vm779_vm6, %v837_v34, %v839_v46  ;;  %v956_v34 = vrot.slane %v949_v26, 4  ;;  %v1007_v46 = vmul.f32 %v1006_v40, %v2898_v0 }
 0x119   : > { %v1028_v49 = vmul.f32 %v1026_v47, %v2904_v5 }
 0x11a   : > { %724 = vrot.lane.b32.xlu0 %v721_v58, %s2691_s30  ;;  %706 = vrot.lane.b32.xlu1 %v703_v60, %s2690_s27  ;;  %v859_v58 = vrot.slane %v852_v48, 3  ;;  %v890_v60 = vmul.f32 %v889_v51, %v2898_v0  ;;  %v957_v41 = vsel %vm916_vm7, %v954_v24, %v956_v34  ;;  %v1013_v56 = vrot.slane %v1007_v46, 4 }
 0x11b   : > { %v1034_v59 = vrot.slane %v1028_v49, 4 }
 0x11c   : > { %v860_v4 = vsel %vm779_vm6, %v857_v43, %v859_v58  ;;  %v1008_v43 = vmul.f32 %v1006_v40, %v2904_v5  ;;  %v1062_v58 = vstv %s2389_s6  ;;  %s3177_s6 = sld [smem:[#allocation4]] }
 0x11e   : > { %744 = vrot.lane.b32.xlu0 %v741_v8, %s2692_s8  ;;  %726 = vrot.lane.b32.xlu1 %v723_v9, %s2691_s30  ;;  %v896_v8 = vrot.slane %v890_v60, 3  ;;  %v927_v9 = vmul.f32 %v926_v63, %v2898_v0  ;;  %v1014_v51 = vrot.slane %v1008_v43, 4  ;;  %v1064_v60 = vmul.f32 %v1062_v58, %v2904_v5 }
 0x11f   : > { %v1142_v43 = vstv %s2393_s22  ;;  %s3247_s22 = sld [smem:[#allocation4 + $0x33]] }
 0x120   : > { %v898_v10 = vsel %vm779_vm6, %v896_v8, %v897_v1  ;;  %v1015_v61 = vsel %vm916_vm7, %v1013_v56, %v1014_v51  ;;  %v1070_v8 = vrot.slane %v1064_v60, 5  ;;  %v1144_v46 = vmul.f32 %v1142_v43, %v2904_v5 }
 0x121   : > { %v1143_v49 = vmul.f32 %v1142_v43, %v2898_v0  ;;  %v1145_v60 = vmul.f32 %v1142_v43, %v2929_v22  ;;  %v1259_v43 = vstv %s2399_s23  ;;  %s3289_s23 = sld [smem:[#allocation4 + $0x36]] }
 0x122   : > { %764 = vrot.lane.b32.xlu0 %v761_v14, %s2693_s15  ;;  %746 = vrot.lane.b32.xlu1 %v743_v17, %s2692_s8  ;;  %v899_v14 = vrot.slane %v892_v7, 3  ;;  %v933_v17 = vrot.slane %v927_v9, 4  ;;  %v1082_v9 = vstv %s2390_s26  ;;  %s2401_s26 = sld [smem:[#allocation4 + $0x30]] }
 0x123   : > { %v1084_v12 = vmul.f32 %v1082_v9, %v2904_v5  ;;  %v1083_v15 = vmul.f32 %v1082_v9, %v2898_v0 }
 0x124   : > { %v935_v20 = vsel %vm916_vm7, %v933_v17, %v934_v11  ;;  %v900_v23 = vsel %vm779_vm6, %v897_v1, %v899_v14  ;;  %v1016_v1 = vrot.slane %v1009_v53, 4 }
 0x126   : > { %801 = vrot.lane.b32.xlu0 %v798_v25, %s2688_s3  ;;  %766 = vrot.lane.b32.xlu1 %v763_v27, %s2693_s15  ;;  %v936_v25 = vrot.slane %v929_v16, 4  ;;  %v967_v27 = vmul.f32 %v966_v19, %v2898_v0  ;;  %v1102_v16 = vstv %s2391_s18  ;;  %s3202_s18 = sld [smem:[#allocation4 + $0x7]] }
 0x127   : > { %v1103_v26 = vmul.f32 %v1102_v16, %v2898_v0 }
 0x128   : > { %v937_v33 = vsel %vm916_vm7, %v934_v11, %v936_v25  ;;  %v1036_v11 = vrot.slane %v1029_v2, 4  ;;  %v1085_v25 = vmul.f32 %v1082_v9, %v2929_v22 }
 0x12a   : > { %821 = vrot.lane.b32.xlu0 %v818_v36, %s2689_s16  ;;  %803 = vrot.lane.b32.xlu1 %v800_v37, %s2688_s3  ;;  %v973_v36 = vrot.slane %v967_v27, 4  ;;  %v987_v37 = vmul.f32 %v986_v29, %v2898_v0  ;;  %v1037_v21 = vsel %vm916_vm7, %v1034_v59, %v1036_v11  ;;  %v1089_v27 = vrot.slane %v1083_v15, 5 }
 0x12c   : > { %v975_v38 = vsel %vm916_vm7, %v973_v36, %v974_v30  ;;  %v1105_v36 = vmul.f32 %v1102_v16, %v2929_v22 }
 0x12e   : > { %841 = vrot.lane.b32.xlu0 %v838_v42, %s2690_s27  ;;  %823 = vrot.lane.b32.xlu1 %v820_v45, %s2689_s16  ;;  %v976_v42 = vrot.slane %v969_v35, 4  ;;  %v993_v45 = vrot.slane %v987_v37, 4  ;;  %v1092_v35 = vrot.slane %v1085_v25, 5  ;;  %v1109_v37 = vrot.slane %v1103_v26, 5 }
 0x130   : > { %v995_v48 = vsel %vm916_vm7, %v993_v45, %v994_v39  ;;  %v977_v50 = vsel %vm916_vm7, %v974_v30, %v976_v42  ;;  %v1112_v45 = vrot.slane %v1105_v36, 5 }
 0x132   : > { %861 = vrot.lane.b32.xlu0 %v858_v52, %s2691_s30  ;;  %843 = vrot.lane.b32.xlu1 %v840_v54, %s2690_s27  ;;  %v996_v52 = vrot.slane %v989_v44, 4  ;;  %v1027_v54 = vmul.f32 %v1026_v47, %v2898_v0  ;;  %v1125_v47 = vmul.f32 %v1122_v28, %v2929_v22 }
 0x134   : > { %v997_v63 = vsel %vm916_vm7, %v994_v39, %v996_v52 }
 0x136   : > { %881 = vrot.lane.b32.xlu0 %v878_v3, %s2692_s8  ;;  %863 = vrot.lane.b32.xlu1 %v860_v4, %s2691_s30  ;;  %v1033_v3 = vrot.slane %v1027_v54, 4  ;;  %v1063_v4 = vmul.f32 %v1062_v58, %v2898_v0 }
 0x138   : > { %v1035_v7 = vsel %vm916_vm7, %v1033_v3, %v1034_v59  ;;  %v1069_v14 = vrot.slane %v1063_v4, 5  ;;  %v1132_v59 = vrot.slane %v1125_v47, 5  ;;  %v1261_v47 = vmul.f32 %v1259_v43, %v2904_v5 }
 0x13a   : > { %901 = vrot.lane.b32.xlu0 %v898_v10, %s2693_s15  ;;  %883 = vrot.lane.b32.xlu1 %v880_v13, %s2692_s8  ;;  %v1017_v10 = vsel %vm916_vm7, %v1014_v51, %v1016_v1  ;;  %v1065_v13 = vmul.f32 %v1062_v58, %v2929_v22  ;;  %v1071_v19 = vsel %vm264_vm1, %v1069_v14, %v1070_v8  ;;  %v1150_v58 = vrot.slane %v1144_v46, 5 }
 0x13b   : > { %v1199_v1 = vstv %s2396_s29  ;;  %s2367_s29 = sld [smem:[#allocation4 + $0xe]] }
 0x13c   : > { %v1072_v24 = vrot.slane %v1065_v13, 5  ;;  %v1200_v13 = vmul.f32 %v1199_v1, %v2898_v0  ;;  %v1202_v25 = vmul.f32 %v1199_v1, %v2929_v22 }
 0x13e   : > { %938 = vrot.lane.b32.xlu0 %v935_v20, %s2688_s3  ;;  %903 = vrot.lane.b32.xlu1 %v900_v23, %s2693_s15  ;;  %v1104_v20 = vmul.f32 %v1102_v16, %v2904_v5  ;;  %v1090_v23 = vrot.slane %v1084_v12, 5  ;;  %v1073_v34 = vsel %vm264_vm1, %v1070_v8, %v1072_v24  ;;  %v1206_v26 = vrot.slane %v1200_v13, 6 }
 0x140   : > { %v1110_v31 = vrot.slane %v1104_v20, 5  ;;  %v1093_v44 = vsel %vm264_vm1, %v1090_v23, %v1092_v35  ;;  %v1219_v20 = vstv %s2397_s5  ;;  %s3278_s5 = sld [smem:[#allocation4 + $0x35]] }
 0x141   : > { %v1221_v24 = vmul.f32 %v1219_v20, %v2904_v5 }
 0x142   : > { %958 = vrot.lane.b32.xlu0 %v955_v32, %s2689_s16  ;;  %940 = vrot.lane.b32.xlu1 %v937_v33, %s2688_s3  ;;  %v1124_v32 = vmul.f32 %v1122_v28, %v2904_v5  ;;  %v1091_v33 = vsel %vm264_vm1, %v1089_v27, %v1090_v23  ;;  %v1113_v56 = vsel %vm264_vm1, %v1110_v31, %v1112_v45 }
 0x143   : > { %v1220_v27 = vmul.f32 %v1219_v20, %v2898_v0  ;;  %v1227_v36 = vrot.slane %v1221_v24, 6 }
 0x144   : > { %v1130_v42 = vrot.slane %v1124_v32, 5 }
 0x146   : > { %978 = vrot.lane.b32.xlu0 %v975_v38, %s2690_s27  ;;  %960 = vrot.lane.b32.xlu1 %v957_v41, %s2689_s16  ;;  %v1123_v38 = vmul.f32 %v1122_v28, %v2898_v0  ;;  %v1111_v41 = vsel %vm264_vm1, %v1109_v37, %v1110_v31  ;;  %v1133_v9 = vsel %vm264_vm1, %v1130_v42, %v1132_v59  ;;  %v1239_v28 = vstv %s2398_s17  ;;  %s2410_s17 = sld [smem:[#allocation4 + $0x39]] }
 0x147   : > { %v1209_v37 = vrot.slane %v1202_v25, 6  ;;  %v415_v59 = vstv %s3177_s6  ;;  %s3304_s6 = sld [smem:[#allocation4 + $0x3a]] }
 0x14a   : > { %998 = vrot.lane.b32.xlu0 %v995_v48, %s2691_s30  ;;  %980 = vrot.lane.b32.xlu1 %v977_v50, %s2690_s27  ;;  %v1129_v48 = vrot.slane %v1123_v38, 5  ;;  %v1162_v50 = vstv %s2394_s24  ;;  %v1222_v38 = vmul.f32 %v1219_v20, %v2929_v22  ;;  %s3264_s24 = sld [smem:[#allocation4 + $0x34]] }
 0x14b   : > { %v1164_v54 = vmul.f32 %v1162_v50, %v2904_v5  ;;  %v1165_v11 = vmul.f32 %v1162_v50, %v2929_v22 }
 0x14c   : > { %v1131_v53 = vsel %vm264_vm1, %v1129_v48, %v1130_v42  ;;  %v1240_v42 = vmul.f32 %v1239_v28, %v2898_v0 }
 0x14d   : > { %v1170_v4 = vrot.slane %v1164_v54, 5  ;;  %v1172_v23 = vrot.slane %v1165_v11, 5  ;;  %v1260_v54 = vmul.f32 %v1259_v43, %v2898_v0 }
 0x14e   : > { %1018 = vrot.lane.b32.xlu0 %v1015_v61, %s2692_s8  ;;  %1000 = vrot.lane.b32.xlu1 %v997_v63, %s2691_s30  ;;  %v1163_v61 = vmul.f32 %v1162_v50, %v2898_v0  ;;  %v1149_v63 = vrot.slane %v1143_v49, 5  ;;  %v1229_v50 = vrot.slane %v1222_v38, 6 }
 0x14f   : > { %v1173_v35 = vsel %vm264_vm1, %v1170_v4, %v1172_v23  ;;  %v1299_v23 = vstv %s2401_s26  ;;  %s3306_s26 = sld [smem:[#allocation4 + $0x3b]] }
 0x150   : > { %v3102_v6 = vpop.permute.xlu0 %425  ;;  %v1151_v8 = vsel %vm264_vm1, %v1149_v63, %v1150_v58  ;;  %v1169_v12 = vrot.slane %v1163_v61, 5  ;;  %v1267_v63 = vrot.slane %v1261_v47, 6 }
 0x152   : > { %1038 = vrot.lane.b32.xlu0 %v1035_v7, %s2693_s15  ;;  %1020 = vrot.lane.b32.xlu1 %v1017_v10, %s2692_s8  ;;  %v1201_v7 = vmul.f32 %v1199_v1, %v2904_v5  ;;  %v1152_v10 = vrot.slane %v1145_v60, 5  ;;  %v1171_v16 = vsel %vm264_vm1, %v1169_v12, %v1170_v4  ;;  %v1262_v4 = vmul.f32 %v1259_v43, %v2929_v22 }
 0x153   : > { %v416_v12 = vmul.f32 %v415_v59, %v2898_v0 }
 0x154   : > { %v3111_v17 = vpop.permute.xlu1 %427  ;;  %v3113_v18 = vpop.permute.xlu0 %438 }
 0x155   : > { %v431_v24 = vadd.f32 %v3102_v6, %v416_v12  ;;  %v498_v6 = vstv %s3202_s18  ;;  %s3328_s18 = sld [smem:[#allocation4 + $0x3c]] }
 0x156   : > { %1074 = vrot.lane.b32.xlu0 %v1071_v19, %s2688_s3  ;;  %1040 = vrot.lane.b32.xlu1 %v1037_v21, %s2693_s15  ;;  %v1207_v19 = vrot.slane %v1201_v7, 6  ;;  %v1153_v21 = vsel %vm264_vm1, %v1150_v58, %v1152_v10  ;;  %v1279_v58 = vstv %s2400_s28  ;;  %v1266_v10 = vrot.slane %v1260_v54, 6  ;;  %s3300_s28 = sld [smem:[#allocation4 + $0x37]] }
 0x157   : > { %v1281_v1 = vmul.f32 %v1279_v58, %v2904_v5  ;;  %v1280_v11 = vmul.f32 %v1279_v58, %v2898_v0 }
 0x158   : > { %v3122_v29 = vpop.permute.xlu1 %440  ;;  %v3124_v30 = vpop.permute.xlu0 %451  ;;  %v1210_v49 = vsel %vm1189_vm8, %v1207_v19, %v1209_v37 }
 0x159   : > { %v1287_v20 = vrot.slane %v1281_v1, 6  ;;  %v501_v1 = vmul.f32 %v498_v6, %v2929_v22 }
 0x15a   : > { %1094 = vrot.lane.b32.xlu0 %v1091_v33, %s2689_s16  ;;  %1076 = vrot.lane.b32.xlu1 %v1073_v34, %s2688_s3  ;;  %v1208_v33 = vsel %vm1189_vm8, %v1206_v26, %v1207_v19  ;;  %v1241_v34 = vmul.f32 %v1239_v28, %v2904_v5  ;;  %v1268_v19 = vsel %vm1189_vm8, %v1266_v10, %v1267_v63 }
 0x15b   : > { %v1301_v26 = vmul.f32 %v1299_v23, %v2904_v5 }
 0x15c   : > { %v3133_v39 = vpop.permute.xlu1 %453  ;;  %v3135_v40 = vpop.permute.xlu0 %464  ;;  %v1247_v46 = vrot.slane %v1241_v34, 6  ;;  %v444_v34 = vadd.f32 %v3113_v18, %v431_v24 }
 0x15d   : > { %v1307_v18 = vrot.slane %v1301_v26, 6 }
 0x15e   : > { %1114 = vrot.lane.b32.xlu0 %v1111_v41, %s2690_s27  ;;  %1096 = vrot.lane.b32.xlu1 %v1093_v44, %s2689_s16  ;;  %v1226_v41 = vrot.slane %v1220_v27, 6  ;;  %v1282_v27 = vmul.f32 %v1279_v58, %v2929_v22 }
 0x160   : > { %v3144_v51 = vpop.permute.xlu1 %466  ;;  %v3146_v52 = vpop.permute.xlu0 %477  ;;  %v1228_v48 = vsel %vm1189_vm8, %v1226_v41, %v1227_v36  ;;  %v1289_v47 = vrot.slane %v1282_v27, 6 }
 0x162   : > { %1134 = vrot.lane.b32.xlu0 %v1131_v53, %s2691_s30  ;;  %1116 = vrot.lane.b32.xlu1 %v1113_v56, %s2690_s27  ;;  %v1242_v53 = vmul.f32 %v1239_v28, %v2929_v22  ;;  %v1246_v56 = vrot.slane %v1240_v42, 6  ;;  %v1286_v28 = vrot.slane %v1280_v11, 6  ;;  %v1302_v42 = vmul.f32 %v1299_v23, %v2929_v22 }
 0x164   : > { %v3155_v2 = vpop.permute.xlu1 %479  ;;  %v3157_v3 = vpop.permute.xlu0 %490  ;;  %v1248_v7 = vsel %vm1189_vm8, %v1246_v56, %v1247_v46  ;;  %v1288_v38 = vsel %vm1189_vm8, %v1286_v28, %v1287_v20  ;;  %v1309_v56 = vrot.slane %v1302_v42, 6  ;;  %v1350_v28 = vstv %s3264_s24  ;;  %s3362_s24 = sld [smem:[#allocation4 + $0x3e]] }
 0x165   : > { %v635_v42 = vstv %s2367_s29  ;;  %s3397_s29 = sld [smem:[#allocation4 + $0x40]] }
 0x166   : > { %1154 = vrot.lane.b32.xlu0 %v1151_v8, %s2692_s8  ;;  %1136 = vrot.lane.b32.xlu1 %v1133_v9, %s2691_s30  ;;  %v1230_v8 = vsel %vm1189_vm8, %v1227_v36, %v1229_v50  ;;  %v1249_v9 = vrot.slane %v1242_v53, 6  ;;  %v1310_v12 = vsel %vm1189_vm8, %v1307_v18, %v1309_v56 }
 0x168   : > { %v3166_v14 = vpop.permute.xlu1 %492  ;;  %v3168_v15 = vpop.permute.xlu0 %527  ;;  %v1250_v25 = vsel %vm1189_vm8, %v1247_v46, %v1249_v9  ;;  %v457_v46 = vadd.f32 %v3124_v30, %v444_v34 }
 0x16a   : > { %1174 = vrot.lane.b32.xlu0 %v1171_v16, %s2693_s15  ;;  %1156 = vrot.lane.b32.xlu1 %v1153_v21, %s2692_s8  ;;  %v1269_v21 = vrot.slane %v1262_v4, 6  ;;  %v470_v50 = vadd.f32 %v3135_v40, %v457_v46  ;;  %v637_v46 = vmul.f32 %v635_v42, %v2904_v5 }
 0x16c   : > { %v3179_v31 = vpop.permute.xlu1 %529  ;;  %v3181_v32 = vpop.permute.xlu0 %547  ;;  %v1270_v41 = vsel %vm1189_vm8, %v1267_v63, %v1269_v21  ;;  %v1337_v21 = vstv %s3247_s22  ;;  %s3360_s22 = sld [smem:[#allocation4 + $0x3d]] }
 0x16d   : > { %v1338_v24 = vmul.f32 %v1337_v21, %v2886_v55 }
 0x16e   : > { %1211 = vrot.lane.b32.xlu0 %v1208_v33, %s2688_s3  ;;  %1176 = vrot.lane.b32.xlu1 %v1173_v35, %s2693_s15  ;;  %v417_v33 = vmul.f32 %v415_v59, %v2904_v5  ;;  %v1300_v35 = vmul.f32 %v1299_v23, %v2898_v0  ;;  %v483_v59 = vadd.f32 %v3146_v52, %v470_v50 }
 0x170   : > { %v3190_v44 = vpop.permute.xlu1 %549  ;;  %v3192_v45 = vpop.permute.xlu0 %567  ;;  %v432_v43 = vadd.f32 %v3111_v17, %v417_v33  ;;  %v1306_v53 = vrot.slane %v1300_v35, 6  ;;  %v499_v17 = vmul.f32 %v498_v6, %v2898_v0  ;;  %v1351_v35 = vmul.f32 %v1350_v28, %v2886_v55 }
 0x172   : > { %1231 = vrot.lane.b32.xlu0 %v1228_v48, %s2689_s16  ;;  %1213 = vrot.lane.b32.xlu1 %v1210_v49, %s2688_s3  ;;  %v500_v48 = vmul.f32 %v498_v6, %v2904_v5  ;;  %v445_v49 = vadd.f32 %v3122_v29, %v432_v43  ;;  %v1308_v63 = vsel %vm1189_vm8, %v1306_v53, %v1307_v18  ;;  %v1363_v43 = vstv %s3278_s5  ;;  %s3408_s5 = sld [smem:[#allocation4 + $0x41]] }
 0x173   : > { %v1290_v29 = vsel %vm1189_vm8, %v1287_v20, %v1289_v47  ;;  %v1339_v6 = vmul.f32 %v1337_v21, %v2890_v57  ;;  %v1364_v47 = vmul.f32 %v1363_v43, %v2886_v55  ;;  %v1418_v53 = vstv %s2410_s17  ;;  %s3417_s17 = sld [smem:[#allocation4 + $0x1c]] }
 0x174   : > { %v3204_v60 = vpop.permute.xlu1 %569  ;;  %v3206_v61 = vpop.permute.xlu0 %587  ;;  %v458_v58 = vadd.f32 %v3133_v39, %v445_v49  ;;  %v507_v40 = vrot.slane %v500_v48, 1  ;;  %v506_v39 = vrot.slane %v499_v17, 1  ;;  %v1352_v48 = vmul.f32 %v1350_v28, %v2890_v57 }
 0x175   : > { %v1421_v21 = vmul.f32 %v1418_v53, %v2894_v62 }
 0x176   : > { %1251 = vrot.lane.b32.xlu0 %v1248_v7, %s2690_s27  ;;  %1233 = vrot.lane.b32.xlu1 %v1230_v8, %s2689_s16  ;;  %v471_v4 = vadd.f32 %v3144_v51, %v458_v58  ;;  %v496_v7 = vadd.f32 %v3157_v3, %v483_v59  ;;  %v1324_v8 = vstv %s3230_s19  ;;  %v509_v51 = vrot.slane %v501_v1, 1  ;;  %s3345_s19 = sld [smem:[#allocation4 + $0x15]] }
 0x177   : > { %v1325_v10 = vmul.f32 %v1324_v8, %v2886_v55  ;;  %v638_v58 = vmul.f32 %v635_v42, %v2929_v22 }
 0x178   : > { %v3216_v13 = vpop.permute.xlu1 %589  ;;  %v3218_v16 = vpop.permute.xlu0 %607  ;;  %v484_v11 = vadd.f32 %v3155_v2, %v471_v4  ;;  %v510_v26 = vsel %vm505_vm4, %v507_v40, %v509_v51  ;;  %v1389_v4 = vstv %s3300_s28  ;;  %s3437_s28 = sld [smem:[#allocation4 + $0x43]] }
 0x17a   : > { %1271 = vrot.lane.b32.xlu0 %v1268_v19, %s2691_s30  ;;  %1253 = vrot.lane.b32.xlu1 %v1250_v25, %s2690_s27  ;;  %v508_v19 = vsel %vm505_vm4, %v506_v39, %v507_v40  ;;  %v497_v20 = vadd.f32 %v3166_v14, %v484_v11  ;;  %v1326_v25 = vmul.f32 %v1324_v8, %v2890_v57  ;;  %v1438_v8 = vstv %s3304_s6  ;;  %s3454_s6 = sld [smem:[#allocation4 + $0x44]] }
 0x17b   : > { %v513_v3 = vadd.f32 %v508_v19, %v496_v7  ;;  %v1419_v40 = vmul.f32 %v1418_v53, %v2886_v55  ;;  %v1458_v39 = vstv %s3306_s26  ;;  %v646_v11 = vrot.slane %v638_v58, 2  ;;  %s3475_s26 = sld [smem:[#allocation4 + $0x45]] }
 0x17c   : > { %v3233_v36 = vpop.permute.xlu1 %609  ;;  %v3235_v37 = vpop.permute.xlu0 %627  ;;  %v514_v14 = vadd.f32 %v510_v26, %v497_v20  ;;  %v1440_v26 = vmul.f32 %v1438_v8, %v2890_v57  ;;  %v1441_v28 = vmul.f32 %v1438_v8, %v2894_v62 }
 0x17d   : > { %v533_v27 = vadd.f32 %v3168_v15, %v513_v3  ;;  %v1425_v3 = vrot.slane %v1419_v40, 1 }
 0x17e   : > { %1291 = vrot.lane.b32.xlu0 %v1288_v38, %s2692_s8  ;;  %1273 = vrot.lane.b32.xlu1 %v1270_v41, %s2691_s30  ;;  %v534_v15 = vadd.f32 %v3179_v31, %v514_v14  ;;  %v636_v31 = vmul.f32 %v635_v42, %v2898_v0  ;;  %v1460_v42 = vmul.f32 %v1458_v39, %v2890_v57 }
 0x17f   : > { %v553_v38 = vadd.f32 %v3181_v32, %v533_v27  ;;  %v1391_v27 = vmul.f32 %v1389_v4, %v2890_v57 }
 0x180   : > { %v3250_v54 = vpop.permute.xlu1 %629  ;;  %v3252_v30 = vpop.permute.xlu0 %664  ;;  %v554_v49 = vadd.f32 %v3190_v44, %v534_v15  ;;  %v643_v7 = vrot.slane %v636_v31, 2  ;;  %v1428_v15 = vrot.slane %v1421_v21, 1  ;;  %v1461_v31 = vmul.f32 %v1458_v39, %v2894_v62 }
 0x181   : > { %v573_v41 = vadd.f32 %v3192_v45, %v553_v38  ;;  %v1376_v45 = vstv %s3289_s23  ;;  %s3422_s23 = sld [smem:[#allocation4 + $0x42]] }
 0x182   : > { %1311 = vrot.lane.b32.xlu0 %v1308_v63, %s2693_s15  ;;  %1293 = vrot.lane.b32.xlu1 %v1290_v29, %s2692_s8  ;;  %v574_v17 = vadd.f32 %v3204_v60, %v554_v49  ;;  %v1377_v44 = vmul.f32 %v1376_v45, %v2886_v55  ;;  %v1365_v29 = vmul.f32 %v1363_v43, %v2890_v57 }
 0x183   : > { %v593_v50 = vadd.f32 %v3206_v61, %v573_v41  ;;  %v644_v61 = vrot.slane %v637_v46, 2  ;;  %v1420_v60 = vmul.f32 %v1418_v53, %v2890_v57  ;;  %v1378_v19 = vmul.f32 %v1376_v45, %v2890_v57 }
 0x184   : > { %v3266_v52 = vpop.permute.xlu1 %666  ;;  %v3268_v9 = vpop.permute.xlu0 %684  ;;  %v1459_v41 = vmul.f32 %v1458_v39, %v2886_v55  ;;  %v1448_v53 = vrot.slane %v1441_v28, 1 }
 0x185   : > { %v613_v56 = vadd.f32 %v3218_v16, %v593_v50  ;;  %v594_v16 = vadd.f32 %v3216_v13, %v574_v17  ;;  %v645_v13 = vsel %vm642_vm5, %v643_v7, %v644_v61  ;;  %v1426_v20 = vrot.slane %v1420_v60, 1 }
 0x186   : > { %1329 = vrot.lane.b32.xlu0 %v1325_v10, %s2688_s3  ;;  %1313 = vrot.lane.b32.xlu1 %v1310_v12, %s2693_s15  ;;  %v1390_v12 = vmul.f32 %v1389_v4, %v2886_v55  ;;  %v647_v14 = vsel %vm642_vm5, %v644_v61, %v646_v11  ;;  %v772_v50 = vstv %s3345_s19  ;;  %v1518_v4 = vstv %s3362_s24  ;;  %s3511_s19 = sld [smem:[#allocation4 + $0x23]]  ;;  %s3536_s24 = sld [smem:[#allocation4 + $0x49]] }
 0x187   : > { %v633_v1 = vadd.f32 %v3235_v37, %v613_v56  ;;  %v614_v10 = vadd.f32 %v3233_v36, %v594_v16  ;;  %v1427_v38 = vsel %vm505_vm4, %v1425_v3, %v1426_v20  ;;  %v1465_v56 = vrot.slane %v1459_v41, 1 }
 0x188   : > { %v3280_v23 = vpop.permute.xlu1 %686  ;;  %v3282_v2 = vpop.permute.xlu0 %704  ;;  %v773_v60 = vmul.f32 %v772_v50, %v2898_v0  ;;  %v774_v16 = vmul.f32 %v772_v50, %v2904_v5  ;;  %v1520_v41 = vmul.f32 %v1518_v4, %v2890_v57 }
 0x189   : > { %v634_v36 = vadd.f32 %v3250_v54, %v614_v10  ;;  %v1478_v54 = vstv %s3328_s18  ;;  %s3498_s18 = sld [smem:[#allocation4 + $0x47]] }
 0x18a   : > { %1342 = vrot.lane.b32.xlu0 %v1338_v24, %s2689_s16  ;;  %1331 = vrot.lane.b32.xlu1 %v1326_v25, %s2688_s3  ;;  %v650_v24 = vadd.f32 %v645_v13, %v633_v1  ;;  %v1439_v25 = vmul.f32 %v1438_v8, %v2886_v55  ;;  %v1479_v58 = vmul.f32 %v1478_v54, %v2886_v55  ;;  %v1498_v1 = vstv %s3360_s22  ;;  %s3516_s22 = sld [smem:[#allocation4 + $0x48]] }
 0x18b   : > { %v651_v43 = vadd.f32 %v647_v14, %v634_v36  ;;  %v1468_v8 = vrot.slane %v1461_v31, 1  ;;  %v1481_v13 = vmul.f32 %v1478_v54, %v2894_v62  ;;  %v781_v21 = vrot.slane %v774_v16, 3 }
 0x18c   : > { %v3293_v33 = vpop.permute.xlu1 %706  ;;  %v3295_v34 = vpop.permute.xlu0 %724  ;;  %v670_v46 = vadd.f32 %v3252_v30, %v650_v24  ;;  %v1466_v30 = vrot.slane %v1460_v42, 1  ;;  %v775_v24 = vmul.f32 %v772_v50, %v2929_v22 }
 0x18d   : > { %v671_v61 = vadd.f32 %v3266_v52, %v651_v43  ;;  %v1488_v28 = vrot.slane %v1481_v13, 1 }
 0x18e   : > { %1355 = vrot.lane.b32.xlu0 %v1351_v35, %s2690_s27  ;;  %1344 = vrot.lane.b32.xlu1 %v1339_v6, %s2689_s16  ;;  %v690_v49 = vadd.f32 %v3268_v9, %v670_v46  ;;  %v1467_v11 = vsel %vm505_vm4, %v1465_v56, %v1466_v30  ;;  %v783_v43 = vrot.slane %v775_v24, 3  ;;  %v1554_v46 = vstv %s3397_s29  ;;  %s3538_s29 = sld [smem:[#allocation4 + $0x4a]] }
 0x18f   : > { %v691_v52 = vadd.f32 %v3280_v23, %v671_v61  ;;  %v1555_v61 = vmul.f32 %v1554_v46, %v2886_v55 }
 0x190   : > { %v3312_v32 = vpop.permute.xlu1 %726  ;;  %v3314_v18 = vpop.permute.xlu0 %744  ;;  %v710_v9 = vadd.f32 %v3282_v2, %v690_v49 }
 0x191   : > { %v711_v3 = vadd.f32 %v3293_v33, %v691_v52 }
 0x192   : > { %1368 = vrot.lane.b32.xlu0 %v1364_v47, %s2691_s30  ;;  %1357 = vrot.lane.b32.xlu1 %v1352_v48, %s2690_s27  ;;  %v1445_v47 = vrot.slane %v1439_v25, 1  ;;  %v1446_v48 = vrot.slane %v1440_v26, 1  ;;  %v730_v2 = vadd.f32 %v3295_v34, %v710_v9  ;;  %v1499_v34 = vmul.f32 %v1498_v1, %v2886_v55 }
 0x193   : > { %v731_v36 = vadd.f32 %v3312_v32, %v711_v3  ;;  %v780_v25 = vrot.slane %v773_v60, 3  ;;  %v1556_v9 = vmul.f32 %v1554_v46, %v2890_v57 }
 0x194   : > { %v3330_v59 = vpop.permute.xlu1 %746  ;;  %v3332_v63 = vpop.permute.xlu0 %764  ;;  %v1447_v40 = vsel %vm505_vm4, %v1445_v47, %v1446_v48  ;;  %v1449_v7 = vsel %vm505_vm4, %v1446_v48, %v1448_v53  ;;  %v750_v23 = vadd.f32 %v3314_v18, %v730_v2  ;;  %v1469_v18 = vsel %vm505_vm4, %v1466_v30, %v1468_v8 }
 0x195   : > { %v751_v32 = vadd.f32 %v3330_v59, %v731_v36  ;;  %v782_v42 = vsel %vm779_vm6, %v780_v25, %v781_v21  ;;  %v1521_v59 = vmul.f32 %v1518_v4, %v2894_v62  ;;  %v1574_v30 = vstv %s3408_s5  ;;  %s3563_s5 = sld [smem:[#allocation4 + $0x2a]] }
 0x196   : > { %1381 = vrot.lane.b32.xlu0 %v1377_v44, %s2692_s8  ;;  %1370 = vrot.lane.b32.xlu1 %v1365_v29, %s2691_s30  ;;  %v1480_v44 = vmul.f32 %v1478_v54, %v2890_v57  ;;  %v1429_v29 = vsel %vm505_vm4, %v1426_v20, %v1428_v15  ;;  %v1500_v20 = vmul.f32 %v1498_v1, %v2890_v57  ;;  %v1505_v15 = vrot.slane %v1499_v34, 1 }
 0x197   : > { %v770_v33 = vadd.f32 %v3332_v63, %v750_v23  ;;  %v1501_v54 = vmul.f32 %v1498_v1, %v2894_v62  ;;  %v1528_v16 = vrot.slane %v1521_v59, 1  ;;  %v1594_v1 = vstv %s3422_s23  ;;  %s3570_s23 = sld [smem:[#allocation4 + $0x4c]] }
 0x198   : > { %v3350_v37 = vpop.permute.xlu1 %766  ;;  %v3352_v51 = vpop.permute.xlu0 %801  ;;  %v1506_v63 = vrot.slane %v1500_v20, 1  ;;  %v1575_v8 = vmul.f32 %v1574_v30, %v2886_v55  ;;  %v1562_v13 = vrot.slane %v1556_v9, 2  ;;  %v1614_v34 = vstv %s3437_s28  ;;  %s3578_s28 = sld [smem:[#allocation4 + $0x4e]] }
 0x199   : > { %v787_v47 = vadd.f32 %v782_v42, %v770_v33  ;;  %v771_v48 = vadd.f32 %v3350_v37, %v751_v32  ;;  %v1508_v31 = vrot.slane %v1501_v54, 1  ;;  %v784_v37 = vsel %vm779_vm6, %v781_v21, %v783_v43 }
 0x19a   : > { %1394 = vrot.lane.b32.xlu0 %v1390_v12, %s2693_s15  ;;  %1383 = vrot.lane.b32.xlu1 %v1378_v19, %s2692_s8  ;;  %v1485_v12 = vrot.slane %v1479_v58, 1  ;;  %v1486_v19 = vrot.slane %v1480_v44, 1  ;;  %v1507_v58 = vsel %vm505_vm4, %v1505_v15, %v1506_v63  ;;  %v1526_v44 = vrot.slane %v1520_v41, 1 }
 0x19b   : > { %v807_v60 = vadd.f32 %v3352_v51, %v787_v47  ;;  %v1509_v2 = vsel %vm505_vm4, %v1506_v63, %v1508_v31  ;;  %v1561_v51 = vrot.slane %v1555_v61, 2  ;;  %v1577_v24 = vmul.f32 %v1574_v30, %v2894_v62 }
 0x19c   : > { %v3368_v35 = vpop.permute.xlu1 %803  ;;  %v3370_v6 = vpop.permute.xlu0 %821  ;;  %v1489_v53 = vsel %vm505_vm4, %v1486_v19, %v1488_v28  ;;  %v1529_v21 = vsel %vm505_vm4, %v1526_v44, %v1528_v16  ;;  %v1595_v28 = vmul.f32 %v1594_v1, %v2886_v55  ;;  %v1634_v41 = vstv %s3454_s6  ;;  %s3591_s6 = sld [smem:[#allocation4 + $0x4f]] }
 0x19d   : > { %v1584_v43 = vrot.slane %v1577_v24, 2  ;;  %v1616_v31 = vmul.f32 %v1614_v34, %v2890_v57  ;;  %v1617_v16 = vmul.f32 %v1614_v34, %v2894_v62 }
 0x19e   : > { %1430 = vrot.lane.b32.xlu0 %v1427_v38, %s2688_s3  ;;  %1396 = vrot.lane.b32.xlu1 %v1391_v27, %s2693_s15  ;;  %v1487_v27 = vsel %vm505_vm4, %v1485_v12, %v1486_v19  ;;  %v1519_v38 = vmul.f32 %v1518_v4, %v2886_v55  ;;  %v827_v12 = vadd.f32 %v3370_v6, %v807_v60 }
 0x19f   : > { %v1622_v60 = vrot.slane %v1616_v31, 2 }
 0x1a0   : > { %v3381_v45 = vpop.permute.xlu1 %823  ;;  %v3383_v17 = vpop.permute.xlu0 %841  ;;  %v1525_v56 = vrot.slane %v1519_v38, 1  ;;  %v1596_v38 = vmul.f32 %v1594_v1, %v2890_v57 }
 0x1a1   : > { %v847_v6 = vadd.f32 %v3383_v17, %v827_v12  ;;  %v1563_v17 = vsel %vm642_vm5, %v1561_v51, %v1562_v13  ;;  %v1690_v51 = vstv %s3498_s18  ;;  %s3619_s18 = sld [smem:[#allocation4 + $0x51]] }
 0x1a2   : > { %1432 = vrot.lane.b32.xlu1 %v1429_v29, %s2688_s3  ;;  %1450 = vrot.lane.b32.xlu0 %v1447_v40, %s2689_s16  ;;  %v909_v29 = vstv %s3417_s17  ;;  %v788_v40 = vadd.f32 %v784_v37, %v771_v48  ;;  %v1527_v19 = vsel %vm505_vm4, %v1525_v56, %v1526_v44  ;;  %v1601_v56 = vrot.slane %v1595_v28, 2  ;;  %s3565_s17 = sld [smem:[#allocation4 + $0x4b]] }
 0x1a3   : > { %v910_v3 = vmul.f32 %v909_v29, %v2898_v0  ;;  %v3470_v23 = vmul.f32 %v909_v29, %v2904_v5  ;;  %v912_v63 = vmul.f32 %v909_v29, %v2929_v22  ;;  %v1654_v44 = vstv %s3475_s26  ;;  %s3610_s26 = sld [smem:[#allocation4 + $0x50]] }
 0x1a4   : > { %v3402_v39 = vpop.permute.xlu1 %843  ;;  %v3404_v10 = vpop.permute.xlu0 %861  ;;  %v808_v20 = vadd.f32 %v3368_v35, %v788_v40 }
 0x1a5   : > { %v867_v35 = vadd.f32 %v3404_v10, %v847_v6  ;;  %v917_v32 = vrot.slane %v910_v3, 4  ;;  %v918_v15 = vrot.slane %v3470_v23, 4  ;;  %v1597_v10 = vmul.f32 %v1594_v1, %v2894_v62 }
 0x1a6   : > { %1452 = vrot.lane.b32.xlu1 %v1449_v7, %s2689_s16  ;;  %1470 = vrot.lane.b32.xlu0 %v1467_v11, %s2690_s27  ;;  %v1557_v7 = vmul.f32 %v1554_v46, %v2894_v62  ;;  %v1576_v11 = vmul.f32 %v1574_v30, %v2890_v57  ;;  %v828_v54 = vadd.f32 %v3381_v45, %v808_v20  ;;  %v1602_v30 = vrot.slane %v1596_v38, 2 }
 0x1a7   : > { %v920_v9 = vrot.slane %v912_v63, 4  ;;  %v1604_v29 = vrot.slane %v1597_v10, 2  ;;  %v1635_v1 = vmul.f32 %v1634_v41, %v2886_v55  ;;  %v1624_v23 = vrot.slane %v1617_v16, 2 }
 0x1a8   : > { %v3424_v26 = vpop.permute.xlu1 %863  ;;  %v3426_v14 = vpop.permute.xlu0 %881  ;;  %v1564_v33 = vrot.slane %v1557_v7, 2  ;;  %v848_v42 = vadd.f32 %v3402_v39, %v828_v54  ;;  %v1655_v20 = vmul.f32 %v1654_v44, %v2886_v55  ;;  %v1657_v54 = vmul.f32 %v1654_v44, %v2894_v62 }
 0x1a9   : > { %v887_v45 = vadd.f32 %v3426_v14, %v867_v35  ;;  %v1605_v12 = vsel %vm642_vm5, %v1602_v30, %v1604_v29  ;;  %v1710_v35 = vstv %s3516_s22  ;;  %v1625_v38 = vsel %vm642_vm5, %v1622_v60, %v1624_v23  ;;  %s3643_s22 = sld [smem:[#allocation4 + $0x53]] }
 0x1aa   : > { %1472 = vrot.lane.b32.xlu1 %v1469_v18, %s2690_s27  ;;  %1490 = vrot.lane.b32.xlu0 %v1487_v27, %s2691_s30  ;;  %v1581_v18 = vrot.slane %v1575_v8, 2  ;;  %v1582_v27 = vrot.slane %v1576_v11, 2  ;;  %v1565_v48 = vsel %vm642_vm5, %v1562_v13, %v1564_v33  ;;  %v868_v39 = vadd.f32 %v3424_v26, %v848_v42 }
 0x1ab   : > { %v1636_v8 = vmul.f32 %v1634_v41, %v2890_v57  ;;  %v921_v11 = vsel %vm916_vm7, %v918_v15, %v920_v9  ;;  %v1656_v33 = vmul.f32 %v1654_v44, %v2890_v57  ;;  %v1692_v63 = vmul.f32 %v1690_v51, %v2890_v57 }
 0x1ac   : > { %v3441_v49 = vpop.permute.xlu1 %883  ;;  %v3443_v50 = vpop.permute.xlu0 %901  ;;  %v1583_v59 = vsel %vm642_vm5, %v1581_v18, %v1582_v27  ;;  %v1585_v37 = vsel %vm642_vm5, %v1582_v27, %v1584_v43  ;;  %v1046_v18 = vstv %s3511_s19  ;;  %v1664_v31 = vrot.slane %v1657_v54, 2  ;;  %s3632_s19 = sld [smem:[#allocation4 + $0x52]] }
 0x1ad   : > { %v907_v14 = vadd.f32 %v3443_v50, %v887_v45  ;;  %v888_v61 = vadd.f32 %v3441_v49, %v868_v39  ;;  %v1603_v49 = vsel %vm642_vm5, %v1601_v56, %v1602_v30  ;;  %v1642_v24 = vrot.slane %v1636_v8, 2 }
 0x1ae   : > { %1492 = vrot.lane.b32.xlu1 %v1489_v53, %s2691_s30  ;;  %1510 = vrot.lane.b32.xlu0 %v1507_v58, %s2692_s8  ;;  %v1615_v53 = vmul.f32 %v1614_v34, %v2886_v55  ;;  %v919_v58 = vsel %vm916_vm7, %v917_v32, %v918_v15  ;;  %v1641_v34 = vrot.slane %v1635_v1, 2  ;;  %v1661_v32 = vrot.slane %v1655_v20, 2 }
 0x1af   : > { %v1691_v15 = vmul.f32 %v1690_v51, %v2886_v55  ;;  %v1662_v43 = vrot.slane %v1656_v33, 2  ;;  %v1048_v10 = vmul.f32 %v1046_v18, %v2904_v5  ;;  %v1693_v56 = vmul.f32 %v1690_v51, %v2894_v62 }
 0x1b0   : > { %v3458_v4 = vpop.permute.xlu1 %903  ;;  %v3460_v52 = vpop.permute.xlu0 %938  ;;  %v1621_v40 = vrot.slane %v1615_v53, 2  ;;  %v1643_v45 = vsel %vm642_vm5, %v1641_v34, %v1642_v24  ;;  %v1711_v30 = vmul.f32 %v1710_v35, %v2886_v55  ;;  %v1730_v29 = vstv %s3536_s24  ;;  %s3651_s24 = sld [smem:[#allocation4 + $0x55]] }
 0x1b1   : > { %v908_v7 = vadd.f32 %v3458_v4, %v888_v61  ;;  %v1697_v39 = vrot.slane %v1691_v15, 3  ;;  %v1663_v61 = vsel %vm642_vm5, %v1661_v32, %v1662_v43  ;;  %v1054_v9 = vrot.slane %v1048_v10, 5 }
 0x1b2   : > { %1512 = vrot.lane.b32.xlu1 %v1509_v2, %s2692_s8  ;;  %1530 = vrot.lane.b32.xlu0 %v1527_v19, %s2693_s15  ;;  %v924_v2 = vadd.f32 %v919_v58, %v907_v14  ;;  %v1637_v19 = vmul.f32 %v1634_v41, %v2894_v62  ;;  %v1623_v4 = vsel %vm642_vm5, %v1621_v40, %v1622_v60  ;;  %v1698_v14 = vrot.slane %v1692_v63, 3 }
 0x1b3   : > { %v925_v6 = vadd.f32 %v921_v11, %v908_v7  ;;  %v1665_v16 = vsel %vm642_vm5, %v1662_v43, %v1664_v31  ;;  %v1717_v8 = vrot.slane %v1711_v30, 3  ;;  %v1713_v11 = vmul.f32 %v1710_v35, %v2894_v62 }
 0x1b4   : > { %v3481_v36 = vpop.permute.xlu1 %940  ;;  %v3483_v25 = vpop.permute.xlu0 %958  ;;  %v1644_v28 = vrot.slane %v1637_v19, 2  ;;  %v1699_v7 = vsel %vm779_vm6, %v1697_v39, %v1698_v14  ;;  %v1731_v51 = vmul.f32 %v1730_v29, %v2886_v55  ;;  %v1733_v23 = vmul.f32 %v1730_v29, %v2894_v62 }
 0x1b5   : > { %v945_v41 = vadd.f32 %v3481_v36, %v925_v6  ;;  %v1770_v32 = vstv %s3565_s17  ;;  %s3675_s17 = sld [smem:[#allocation4 + $0x57]] }
 0x1b6   : > { %1532 = vrot.lane.b32.xlu1 %v1529_v21, %s2693_s15  ;;  %1566 = vrot.lane.b32.xlu0 %v1563_v17, %s2688_s3  ;;  %v944_v21 = vadd.f32 %v3460_v52, %v924_v2  ;;  %v1645_v53 = vsel %vm642_vm5, %v1642_v24, %v1644_v28  ;;  %v1737_v54 = vrot.slane %v1731_v51, 3  ;;  %v1771_v31 = vmul.f32 %v1770_v32, %v2886_v55 }
 0x1b8   : > { %v3500_v46 = vpop.permute.xlu1 %960  ;;  %v979_v47 = vpop.permute.xlu0 %978  ;;  %v964_v27 = vadd.f32 %v3483_v25, %v944_v21  ;;  %v1047_v25 = vmul.f32 %v1046_v18, %v2898_v0 }
 0x1ba   : > { %1568 = vrot.lane.b32.xlu1 %v1565_v48, %s2688_s3  ;;  %1586 = vrot.lane.b32.xlu0 %v1583_v59, %s2689_s16  ;;  %v984_v42 = vadd.f32 %v979_v47, %v964_v27  ;;  %v965_v48 = vadd.f32 %v3500_v46, %v945_v41  ;;  %v1712_v46 = vmul.f32 %v1710_v35, %v2890_v57 }
 0x1bc   : > { %v981_v26 = vpop.permute.xlu1 %980  ;;  %v999_v50 = vpop.permute.xlu0 %998  ;;  %v1718_v19 = vrot.slane %v1712_v46, 3 }
 0x1bd   : > { %v1004_v59 = vadd.f32 %v999_v50, %v984_v42  ;;  %v985_v58 = vadd.f32 %v981_v26, %v965_v48  ;;  %v1750_v50 = vstv %s3538_s29  ;;  %v1053_v26 = vrot.slane %v1047_v25, 5  ;;  %s3657_s29 = sld [smem:[#allocation4 + $0x31]] }
 0x1be   : > { %1588 = vrot.lane.b32.xlu1 %v1585_v37, %s2689_s16  ;;  %1606 = vrot.lane.b32.xlu0 %v1603_v49, %s2690_s27  ;;  %v1049_v37 = vmul.f32 %v1046_v18, %v2929_v22  ;;  %v1700_v49 = vrot.slane %v1693_v56, 3  ;;  %v1751_v6 = vmul.f32 %v1750_v50, %v2886_v55  ;;  %v3582_v21 = vmul.f32 %v1750_v50, %v2890_v57 }
 0x1bf   : > { %v1720_v18 = vrot.slane %v1713_v11, 3  ;;  %v1719_v28 = vsel %vm779_vm6, %v1717_v8, %v1718_v19  ;;  %v1753_v10 = vmul.f32 %v1750_v50, %v2894_v62  ;;  %v1790_v48 = vstv %s3570_s23  ;;  %s3684_s23 = sld [smem:[#allocation4 + $0x58]] }
 0x1c0   : > { %v1001_v13 = vpop.permute.xlu1 %1000  ;;  %v1019_v3 = vpop.permute.xlu0 %1018  ;;  %v1701_v27 = vsel %vm779_vm6, %v1698_v14, %v1700_v49  ;;  %v1757_v41 = vrot.slane %v1751_v6, 3  ;;  %v1758_v42 = vrot.slane %v3582_v21, 3  ;;  %v1826_v14 = vstv %s3578_s28  ;;  %s3698_s28 = sld [smem:[#allocation4 + $0x59]] }
 0x1c1   : > { %v1024_v44 = vadd.f32 %v1019_v3, %v1004_v59  ;;  %v1005_v40 = vadd.f32 %v1001_v13, %v985_v58  ;;  %v1732_v13 = vmul.f32 %v1730_v29, %v2890_v57  ;;  %v1055_v3 = vsel %vm264_vm1, %v1053_v26, %v1054_v9 }
 0x1c2   : > { %1608 = vrot.lane.b32.xlu1 %v1605_v12, %s2690_s27  ;;  %1626 = vrot.lane.b32.xlu0 %v1623_v4, %s2691_s30  ;;  %v1056_v4 = vrot.slane %v1049_v37, 5  ;;  %v1721_v25 = vsel %vm779_vm6, %v1718_v19, %v1720_v18  ;;  %v1773_v37 = vmul.f32 %v1770_v32, %v2894_v62  ;;  %v1791_v29 = vmul.f32 %v1790_v48, %v2886_v55 }
 0x1c3   : > { %v1738_v35 = vrot.slane %v1732_v13, 3  ;;  %v1792_v50 = vmul.f32 %v1790_v48, %v2890_v57  ;;  %v1827_v8 = vmul.f32 %v1826_v14, %v2886_v55  ;;  %v1828_v11 = vmul.f32 %v1826_v14, %v2890_v57 }
 0x1c4   : > { %v1021_v17 = vpop.permute.xlu1 %1020  ;;  %v1039_v52 = vpop.permute.xlu0 %1038  ;;  %v1780_v13 = vrot.slane %v1773_v37, 3 }
 0x1c5   : > { %v1044_v60 = vadd.f32 %v1039_v52, %v1024_v44  ;;  %v1025_v12 = vadd.f32 %v1021_v17, %v1005_v40  ;;  %v1057_v17 = vsel %vm264_vm1, %v1054_v9, %v1056_v4  ;;  %v1740_v52 = vrot.slane %v1733_v23, 3 }
 0x1c6   : > { %1628 = vrot.lane.b32.xlu1 %v1625_v38, %s2691_s30  ;;  %1646 = vrot.lane.b32.xlu0 %v1643_v45, %s2692_s8  ;;  %v1182_v38 = vstv %s3563_s5  ;;  %v1759_v44 = vsel %vm779_vm6, %v1757_v41, %v1758_v42  ;;  %v1760_v9 = vrot.slane %v1753_v10, 3  ;;  %v1798_v4 = vrot.slane %v1792_v50, 3  ;;  %s3667_s5 = sld [smem:[#allocation4 + $0x56]] }
 0x1c7   : > { %v1060_v34 = vadd.f32 %v1055_v3, %v1044_v60  ;;  %v1184_v39 = vmul.f32 %v1182_v38, %v2904_v5  ;;  %v1741_v58 = vsel %vm779_vm6, %v1738_v35, %v1740_v52  ;;  %v1777_v5 = vrot.slane %v1771_v31, 3 }
 0x1c8   : > { %v1041_v36 = vpop.permute.xlu1 %1040  ;;  %v1075_v47 = vpop.permute.xlu0 %1074  ;;  %v1797_v3 = vrot.slane %v1791_v29, 3 }
 0x1c9   : > { %v1045_v20 = vadd.f32 %v1041_v36, %v1025_v12  ;;  %v1080_v63 = vadd.f32 %v1075_v47, %v1060_v34  ;;  %v1772_v36 = vmul.f32 %v1770_v32, %v2890_v57  ;;  %v1183_v47 = vmul.f32 %v1182_v38, %v2898_v0 }
 0x1ca   : > { %1648 = vrot.lane.b32.xlu1 %v1645_v53, %s2692_s8  ;;  %1666 = vrot.lane.b32.xlu0 %v1663_v61, %s2693_s15  ;;  %v1739_v53 = vsel %vm779_vm6, %v1737_v54, %v1738_v35  ;;  %v1191_v60 = vrot.slane %v1184_v39, 6  ;;  %v1834_v54 = vrot.slane %v1828_v11, 4  ;;  %v1886_v39 = vstv %s3619_s18  ;;  %s2446_s18 = sld [smem:[#allocation4 + $0x5d]] }
 0x1cb   : > { %v1061_v15 = vadd.f32 %v1057_v17, %v1045_v20  ;;  %v1778_v26 = vrot.slane %v1772_v36, 3  ;;  %v1190_v19 = vrot.slane %v1183_v47, 6 }
 0x1cc   : > { %v1077_v1 = vpop.permute.xlu1 %1076  ;;  %v1095_v2 = vpop.permute.xlu0 %1094 }
 0x1cd   : > { %v1100_v59 = vadd.f32 %v1095_v2, %v1080_v63  ;;  %v1081_v56 = vadd.f32 %v1077_v1, %v1061_v15  ;;  %v1793_v1 = vmul.f32 %v1790_v48, %v2894_v62  ;;  %v1846_v2 = vstv %s3591_s6  ;;  %s3710_s6 = sld [smem:[#allocation4 + $0x5a]] }
 0x1ce   : > { %1668 = vrot.lane.b32.xlu1 %v1665_v16, %s2693_s15  ;;  %1702 = vrot.lane.b32.xlu0 %v1699_v7, %s2688_s3  ;;  %v1185_v16 = vmul.f32 %v1182_v38, %v2929_v22  ;;  %v1761_v22 = vsel %vm779_vm6, %v1758_v42, %v1760_v9  ;;  %v1779_v20 = vsel %vm779_vm6, %v1777_v5, %v1778_v26  ;;  %v1866_v42 = vstv %s3610_s26  ;;  %s2445_s26 = sld [smem:[#allocation4 + $0x5c]] }
 0x1cf   : > { %v1192_v6 = vsel %vm1189_vm8, %v1190_v19, %v1191_v60  ;;  %v1781_v52 = vsel %vm779_vm6, %v1778_v26, %v1780_v13  ;;  %v1799_v38 = vsel %vm779_vm6, %v1797_v3, %v1798_v4  ;;  %v1847_v32 = vmul.f32 %v1846_v2, %v2886_v55 }
 0x1d0   : > { %v1097_v24 = vpop.permute.xlu1 %1096  ;;  %v1115_v33 = vpop.permute.xlu0 %1114  ;;  %v1193_v21 = vrot.slane %v1185_v16, 6  ;;  %v1848_v41 = vmul.f32 %v1846_v2, %v2890_v57  ;;  %v1849_v31 = vmul.f32 %v1846_v2, %v2894_v62  ;;  %v1867_v36 = vmul.f32 %v1866_v42, %v2886_v55 }
 0x1d1   : > { %v1120_v30 = vadd.f32 %v1115_v33, %v1100_v59  ;;  %v1101_v0 = vadd.f32 %v1097_v24, %v1081_v56  ;;  %v1800_v24 = vrot.slane %v1793_v1, 3  ;;  %v1829_v33 = vmul.f32 %v1826_v14, %v2894_v62 }
 0x1d2   : > { %1704 = vrot.lane.b32.xlu1 %v1701_v27, %s2688_s3  ;;  %1722 = vrot.lane.b32.xlu0 %v1719_v28, %s2689_s16  ;;  %v1833_v28 = vrot.slane %v1827_v8, 4  ;;  %v1868_v47 = vmul.f32 %v1866_v42, %v2890_v57  ;;  %v1856_v50 = vrot.slane %v1849_v31, 4  ;;  %v1906_v16 = vstv %s3632_s19  ;;  %s2447_s19 = sld [smem:[#allocation4 + $0x5e]] }
 0x1d3   : > { %v1836_v48 = vrot.slane %v1829_v33, 4 }
 0x1d4   : > { %v1117_v45 = vpop.permute.xlu1 %1116  ;;  %v1135_v43 = vpop.permute.xlu0 %1134  ;;  %v1835_v10 = vsel %vm916_vm7, %v1833_v28, %v1834_v54 }
 0x1d5   : > { %v1140_v40 = vadd.f32 %v1135_v43, %v1120_v30  ;;  %v1121_v7 = vadd.f32 %v1117_v45, %v1101_v0  ;;  %v1194_v45 = vsel %vm1189_vm8, %v1191_v60, %v1193_v21  ;;  %v1853_v30 = vrot.slane %v1847_v32, 4 }
 0x1d6   : > { %1724 = vrot.lane.b32.xlu1 %v1721_v25, %s2689_s16  ;;  %1742 = vrot.lane.b32.xlu0 %v1739_v53, %s2690_s27  ;;  %v1801_v25 = vsel %vm779_vm6, %v1798_v4, %v1800_v24  ;;  %v1837_v29 = vsel %vm916_vm7, %v1834_v54, %v1836_v48  ;;  %v1873_v0 = vrot.slane %v1867_v36, 4  ;;  %v1908_v4 = vmul.f32 %v1906_v16, %v2890_v57 }
 0x1d7   : > { %v1909_v24 = vmul.f32 %v1906_v16, %v2894_v62  ;;  %v1982_v36 = vstv %s3667_s5  ;;  %s2353_s5 = sshll.u32 %s2850_s7, 4 }
 0x1d8   : > { %v1137_v61 = vpop.permute.xlu1 %1136  ;;  %v1155_v46 = vpop.permute.xlu0 %1154 }
 0x1d9   : > { %v1160_v49 = vadd.f32 %v1155_v46, %v1140_v40  ;;  %v1141_v23 = vadd.f32 %v1137_v61, %v1121_v7  ;;  %v1887_v61 = vmul.f32 %v1886_v39, %v2886_v55  ;;  %v1888_v46 = vmul.f32 %v1886_v39, %v2890_v57 }
 0x1da   : > { %1744 = vrot.lane.b32.xlu1 %v1741_v58, %s2690_s27  ;;  %1762 = vrot.lane.b32.xlu0 %v1759_v44, %s2691_s30  ;;  %v1854_v58 = vrot.slane %v1848_v41, 4  ;;  %v1869_v44 = vmul.f32 %v1866_v42, %v2894_v62  ;;  %v1874_v40 = vrot.slane %v1868_v47, 4 }
 0x1db   : > { %v1893_v2 = vrot.slane %v1887_v61, 4  ;;  %v1894_v7 = vrot.slane %v1888_v46, 4 }
 0x1dc   : > { %v1157_v12 = vpop.permute.xlu1 %1156  ;;  %v1175_v51 = vpop.permute.xlu0 %1174  ;;  %v1855_v60 = vsel %vm916_vm7, %v1853_v30, %v1854_v58  ;;  %v1876_v1 = vrot.slane %v1869_v44, 4  ;;  %v1875_v19 = vsel %vm916_vm7, %v1873_v0, %v1874_v40  ;;  %v1984_v0 = vmul.f32 %v1982_v36, %v2890_v57 }
 0x1dd   : > { %v1180_v34 = vadd.f32 %v1175_v51, %v1160_v49  ;;  %v1161_v18 = vadd.f32 %v1157_v12, %v1141_v23  ;;  %v1889_v49 = vmul.f32 %v1886_v39, %v2894_v62  ;;  %v1857_v12 = vsel %vm916_vm7, %v1854_v58, %v1856_v50 }
 0x1de   : > { %1764 = vrot.lane.b32.xlu1 %v1761_v22, %s2691_s30  ;;  %1782 = vrot.lane.b32.xlu0 %v1779_v20, %s2692_s8  ;;  %v1907_v51 = vmul.f32 %v1906_v16, %v2886_v55  ;;  %v1926_v23 = vstv %s3643_s22  ;;  %v1895_v22 = vsel %vm916_vm7, %v1893_v2, %v1894_v7  ;;  %v1983_v50 = vmul.f32 %v1982_v36, %v2886_v55  ;;  %s2448_s22 = sld [smem:[#allocation4 + $0x5f]] }
 0x1df   : > { %v1197_v27 = vadd.f32 %v1192_v6, %v1180_v34  ;;  %v1877_v34 = vsel %vm916_vm7, %v1874_v40, %v1876_v1  ;;  %v1896_v20 = vrot.slane %v1889_v49, 4  ;;  %v1927_v33 = vmul.f32 %v1926_v23, %v2886_v55 }
 0x1e0   : > { %v1177_v35 = vpop.permute.xlu1 %1176  ;;  %v1212_v17 = vpop.permute.xlu0 %1211  ;;  %v1985_v2 = vmul.f32 %v1982_v36, %v2894_v62 }
 0x1e1   : > { %v1181_v15 = vadd.f32 %v1177_v35, %v1161_v18  ;;  %v1217_v63 = vadd.f32 %v1212_v17, %v1197_v27  ;;  %v1928_v18 = vmul.f32 %v1926_v23, %v2890_v57  ;;  %v1962_v27 = vstv %s3651_s24  ;;  %s2449_s24 = sld [smem:[#allocation4 + $0x60]] }
 0x1e2   : > { %1784 = vrot.lane.b32.xlu1 %v1781_v52, %s2692_s8  ;;  %1802 = vrot.lane.b32.xlu0 %v1799_v38, %s2693_s15  ;;  %v1913_v35 = vrot.slane %v1907_v51, 4  ;;  %v1914_v17 = vrot.slane %v1908_v4, 4  ;;  %v1929_v52 = vmul.f32 %v1926_v23, %v2894_v62  ;;  %v1319_v38 = vstv %s3657_s29  ;;  %s2450_s29 = sld [smem:[#allocation4 + $0x61]] }
 0x1e3   : > { %v1198_v43 = vadd.f32 %v1194_v45, %v1181_v15  ;;  %v1963_v32 = vmul.f32 %v1962_v27, %v2886_v55  ;;  %v1964_v15 = vmul.f32 %v1962_v27, %v2890_v57  ;;  %v1320_v41 = vmul.f32 %v1319_v38, %v2886_v55 }
 0x1e4   : > { %v1214_v59 = vpop.permute.xlu1 %1213  ;;  %v1232_v53 = vpop.permute.xlu0 %1231  ;;  %v1916_v45 = vrot.slane %v1909_v24, 4  ;;  %v1936_v31 = vrot.slane %v1929_v52, 4  ;;  %v1321_v30 = vmul.f32 %v1319_v38, %v2890_v57  ;;  %v1990_v51 = vrot.slane %v1984_v0, 5 }
 0x1e5   : > { %v1218_v14 = vadd.f32 %v1214_v59, %v1198_v43  ;;  %v1237_v56 = vadd.f32 %v1232_v53, %v1217_v63  ;;  %v1933_v43 = vrot.slane %v1927_v33, 4  ;;  %v1897_v59 = vsel %vm916_vm7, %v1894_v7, %v1896_v20 }
 0x1e6   : > { %1804 = vrot.lane.b32.xlu1 %v1801_v25, %s2693_s15  ;;  %1838 = vrot.lane.b32.xlu0 %v1835_v10, %s2688_s3  ;;  %v1934_v25 = vrot.slane %v1928_v18, 4  ;;  %v1915_v53 = vsel %vm916_vm7, %v1913_v35, %v1914_v17  ;;  %v1969_v39 = vrot.slane %v1963_v32, 5  ;;  %v1917_v61 = vsel %vm916_vm7, %v1914_v17, %v1916_v45 }
 0x1e7   : > { %v1992_v20 = vrot.slane %v1985_v2, 5 }
 0x1e8   : > { %v1234_v9 = vpop.permute.xlu1 %1233  ;;  %v1252_v37 = vpop.permute.xlu0 %1251  ;;  %v1935_v46 = vsel %vm916_vm7, %v1933_v43, %v1934_v25  ;;  %v2062_v43 = vstv %s3710_s6 }
 0x1e9   : > { %v1238_v5 = vadd.f32 %v1234_v9, %v1218_v14  ;;  %v1257_v26 = vadd.f32 %v1252_v37, %v1237_v56  ;;  %v1970_v14 = vrot.slane %v1964_v15, 5  ;;  %v1965_v56 = vmul.f32 %v1962_v27, %v2894_v62 }
 0x1ea   : > { %1840 = vrot.lane.b32.xlu1 %v1837_v29, %s2688_s3  ;;  %1858 = vrot.lane.b32.xlu0 %v1855_v60, %s2689_s16  ;;  %v2002_v9 = vstv %s3675_s17  ;;  %v2042_v27 = vstv %s3698_s28  ;;  %s2459_s17 = sshll.u32 %s2673_s12, 8 }
 0x1eb   : > { %v1972_v60 = vrot.slane %v1965_v56, 5  ;;  %v2003_v7 = vmul.f32 %v2002_v9, %v2886_v55  ;;  %v2004_v49 = vmul.f32 %v2002_v9, %v2890_v57  ;;  %v2043_v32 = vmul.f32 %v2042_v27, %v2886_v55 }
 0x1ec   : > { %v1254_v8 = vpop.permute.xlu1 %1253  ;;  %v1272_v11 = vpop.permute.xlu0 %1271  ;;  %v2044_v15 = vmul.f32 %v2042_v27, %v2890_v57  ;;  %v2064_v56 = vmul.f32 %v2062_v43, %v2890_v57 }
 0x1ed   : > { %v1258_v13 = vadd.f32 %v1254_v8, %v1238_v5  ;;  %v1277_v3 = vadd.f32 %v1272_v11, %v1257_v26  ;;  %v1937_v5 = vsel %vm916_vm7, %v1934_v25, %v1936_v31  ;;  %v1971_v26 = vsel %vm264_vm1, %v1969_v39, %v1970_v14 }
 0x1ee   : > { %1860 = vrot.lane.b32.xlu1 %v1857_v12, %s2689_s16  ;;  %1878 = vrot.lane.b32.xlu0 %v1875_v19, %s2690_s27  ;;  %v2022_v8 = vstv %s3684_s23  ;;  %v1989_v19 = vrot.slane %v1983_v50, 5  ;;  %v2049_v31 = vrot.slane %v2043_v32, 5  ;;  %v2050_v36 = vrot.slane %v2044_v15, 5  ;;  %s190_s23 = scalar_lea.vmem [#allocation9], %s2353_s5 }
 0x1ef   : > { %v2024_v4 = vmul.f32 %v2022_v8, %v2890_v57  ;;  %v2025_v38 = vmul.f32 %v2022_v8, %v2894_v62  ;;  %v2070_v0 = vrot.slane %v2064_v56, 5  ;;  %v2178_v15 = vstv %s2449_s24  ;;  %s2246_s28 = sshll.u32 %s190_s23, 4  ;;  %s3877_s28 = int_to_ptr.vmem [resolvable:$true] %s2246_s28 }
 0x1f0   : > { %v1274_v6 = vpop.permute.xlu1 %1273  ;;  %v1292_v21 = vpop.permute.xlu0 %1291  ;;  %v1991_v18 = vsel %vm264_vm1, %v1989_v19, %v1990_v51  ;;  %v2138_v19 = vstv %s2447_s19  ;;  %s2233_s19 = scalar_lea.sflag [#allocation6], %s2850_s7  ;;  %s2595_s12 = scalar_lea.vmem %s3877_s28, 256 }
 0x1f1   : > { %v1278_v28 = vadd.f32 %v1274_v6, %v1258_v13  ;;  %v1297_v54 = vadd.f32 %v1292_v21, %v1277_v3  ;;  %v2005_v13 = vmul.f32 %v2002_v9, %v2894_v62  ;;  %v2023_v3 = vmul.f32 %v2022_v8, %v2886_v55  ;;  %p2596_p8 = scmp.ne.s32.totalorder %s3877_s28, %s2595_s12 }
 0x1f2   : > { %1880 = vrot.lane.b32.xlu1 %v1877_v34, %s2690_s27  ;;  %1898 = vrot.lane.b32.xlu0 %v1895_v22, %s2691_s30  ;;  %v1973_v22 = vsel %vm264_vm1, %v1970_v14, %v1972_v60  ;;  %v2009_v6 = vrot.slane %v2003_v7, 5  ;;  %v2010_v21 = vrot.slane %v2004_v49, 5  ;;  %v2030_v35 = vrot.slane %v2024_v4, 5 }
 0x1f3   : > { %v2063_v14 = vmul.f32 %v2062_v43, %v2886_v55  ;;  %v2051_v9 = vsel %vm264_vm1, %v2049_v31, %v2050_v36  ;;  %v2179_v31 = vmul.f32 %v2178_v15, %v2886_v55  ;;  %p2597_p0 = pnand %p2596_p8, %p3942_p13 }
 0x1f4   : > { %v1294_v63 = vpop.permute.xlu1 %1293  ;;  %v1312_v42 = vpop.permute.xlu0 %1311  ;;  %v2011_v45 = vsel %vm264_vm1, %v2009_v6, %v2010_v21  ;;  %v2139_v6 = vmul.f32 %v2138_v19, %v2886_v55 }
 0x1f5   : > { %v1298_v10 = vadd.f32 %v1294_v63, %v1278_v28  ;;  %v1317_v48 = vadd.f32 %v1312_v42, %v1297_v54  ;;  %v2012_v28 = vrot.slane %v2005_v13, 5  ;;  %v2029_v54 = vrot.slane %v2023_v3, 5  ;;  %p2598_p2 = pneg %p2597_p0 }
 0x1f6   : > { %1900 = vrot.lane.b32.xlu1 %v1897_v59, %s2691_s30  ;;  %1918 = vrot.lane.b32.xlu0 %v1915_v53, %s2692_s8  ;;  %v1993_v42 = vsel %vm264_vm1, %v1990_v51, %v1992_v20  ;;  %v2032_v53 = vrot.slane %v2025_v38, 5  ;;  %v2069_v50 = vrot.slane %v2063_v14, 5  ;;  %v2145_v38 = vrot.slane %v2139_v6, 6 }
 0x1f7   : > { %v1322_v47 = vadd.f32 %v1320_v41, %v1317_v48  ;;  %v2013_v25 = vsel %vm264_vm1, %v2010_v21, %v2012_v28  ;;  %v2140_v21 = vmul.f32 %v2138_v19, %v2890_v57  ;;  %v2141_v28 = vmul.f32 %v2138_v19, %v2894_v62 }
 0x1f8   : > { %v1314_v58 = vpop.permute.xlu1 %1313  ;;  %v1330_v44 = vpop.permute.xlu0 %1329  ;;  %v2071_v8 = vsel %vm264_vm1, %v2069_v50, %v2070_v0 }
 0x1f9   : > { %v1318_v37 = vadd.f32 %v1314_v58, %v1298_v10  ;;  %v1335_v29 = vadd.f32 %v1330_v44, %v1322_v47  ;;  %v2031_v10 = vsel %vm264_vm1, %v2029_v54, %v2030_v35  ;;  %v2045_v47 = vmul.f32 %v2042_v27, %v2894_v62 }
 0x1fa   : > { %1920 = vrot.lane.b32.xlu1 %v1917_v61, %s2692_s8  ;;  %1938 = vrot.lane.b32.xlu0 %v1935_v46, %s2693_s15  ;;  %v2065_v58 = vmul.f32 %v2062_v43, %v2894_v62  ;;  %v2033_v46 = vsel %vm264_vm1, %v2030_v35, %v2032_v53  ;;  %v2146_v32 = vrot.slane %v2140_v21, 6 }
 0x1fb   : > { %v1323_v40 = vadd.f32 %v1321_v30, %v1318_v37  ;;  %v2098_v30 = vstv %s2445_s26  ;;  %v2052_v37 = vrot.slane %v2045_v47, 5  ;;  %v2198_v47 = vstv %s2450_s29 }
 0x1fc   : > { %v1332_v16 = vpop.permute.xlu1 %1331  ;;  %v1343_v1 = vpop.permute.xlu0 %1342  ;;  %v2147_v53 = vsel %vm1189_vm8, %v2145_v38, %v2146_v32  ;;  %v2199_v50 = vmul.f32 %v2198_v47, %v2886_v55 }
 0x1fd   : > { %v1336_v11 = vadd.f32 %v1332_v16, %v1323_v40  ;;  %v1348_v12 = vadd.f32 %v1343_v1, %v1335_v29  ;;  %v2099_v29 = vmul.f32 %v2098_v30, %v2886_v55  ;;  %v2100_v40 = vmul.f32 %v2098_v30, %v2890_v57 }
 0x1fe   : > { %1940 = vrot.lane.b32.xlu1 %v1937_v5, %s2693_s15  ;;  %1974 = vrot.lane.b32.xlu0 %v1971_v26, %s2688_s3  ;;  %v2118_v5 = vstv %s2446_s18  ;;  %v2072_v26 = vrot.slane %v2065_v58, 5  ;;  %v2101_v1 = vmul.f32 %v2098_v30, %v2894_v62  ;;  %v2053_v49 = vsel %vm264_vm1, %v2050_v36, %v2052_v37  ;;  %s3875_s18 = scalar_lea.hbm %s3929_s2, %s2459_s17 }
 0x1ff   : > { %v2119_v2 = vmul.f32 %v2118_v5, %v2886_v55  ;;  %v2120_v7 = vmul.f32 %v2118_v5, %v2890_v57  ;;  %v2180_v36 = vmul.f32 %v2178_v15, %v2890_v57  ;;  %v2185_v37 = vrot.slane %v2179_v31, 6 }
 0x200   : > { %v1345_v23 = vpop.permute.xlu1 %1344  ;;  %v1356_v34 = vpop.permute.xlu0 %1355  ;;  %v2073_v51 = vsel %vm264_vm1, %v2070_v0, %v2072_v26  ;;  %v2108_v4 = vrot.slane %v2101_v1, 6  ;;  %v2200_v0 = vmul.f32 %v2198_v47, %v2890_v57 }
 0x201   : > { %v1349_v24 = vadd.f32 %v1345_v23, %v1336_v11  ;;  %v1361_v33 = vadd.f32 %v1356_v34, %v1348_v12  ;;  %v2105_v11 = vrot.slane %v2099_v29, 6  ;;  %v2106_v12 = vrot.slane %v2100_v40, 6 }
 0x202   : > { %1976 = vrot.lane.b32.xlu1 %v1973_v22, %s2688_s3  ;;  %1994 = vrot.lane.b32.xlu0 %v1991_v18, %s2689_s16  ;;  %v2125_v23 = vrot.slane %v2119_v2, 6  ;;  %v2126_v34 = vrot.slane %v2120_v7, 6  ;;  %v2121_v22 = vmul.f32 %v2118_v5, %v2894_v62  ;;  %v2186_v29 = vrot.slane %v2180_v36, 6 }
 0x203   : > { %v2107_v20 = vsel %vm1189_vm8, %v2105_v11, %v2106_v12  ;;  %v2109_v27 = vsel %vm1189_vm8, %v2106_v12, %v2108_v4  ;;  %v2205_v7 = vrot.slane %v2199_v50, 6 }
 0x204   : > { %v1358_v17 = vpop.permute.xlu1 %1357  ;;  %v1369_v52 = vpop.permute.xlu0 %1368  ;;  %v2187_v2 = vsel %vm1189_vm8, %v2185_v37, %v2186_v29 }
 0x205   : > { %v1362_v63 = vadd.f32 %v1358_v17, %v1349_v24  ;;  %v3723_v41 = vadd.f32 %v1369_v52, %v1361_v33  ;;  %v2158_v24 = vstv %s2448_s22  ;;  %v2127_v17 = vsel %vm1189_vm8, %v2125_v23, %v2126_v34  ;;  %s2694_s22 = smov [#allocation9]  }
 0x206   : > { %1996 = vrot.lane.b32.xlu1 %v1993_v42, %s2689_s16  ;;  %2014 = vrot.lane.b32.xlu0 %v2011_v45, %s2690_s27  ;;  %v2159_v54 = vmul.f32 %v2158_v24, %v2886_v55  ;;  %v2160_v35 = vmul.f32 %v2158_v24, %v2890_v57  ;;  %v2128_v52 = vrot.slane %v2121_v22, 6  ;;  %v2148_v45 = vrot.slane %v2141_v28, 6  ;;  %s2599_s24 = sshll.u32 %s2694_s22, 4  ;;  %s2600_s24 = int_to_ptr.vmem [resolvable:$false] %s2599_s24 }
 0x207   : > { %s2601_s29 = scalar_lea.vmem %s2600_s24, 512  ;;  %p2602_p6 = scmp.lt.s32.totalorder %s3877_s28, %s2600_s24 }
 0x208   : > { %v1371_v48 = vpop.permute.xlu1 %1370  ;;  %v3732_v59 = vpop.permute.xlu0 %1381  ;;  %v2165_v43 = vrot.slane %v2159_v54, 6  ;;  %v2149_v30 = vsel %vm1189_vm8, %v2146_v32, %v2148_v45  ;;  %p2603_p1 = scmp.lt.s32.totalorder %s2601_s29, %s2595_s12 }
 0x209   : > { %v3735_v39 = vadd.f32 %v1371_v48, %v1362_v63  ;;  %v2129_v48 = vsel %vm1189_vm8, %v2126_v34, %v2128_v52 }
 0x20a   : > { %2016 = vrot.lane.b32.xlu1 %v2013_v25, %s2690_s27  ;;  %2034 = vrot.lane.b32.xlu0 %v2031_v10, %s2691_s30  ;;  %v2166_v25 = vrot.slane %v2160_v35, 6  ;;  %v2161_v10 = vmul.f32 %v2158_v24, %v2894_v62  ;;  %v1387_v24 = vadd.f32 %v3732_v59, %v3723_v41  ;;  %p2604_p7 = por %p2603_p1, %p2602_p6 }
 0x20c   : > { %v3742_v44 = vpop.permute.xlu1 %1383  ;;  %v3744_v61 = vpop.permute.xlu0 %1394  ;;  %v2167_v58 = vsel %vm1189_vm8, %v2165_v43, %v2166_v25  ;;  %p2605_p12 = pnand %p2604_p7, %p2598_p2 }
 0x20d   : > { %v1400_v52 = vadd.f32 %v3744_v61, %v1387_v24  ;;  %v1388_v38 = vadd.f32 %v3742_v44, %v3735_v39 }
 0x20e   : > { %2036 = vrot.lane.b32.xlu1 %v2033_v46, %s2691_s30  ;;  %2054 = vrot.lane.b32.xlu0 %v2051_v9, %s2692_s8  ;;  %v2168_v46 = vrot.slane %v2161_v10, 6  ;;  %v2181_v9 = vmul.f32 %v2178_v15, %v2894_v62 }
 0x210   : > { %v3752_v60 = vpop.permute.xlu1 %1396  ;;  %v3754_v16 = vpop.permute.xlu0 %1430  ;;  %v2169_v26 = vsel %vm1189_vm8, %v2166_v25, %v2168_v46  ;;  %v2188_v1 = vrot.slane %v2181_v9, 6 }
 0x211   : > { %v1401_v41 = vadd.f32 %v3752_v60, %v1388_v38 }
 0x212   : > { %2056 = vrot.lane.b32.xlu1 %v2053_v49, %s2692_s8  ;;  %2074 = vrot.lane.b32.xlu0 %v2071_v8, %s2693_s15  ;;  %v2206_v49 = vrot.slane %v2200_v0, 6  ;;  %v2201_v8 = vmul.f32 %v2198_v47, %v2894_v62 }
 0x214   : > { %v3764_v13 = vpop.permute.xlu1 %1432  ;;  %v3766_v3 = vpop.permute.xlu0 %1450  ;;  %v2207_v4 = vsel %vm1189_vm8, %v2205_v7, %v2206_v49  ;;  %v2208_v23 = vrot.slane %v2201_v8, 6 }
 0x216   : > { %2076 = vrot.lane.b32.xlu1 %v2073_v51, %s2693_s15  ;;  %2110 = vrot.lane.b32.xlu0 %v2107_v20, %s2688_s3  ;;  %v2189_v51 = vsel %vm1189_vm8, %v2186_v29, %v2188_v1  ;;  %v2209_v21 = vsel %vm1189_vm8, %v2206_v49, %v2208_v23 }
 0x218   : > { %v3774_v33 = vpop.permute.xlu1 %1452  ;;  %v3776_v18 = vpop.permute.xlu0 %1470 }
 0x21a   : > { %2112 = vrot.lane.b32.xlu1 %v2109_v27, %s2688_s3  ;;  %2130 = vrot.lane.b32.xlu0 %v2127_v17, %s2689_s16  ;;  %s2409_s3 = sld [smem:[#allocation4 + $0x38]] }
 0x21c   : > { %v3785_v63 = vpop.permute.xlu1 %1472  ;;  %v3787_v42 = vpop.permute.xlu0 %1490 }
 0x21e   : > { %2132 = vrot.lane.b32.xlu1 %v2129_v48, %s2689_s16  ;;  %2150 = vrot.lane.b32.xlu0 %v2147_v53, %s2690_s27  ;;  %s2416_s16 = sld [smem:[#allocation4 + $0x3f]] }
 0x220   : > { %v3796_v14 = vpop.permute.xlu1 %1492  ;;  %v3798_v56 = vpop.permute.xlu0 %1510  ;;  %v1402_v19 = vstv %s2409_s3 }
 0x221   : > { %v1403_v34 = vmul.f32 %v1402_v19, %v2886_v55  ;;  %v1404_v22 = vmul.f32 %v1402_v19, %v2890_v57  ;;  %v1405_v54 = vmul.f32 %v1402_v19, %v2894_v62 }
 0x222   : > { %2152 = vrot.lane.b32.xlu1 %v2149_v30, %s2690_s27  ;;  %2170 = vrot.lane.b32.xlu0 %v2167_v58, %s2691_s30  ;;  %s2423_s27 = sld [smem:[#allocation4 + $0x46]] }
 0x223   : > { %v1409_v27 = vrot.slane %v1403_v34, 1  ;;  %v1410_v28 = vrot.slane %v1404_v22, 1  ;;  %v1412_v15 = vrot.slane %v1405_v54, 1 }
 0x224   : > { %v3807_v40 = vpop.permute.xlu1 %1512  ;;  %v1531_v5 = vpop.permute.xlu0 %1530  ;;  %v1538_v36 = vstv %s2416_s16 }
 0x225   : > { %v1411_v32 = vsel %vm505_vm4, %v1409_v27, %v1410_v28  ;;  %v1413_v59 = vsel %vm505_vm4, %v1410_v28, %v1412_v15  ;;  %v1539_v58 = vmul.f32 %v1538_v36, %v2886_v55  ;;  %v1540_v60 = vmul.f32 %v1538_v36, %v2890_v57 }
 0x226   : > { %2172 = vrot.lane.b32.xlu1 %v2169_v26, %s2691_s30  ;;  %2190 = vrot.lane.b32.xlu0 %v2187_v2, %s2692_s8  ;;  %v1416_v25 = vadd.f32 %v1411_v32, %v1400_v52  ;;  %v1417_v53 = vadd.f32 %v1413_v59, %v1401_v41  ;;  %s2430_s30 = sld [smem:[#allocation4 + $0x4d]] }
 0x227   : > { %v1545_v50 = vrot.slane %v1539_v58, 2  ;;  %v1546_v0 = vrot.slane %v1540_v60, 2 }
 0x228   : > { %v1533_v11 = vpop.permute.xlu1 %1532  ;;  %v3814_v12 = vpop.permute.xlu0 %1566  ;;  %v1436_v31 = vadd.f32 %v3754_v16, %v1416_v25  ;;  %v1437_v47 = vadd.f32 %v3764_v13, %v1417_v53  ;;  %v1541_v13 = vmul.f32 %v1538_v36, %v2894_v62  ;;  %v1674_v34 = vstv %s2423_s27 }
 0x229   : > { %v1676_v24 = vmul.f32 %v1674_v34, %v2890_v57 }
 0x22a   : > { %2192 = vrot.lane.b32.xlu1 %v2189_v51, %s2692_s8  ;;  %2210 = vrot.lane.b32.xlu0 %v2207_v4, %s2693_s15  ;;  %v1456_v61 = vadd.f32 %v3766_v3, %v1436_v31  ;;  %v1457_v46 = vadd.f32 %v3774_v33, %v1437_v47  ;;  %v1547_v33 = vsel %vm642_vm5, %v1545_v50, %v1546_v0  ;;  %s2437_s8 = sld [smem:[#allocation4 + $0x54]] }
 0x22b   : > { %v1682_v15 = vrot.slane %v1676_v24, 3 }
 0x22c   : > { %v1569_v20 = vpop.permute.xlu1 %1568  ;;  %v1587_v6 = vpop.permute.xlu0 %1586  ;;  %v1476_v30 = vadd.f32 %v3776_v18, %v1456_v61  ;;  %v1477_v16 = vadd.f32 %v3785_v63, %v1457_v46  ;;  %v1810_v60 = vstv %s2430_s30 }
 0x22e   : > { %2212 = vrot.lane.b32.xlu1 %v2209_v21, %s2693_s15  ;;  %v1496_v9 = vadd.f32 %v3787_v42, %v1476_v30  ;;  %v1497_v18 = vadd.f32 %v3796_v14, %v1477_v16  ;;  %v1548_v42 = vrot.slane %v1541_v13, 2  ;;  %v1812_v16 = vmul.f32 %v1810_v60, %v2890_v57  ;;  %s2444_s15 = sld [smem:[#allocation4 + $0x5b]] }
 0x230   : > { %v1589_v35 = vpop.permute.xlu1 %1588  ;;  %v1607_v17 = vpop.permute.xlu0 %1606  ;;  %v1516_v3 = vadd.f32 %v3798_v56, %v1496_v9  ;;  %v1517_v7 = vadd.f32 %v3807_v40, %v1497_v18  ;;  %v1549_v56 = vsel %vm642_vm5, %v1546_v0, %v1548_v42  ;;  %v1675_v40 = vmul.f32 %v1674_v34, %v2886_v55 }
 0x231   : > { %v1811_v9 = vmul.f32 %v1810_v60, %v2886_v55 }
 0x232   : > { %v1536_v26 = vadd.f32 %v1531_v5, %v1516_v3  ;;  %v1537_v8 = vadd.f32 %v1533_v11, %v1517_v7  ;;  %v1681_v32 = vrot.slane %v1675_v40, 3  ;;  %v1818_v7 = vrot.slane %v1812_v16, 4 }
 0x233   : > { %v1946_v40 = vstv %s2437_s8 }
 0x234   : > { %v1609_v45 = vpop.permute.xlu1 %1608  ;;  %v1627_v43 = vpop.permute.xlu0 %1626  ;;  %v1552_v49 = vadd.f32 %v1547_v33, %v1536_v26  ;;  %v1553_v51 = vadd.f32 %v1549_v56, %v1537_v8  ;;  %v1817_v26 = vrot.slane %v1811_v9, 4 }
 0x236   : > { %v1572_v4 = vadd.f32 %v3814_v12, %v1552_v49  ;;  %v1573_v22 = vadd.f32 %v1569_v20, %v1553_v51  ;;  %v1677_v12 = vmul.f32 %v1674_v34, %v2894_v62  ;;  %v1819_v8 = vsel %vm916_vm7, %v1817_v26, %v1818_v7 }
 0x238   : > { %v1629_v10 = vpop.permute.xlu1 %1628  ;;  %v1647_v48 = vpop.permute.xlu0 %1646  ;;  %v1592_v5 = vadd.f32 %v1587_v6, %v1572_v4  ;;  %v1593_v11 = vadd.f32 %v1589_v35, %v1573_v22  ;;  %v1684_v53 = vrot.slane %v1677_v12, 3 }
 0x23a   : > { %v1612_v21 = vadd.f32 %v1607_v17, %v1592_v5  ;;  %v1613_v52 = vadd.f32 %v1609_v45, %v1593_v11  ;;  %v1683_v17 = vsel %vm779_vm6, %v1681_v32, %v1682_v15  ;;  %v1685_v45 = vsel %vm779_vm6, %v1682_v15, %v1684_v53 }
 0x23b   : > { %v1948_v11 = vmul.f32 %v1946_v40, %v2890_v57 }
 0x23c   : > { %v1649_v39 = vpop.permute.xlu1 %1648  ;;  %v1667_v44 = vpop.permute.xlu0 %1666  ;;  %v1632_v54 = vadd.f32 %v1627_v43, %v1612_v21  ;;  %v1633_v6 = vadd.f32 %v1629_v10, %v1613_v52 }
 0x23e   : > { %v1652_v38 = vadd.f32 %v1647_v48, %v1632_v54  ;;  %v1653_v20 = vadd.f32 %v1649_v39, %v1633_v6  ;;  %v1949_v6 = vmul.f32 %v1946_v40, %v2894_v62 }
 0x240   : > { %v1669_v37 = vpop.permute.xlu1 %1668  ;;  %v1703_v29 = vpop.permute.xlu0 %1702  ;;  %v1672_v59 = vadd.f32 %v1667_v44, %v1652_v38 }
 0x241   : > { %v1673_v36 = vadd.f32 %v1669_v37, %v1653_v20 }
 0x242   : > { %v1688_v35 = vadd.f32 %v1683_v17, %v1672_v59 }
 0x243   : > { %v1689_v30 = vadd.f32 %v1685_v45, %v1673_v36  ;;  %v1956_v36 = vrot.slane %v1949_v6, 5 }
 0x244   : > { %v1705_v1 = vpop.permute.xlu1 %1704  ;;  %v1723_v2 = vpop.permute.xlu0 %1722  ;;  %v1708_v47 = vadd.f32 %v1703_v29, %v1688_v35  ;;  %v1813_v29 = vmul.f32 %v1810_v60, %v2894_v62 }
 0x245   : > { %v1709_v44 = vadd.f32 %v1705_v1, %v1689_v30 }
 0x246   : > { %v1728_v58 = vadd.f32 %v1723_v2, %v1708_v47 }
 0x248   : > { %v1725_v63 = vpop.permute.xlu1 %1724  ;;  %v1743_v19 = vpop.permute.xlu0 %1742 }
 0x249   : > { %v1748_v39 = vadd.f32 %v1743_v19, %v1728_v58  ;;  %v1729_v3 = vadd.f32 %v1725_v63, %v1709_v44  ;;  %v1820_v19 = vrot.slane %v1813_v29, 4  ;;  %v2082_v44 = vstv %s2444_s15 }
 0x24c   : > { %v1745_v23 = vpop.permute.xlu1 %1744  ;;  %v1763_v14 = vpop.permute.xlu0 %1762 }
 0x24d   : > { %v1768_v50 = vadd.f32 %v1763_v14, %v1748_v39  ;;  %v1749_v13 = vadd.f32 %v1745_v23, %v1729_v3  ;;  %v1821_v23 = vsel %vm916_vm7, %v1818_v7, %v1820_v19 }
 0x250   : > { %v1765_v27 = vpop.permute.xlu1 %1764  ;;  %v1783_v28 = vpop.permute.xlu0 %1782 }
 0x251   : > { %v1788_v18 = vadd.f32 %v1783_v28, %v1768_v50  ;;  %v1769_v2 = vadd.f32 %v1765_v27, %v1749_v13  ;;  %v1947_v28 = vmul.f32 %v1946_v40, %v2886_v55  ;;  %v2083_v50 = vmul.f32 %v2082_v44, %v2886_v55 }
 0x254   : > { %v1785_v25 = vpop.permute.xlu1 %1784  ;;  %v1803_v41 = vpop.permute.xlu0 %1802 }
 0x255   : > { %v1808_v33 = vadd.f32 %v1803_v41, %v1788_v18  ;;  %v1789_v1 = vadd.f32 %v1785_v25, %v1769_v2  ;;  %v1953_v25 = vrot.slane %v1947_v28, 5  ;;  %v1954_v41 = vrot.slane %v1948_v11, 5 }
 0x256   : > { %v2089_v2 = vrot.slane %v2083_v50, 6 }
 0x257   : > { %v1824_v63 = vadd.f32 %v1819_v8, %v1808_v33  ;;  %v1957_v47 = vsel %vm264_vm1, %v1954_v41, %v1956_v36 }
 0x258   : > { %v1805_v31 = vpop.permute.xlu1 %1804  ;;  %v1839_v61 = vpop.permute.xlu0 %1838 }
 0x259   : > { %v1809_v56 = vadd.f32 %v1805_v31, %v1789_v1  ;;  %v1844_v14 = vadd.f32 %v1839_v61, %v1824_v63  ;;  %v1955_v61 = vsel %vm264_vm1, %v1953_v25, %v1954_v41 }
 0x25b   : > { %v1825_v5 = vadd.f32 %v1821_v23, %v1809_v56 }
 0x25c   : > { %v1841_v43 = vpop.permute.xlu1 %1840  ;;  %v1859_v48 = vpop.permute.xlu0 %1858 }
 0x25d   : > { %v1864_v21 = vadd.f32 %v1859_v48, %v1844_v14  ;;  %v1845_v24 = vadd.f32 %v1841_v43, %v1825_v5 }
 0x260   : > { %v1861_v46 = vpop.permute.xlu1 %1860  ;;  %v1879_v10 = vpop.permute.xlu0 %1878 }
 0x261   : > { %v1884_v27 = vadd.f32 %v1879_v10, %v1864_v21  ;;  %v1865_v38 = vadd.f32 %v1861_v46, %v1845_v24 }
 0x264   : > { %v1881_v37 = vpop.permute.xlu1 %1880  ;;  %v1899_v0 = vpop.permute.xlu0 %1898 }
 0x265   : > { %v1904_v32 = vadd.f32 %v1899_v0, %v1884_v27  ;;  %v1885_v15 = vadd.f32 %v1881_v37, %v1865_v38  ;;  %v2084_v37 = vmul.f32 %v2082_v44, %v2890_v57 }
 0x267   : > { %v2090_v33 = vrot.slane %v2084_v37, 6 }
 0x268   : > { %v1901_v42 = vpop.permute.xlu1 %1900  ;;  %v1919_v49 = vpop.permute.xlu0 %1918 }
 0x269   : > { %v1924_v12 = vadd.f32 %v1919_v49, %v1904_v32  ;;  %v1905_v17 = vadd.f32 %v1901_v42, %v1885_v15  ;;  %v2085_v42 = vmul.f32 %v2082_v44, %v2894_v62  ;;  %v2091_v63 = vsel %vm1189_vm8, %v2089_v2, %v2090_v33 }
 0x26b   : > { %v2092_v55 = vrot.slane %v2085_v42, 6 }
 0x26c   : > { %v1921_v51 = vpop.permute.xlu1 %1920  ;;  %v1939_v4 = vpop.permute.xlu0 %1938 }
 0x26d   : > { %v1944_v53 = vadd.f32 %v1939_v4, %v1924_v12  ;;  %v1925_v31 = vadd.f32 %v1921_v51, %v1905_v17  ;;  %v2093_v14 = vsel %vm1189_vm8, %v2090_v33, %v2092_v55 }
 0x26f   : > { %v1960_v48 = vadd.f32 %v1955_v61, %v1944_v53 }
 0x270   : > { %v1941_v34 = vpop.permute.xlu1 %1940  ;;  %v1975_v22 = vpop.permute.xlu0 %1974 }
 0x271   : > { %v1945_v43 = vadd.f32 %v1941_v34, %v1925_v31  ;;  %v1980_v60 = vadd.f32 %v1975_v22, %v1960_v48 }
 0x273   : > { %v1961_v46 = vadd.f32 %v1957_v47, %v1945_v43 }
 0x274   : > { %v1977_v54 = vpop.permute.xlu1 %1976  ;;  %v1995_v52 = vpop.permute.xlu0 %1994 }
 0x275   : > { %v2000_v10 = vadd.f32 %v1995_v52, %v1980_v60  ;;  %v1981_v16 = vadd.f32 %v1977_v54, %v1961_v46 }
 0x278   : > { %v1997_v59 = vpop.permute.xlu1 %1996  ;;  %v2015_v20 = vpop.permute.xlu0 %2014 }
 0x279   : > { %v2020_v3 = vadd.f32 %v2015_v20, %v2000_v10  ;;  %v2001_v0 = vadd.f32 %v1997_v59, %v1981_v16 }
 0x27c   : > { %v2017_v35 = vpop.permute.xlu1 %2016  ;;  %v2035_v45 = vpop.permute.xlu0 %2034 }
 0x27d   : > { %v2040_v13 = vadd.f32 %v2035_v45, %v2020_v3  ;;  %v2021_v7 = vadd.f32 %v2017_v35, %v2001_v0 }
 0x280   : > { %v2037_v30 = vpop.permute.xlu1 %2036  ;;  %v2055_v58 = vpop.permute.xlu0 %2054 }
 0x281   : > { %v2060_v29 = vadd.f32 %v2055_v58, %v2040_v13  ;;  %v2041_v49 = vadd.f32 %v2037_v30, %v2021_v7 }
 0x284   : > { %v2057_v39 = vpop.permute.xlu1 %2056  ;;  %v2075_v9 = vpop.permute.xlu0 %2074 }
 0x285   : > { %v2080_v1 = vadd.f32 %v2075_v9, %v2060_v29  ;;  %v2061_v56 = vadd.f32 %v2057_v39, %v2041_v49 }
 0x287   : > { %v2096_v57 = vadd.f32 %v2091_v63, %v2080_v1 }
 0x288   : > { %v2077_v18 = vpop.permute.xlu1 %2076  ;;  %v2111_v26 = vpop.permute.xlu0 %2110 }
 0x289   : > { %v2081_v51 = vadd.f32 %v2077_v18, %v2061_v56  ;;  %v2116_v5 = vadd.f32 %v2111_v26, %v2096_v57 }
 0x28b   : > { %v2097_v34 = vadd.f32 %v2093_v14, %v2081_v51 }
 0x28c   : > { %v2113_v8 = vpop.permute.xlu1 %2112  ;;  %v2131_v19 = vpop.permute.xlu0 %2130 }
 0x28d   : > { %v2136_v40 = vadd.f32 %v2131_v19, %v2116_v5  ;;  %v2117_v62 = vadd.f32 %v2113_v8, %v2097_v34 }
 0x290   : > { %v2133_v4 = vpop.permute.xlu1 %2132  ;;  %v2151_v23 = vpop.permute.xlu0 %2150 }
 0x291   : > { %v2156_v24 = vadd.f32 %v2151_v23, %v2136_v40  ;;  %v2137_v11 = vadd.f32 %v2133_v4, %v2117_v62 }
 0x294   : > { %v2153_v22 = vpop.permute.xlu1 %2152  ;;  %v2171_v21 = vpop.permute.xlu0 %2170 }
 0x295   : > { %v2176_v54 = vadd.f32 %v2171_v21, %v2156_v24  ;;  %v2157_v52 = vadd.f32 %v2153_v22, %v2137_v11 }
 0x298   : > { %v2173_v27 = vpop.permute.xlu1 %2172  ;;  %v2191_v28 = vpop.permute.xlu0 %2190 }
 0x299   : > { %v2196_v38 = vadd.f32 %v2191_v28, %v2176_v54  ;;  %v2177_v12 = vadd.f32 %v2173_v27, %v2157_v52 }
 0x29c   : > { %v2193_v32 = vpop.permute.xlu1 %2192  ;;  %v2211_v15 = vpop.permute.xlu0 %2210 }
 0x29d   : > { %v2216_v25 = vadd.f32 %v2211_v15, %v2196_v38  ;;  %v2197_v41 = vadd.f32 %v2193_v32, %v2177_v12 }
 0x29f   : > { %v2451_v6 = vmul.f32 -1.442695, %v2216_v25 }
 0x2a0   : > { %v2213_v59 = vpop.permute.xlu1 %2212 }
 0x2a1   : > { %2544 = vpow2.f32 %v2451_v6  ;;  %v2217_v20 = vadd.f32 %v2213_v59, %v2197_v41 }
 0x2a3   : > { %v2452_v17 = vmul.f32 -1.442695, %v2217_v20 }
 0x2a5   : > { %2546 = vpow2.f32 %v2452_v17 }
 0x2ab   : > { %v2545_v53 = vpop.eup %2544 }
 0x2ac   : > { %v2224_v31 = vadd.f32 1.0, %v2545_v53 }
 0x2ae   : > { %2548 = vrcp.f32 %v2224_v31 }
 0x2af   : > { %v2547_v61 = vpop.eup %2546 }
 0x2b0   : > { %v2225_v36 = vadd.f32 1.0, %v2547_v61 }
 0x2b2   : > { %2550 = vrcp.f32 %v2225_v36 }
 0x2b8   : > { %v2549_v35 = vpop.eup %2548 }
 0x2b9   : > { %2230 = vst.msk [vmem:[%s190_s23] sm:$0xff] %vm200_vm0, %v2549_v35 }
 0x2bc   : > { %v2551_v45 = vpop.eup %2550 }
 0x2bd   : > { %2231 = vst.msk [vmem:[%s190_s23 + $0x8] sm:$0xff] %vm200_vm0, %v2551_v45 }
 0x2be   : > { %2608 = shalt.err (!%p2605_p12)
}
 0x2bf   : > { %s2609_s3 = scalar_lea.hbm %s3875_s18, 256  ;;  %s2613_s30 = scalar_lea.hbm %s3929_s2, 512 }
 0x2c0   : > { %p2610_p4 = scmp.ne.s32.totalorder %s3875_s18, %s2609_s3  ;;  %p2614_p5 = scmp.lt.u32.totalorder %s3875_s18, %s3929_s2 }
 0x2c1   : > { %p2615_p9 = scmp.lt.u32.totalorder %s2613_s30, %s2609_s3  ;;  %p2617_p8 = scmp.lt.u32.totalorder %s2609_s3, %s3875_s18 }
 0x2c2   : > { %p2611_p10 = pnand %p2610_p4, %p3942_p13 }
 0x2c3   : > { %p2616_p3 = por %p2615_p9, %p2614_p5 }
 0x2c4   : > { %p2612_p11 = pneg %p2611_p10 }
 0x2c5   : > { %p2618_p0 = por %p2617_p8, %p2616_p3 }
 0x2c7   : > { %p2619_p2 = pnand %p2618_p0, %p2612_p11 }
 0x2c9   : > { %2622 = shalt.err (!%p2619_p2)
}
 0x2ca   : > { %s2695_s5 = smov 128   ;;  %s2696_s17 = smov 8  }
 0x2cb   : > { %2466 = dma.vmem_to_hbm [thread:$0]  (%p3942_p13), %s3877_s28, 256, %s3875_s18, %s2233_s19, %s2695_s5, %s2695_s5, %s2696_s17  }
 0x2cc PF: > { %s2261_s23 = sand.u32 1, %s2661_s9   ;;  %p3943_p6 = scmp.ne.s32.totalorder %s3937_s21, 0 }
 0x2cd   : > { %p3944_p1 = scmp.ge.s32.totalorder %s2681_s14, 2  ;;  %s2262_s6 = scalar_lea.sflag [#allocation6], %s2261_s23 }
 0x2cf   : > { %p2477_p7 = pnand %p3944_p1, %p3943_p6 }
 0x2d1   : > { %2656 = dma.done.wait (!%p2477_p7), %s2262_s6, 256  }
 0x2d2   : > { %2658 = vsyncadd (!%p2477_p7), %s2262_s6, 4294967040  ;;  %s19_s14 = sadd.s32 1, %s2681_s14   ;;  %s3945_s9 = smov %s2665_s10 }
 0x2d3   : > { %p16_p12 = scmp.ge.s32.totalorder %s19_s14, 4   ;;  %s3946_s10 = smov %s2669_s11 }
 0x2d4   : > { %s3947_s11 = smov %s2813_s4  ;;  %s3948_s12 = smov %s2677_s13 }
 0x2d5   : > { %s3949_s13 = smov %s3951_s25  ;;  %18 = sbr.rel (!%p16_p12) target bundleno = 7 (0x7), region = 90 }
 0x2dc   :  { %2267 = vsyncpa [#allocation5], 1 }
 0x2dd   :  { %2269 = vsyncpa [#allocation5 + $0x1], 1 }
 0x2de   :  { %2270 = vsyncpa [#allocation6], 1 }
 0x2df   :  { %2272 = vsyncpa [#allocation6 + $0x1], 1 }
 0x2e0   :  { %2273 = vsyncpa [#allocation7], 1 }
 0x2e1   :  { %2275 = vsyncpa [#allocation7 + $0x1], 1 }

</bundles_post_ra>
